<compile_context>
chip_gen: v7x
topology: tpu7x:2x2x1
jax: 0.10.0
libtpu: 0.0.40
codegen_flags: <defaults>
</compile_context>

<pallas_src>
import numpy as np

import jax
import jax.numpy as jnp
from jax.experimental import pallas as pl
from jax.experimental.pallas import tpu as pltpu


# ----------------------------------------------------------------------------
# Block-size selection
# ----------------------------------------------------------------------------
def _choose_nb(n):
    """Images per grid block: multiple of 8, trading grid-step overhead
    (~12 images worth of work) against padded/wasted images, and keeping
    >=2 grid steps when the batch allows (v7x megacore)."""
    best, best_cost = 8, None
    for nb in (8, 16, 32, 64):
        padded = ((n + nb - 1) // nb) * nb
        steps = padded // nb
        if n > 8 and steps < 2:
            continue
        cost = padded + 12 * steps
        if best_cost is None or cost < best_cost:
            best, best_cost = nb, cost
    return best


# ----------------------------------------------------------------------------
# The fused kernel (one pallas_call for the whole forward pass)
# ----------------------------------------------------------------------------
def _fused_call(p1, mask, params, NB):
    G = p1.shape[0]
    RB = 49 * NB                       # rows per block: (7x7 spatial) x NB images
    f32, bf16 = jnp.float32, jnp.bfloat16

    def kernel(p1_ref, mask_ref, w1_ref, b1_ref, w2_ref, b2_ref, w3_ref,
               b3_ref, w4_ref, b4_ref, w5_ref, b5_ref, w6_ref, b6_ref, out_ref):

        def dotf(a, w):                # bf16 MXU matmul, f32 accumulation
            return jnp.dot(a, w, preferred_element_type=f32)

        def shift_back(x, s):          # row r <- row r - s  (zero rows at the top)
            return jnp.concatenate(
                [jnp.zeros((s, x.shape[1]), x.dtype), x[:x.shape[0] - s, :]], axis=0)

        def shift_fwd(x, s):           # row r <- row r + s  (zero rows at the bottom)
            return jnp.concatenate(
                [x[s:, :], jnp.zeros((s, x.shape[1]), x.dtype)], axis=0)

        relu = lambda v: jnp.maximum(v, 0.0)

        m_first = mask_ref[:, 0:1]     # bf16: 0 on rows whose spatial x == 0
        m_last = mask_ref[:, 1:2]      # bf16: 0 on rows whose spatial x == 6

        # ---- enc1: Conv2d(1,16,3,s=2,p=1) 28->14 (phase-split over the 7x7 rows)
        p1b = p1_ref[0]                                           # (RB, 36) bf16
        a1 = relu(dotf(p1b, w1_ref[...]) + b1_ref[...])           # (RB, 64) f32
        a1b = a1.astype(bf16)                                     # single cast

        # ---- enc2: Conv2d(16,32,3,s=2,p=1) 14->7: K-concat 4 shift views, 1 GEMM
        cat1 = jnp.concatenate(
            [a1b,
             shift_back(a1b, NB) * m_first,
             shift_back(a1b, 7 * NB),
             shift_back(a1b, 8 * NB) * m_first], axis=1)          # (RB, 256)
        a2 = relu(dotf(cat1, w2_ref[...]) + b2_ref[...])          # (RB, 32)
        a2b = a2.astype(bf16)

        # ---- enc3: Conv2d(32,64,7) 7->1: rearrange rows (s,n)->(n,(s,c)) and do
        #      ONE K=1568 GEMM instead of 49 tiny M=NB GEMMs.
        a2w = jnp.concatenate(
            [a2b[s * NB:(s + 1) * NB, :] for s in range(49)], axis=1)  # (NB, 1568)
        z = relu(dotf(a2w, w3_ref[...]) + b3_ref[...])            # (NB, 64) latent
        zb = z.astype(bf16)

        # ---- dec1: ConvTranspose2d(64,32,7) on a 1x1 input == one dense GEMM,
        #      then back to (spatial, image) rows in registers (no VMEM scratch).
        d1 = relu(dotf(zb, w4_ref[...]) + b4_ref[...])            # (NB, 1568)
        d1b = d1.astype(bf16)
        a4b = jnp.concatenate(
            [d1b[:, s * 32:(s + 1) * 32] for s in range(49)], axis=0)  # (RB, 32)

        # ---- dec2: ConvTranspose2d(32,16,3,s=2,p=1,op=1) 7->14, K-concat fused
        cat4 = jnp.concatenate(
            [a4b,
             shift_fwd(a4b, NB) * m_last,
             shift_fwd(a4b, 7 * NB),
             shift_fwd(a4b, 8 * NB) * m_last], axis=1)            # (RB, 128)
        a5 = relu(dotf(cat4, w5_ref[...]) + b5_ref[...])          # (RB, 64)
        a5b = a5.astype(bf16)

        # ---- dec3: ConvTranspose2d(16,1,3,s=2,p=1,op=1) 14->28 + sigmoid.
        #      16 output sub-pixels of the 4x4 cell live on the lane axis.
        cat5 = jnp.concatenate(
            [a5b,
             shift_fwd(a5b, NB) * m_last,
             shift_fwd(a5b, 7 * NB),
             shift_fwd(a5b, 8 * NB) * m_last], axis=1)            # (RB, 256)
        logit = dotf(cat5, w6_ref[...]) + b6_ref[...]             # (RB, 16)
        out = 0.5 * jnp.tanh(0.5 * logit) + 0.5                   # sigmoid on the EUP
        out_ref[0] = out.reshape(49, NB, 16)

    def full(a):
        return pl.BlockSpec(a.shape, lambda *_: (0,) * a.ndim)

    operands = (p1, mask,
                params["w1"], params["b1"], params["w2"], params["b2"],
                params["w3"], params["b3"], params["w4"], params["b4"],
                params["w5"], params["b5"], params["w6"], params["b6"])
    in_specs = [pl.BlockSpec((1, RB, 36), lambda i: (i, 0, 0))]
    in_specs += [full(op) for op in operands[1:]]

    return pl.pallas_call(
        kernel,
        grid=(G,),
        in_specs=in_specs,
        out_specs=pl.BlockSpec((1, 49, NB, 16), lambda i: (i, 0, 0, 0)),
        out_shape=jax.ShapeDtypeStruct((G, 49, NB, 16), jnp.float32),
        compiler_params=pltpu.CompilerParams(
            dimension_semantics=("parallel",),
            vmem_limit_bytes=48 * 1024 * 1024),
    )(*operands)


# ----------------------------------------------------------------------------
# Parameter construction (all layout transforms hoisted here, done once)
# ----------------------------------------------------------------------------
def init_params(key):
    def uinit(k, shape, fan_in):
        bound = float(fan_in) ** -0.5
        return np.asarray(jax.random.uniform(k, shape, jnp.float32, -bound, bound))

    ks = jax.random.split(key, 12)
    w_e1, b_e1 = uinit(ks[0], (16, 1, 3, 3), 9),     uinit(ks[1], (16,), 9)
    w_e2, b_e2 = uinit(ks[2], (32, 16, 3, 3), 144),  uinit(ks[3], (32,), 144)
    w_e3, b_e3 = uinit(ks[4], (64, 32, 7, 7), 1568), uinit(ks[5], (64,), 1568)
    w_d1, b_d1 = uinit(ks[6], (64, 32, 7, 7), 1568), uinit(ks[7], (32,), 1568)
    w_d2, b_d2 = uinit(ks[8], (32, 16, 3, 3), 144),  uinit(ks[9], (16,), 144)
    w_d3, b_d3 = uinit(ks[10], (16, 1, 3, 3), 9),    uinit(ks[11], (1,), 9)

    # enc1: block-diagonal over the 4 output phases of the 14x14 grid.
    W1 = np.zeros((36, 64), np.float32)
    blk = np.transpose(w_e1[:, 0], (1, 2, 0)).reshape(9, 16)      # [ky*3+kx, co]
    for p in range(4):
        W1[p * 9:(p + 1) * 9, p * 16:(p + 1) * 16] = blk
    b1 = np.tile(b_e1, 4)

    # enc2: per-shift weights, stacked along K for one fused K=256 GEMM.
    W2 = np.zeros((4, 64, 32), np.float32)
    for ky in range(3):
        for kx in range(3):
            py, ys = (0, 0) if ky == 1 else (1, 1 if ky == 0 else 0)
            px, xs = (0, 0) if kx == 1 else (1, 1 if kx == 0 else 0)
            v, ph = 2 * ys + xs, py * 2 + px
            W2[v, ph * 16:(ph + 1) * 16, :] = w_e2[:, :, ky, kx].T
    W2 = W2.reshape(256, 32)
    b2 = b_e2

    # enc3: single (1568, 64) weight; K index = (spatial s)*32 + cin.
    W3 = np.transpose(w_e3, (2, 3, 1, 0)).reshape(49 * 32, 64)
    b3 = b_e3

    # dec1: dense (64 -> 7*7*32), columns ordered (oy, ox, cout).
    W4 = np.transpose(w_d1, (0, 2, 3, 1)).reshape(64, 49 * 32)
    b4 = np.tile(b_d1, 49)

    # dec2: transposed-conv phase decomposition, stacked along K (K=128).
    W5 = np.zeros((4, 32, 64), np.float32)
    for py in (0, 1):
        for px in (0, 1):
            ph = py * 2 + px
            for dy in range(py + 1):
                for dx in range(px + 1):
                    ky = 0 if dy == 1 else 1 + py
                    kx = 0 if dx == 1 else 1 + px
                    W5[2 * dy + dx, :, ph * 16:(ph + 1) * 16] += w_d2[:, :, ky, kx]
    W5 = W5.reshape(128, 64)
    b5 = np.tile(b_d2, 4)

    # dec3: same decomposition, stacked along K (K=256); output column
    # g = (2*pm+ty)*4 + (2*pk+tx) is the sub-pixel (Y%4, X%4) of the 4x4 cell.
    W6 = np.zeros((4, 64, 16), np.float32)
    for pm in (0, 1):
        for pk in (0, 1):
            for ty in (0, 1):
                for tx in (0, 1):
                    g = (2 * pm + ty) * 4 + (2 * pk + tx)
                    for dy in range(ty + 1):
                        for dx in range(tx + 1):
                            ky = 0 if dy == 1 else 1 + ty
                            kx = 0 if dx == 1 else 1 + tx
                            v = 2 * ((pm + dy) // 2) + ((pk + dx) // 2)
                            ph = ((pm + dy) % 2) * 2 + ((pk + dx) % 2)
                            W6[v, ph * 16:(ph + 1) * 16, g] += w_d3[:, 0, ky, kx]
    W6 = W6.reshape(256, 16)
    b6 = np.full((16,), float(b_d3[0]), np.float32)

    bf, f = jnp.bfloat16, jnp.float32
    params = {
        "w1": jnp.asarray(W1, bf), "b1": jnp.asarray(b1.reshape(1, -1), f),
        "w2": jnp.asarray(W2, bf), "b2": jnp.asarray(b2.reshape(1, -1), f),
        "w3": jnp.asarray(W3, bf), "b3": jnp.asarray(b3.reshape(1, -1), f),
        "w4": jnp.asarray(W4, bf), "b4": jnp.asarray(b4.reshape(1, -1), f),
        "w5": jnp.asarray(W5, bf), "b5": jnp.asarray(b5.reshape(1, -1), f),
        "w6": jnp.asarray(W6, bf), "b6": jnp.asarray(b6.reshape(1, -1), f),
    }
    raw = {"w_e1": w_e1, "b_e1": b_e1, "w_e2": w_e2, "b_e2": b_e2,
           "w_e3": w_e3, "b_e3": b_e3, "w_d1": w_d1, "b_d1": b_d1,
           "w_d2": w_d2, "b_d2": b_d2, "w_d3": w_d3, "b_d3": b_d3}
    return params, raw


# ----------------------------------------------------------------------------
# Forward wrapper: thin XLA glue for the input patches and output interleave
# ----------------------------------------------------------------------------
def conv_autoencoder_forward(x_nchw, params, nb_block=None):
    n, c, h, w = x_nchw.shape
    assert c == 1 and h == 28 and w == 28
    NB = _choose_nb(n) if nb_block is None else nb_block
    RB = 49 * NB
    n_pad = ((n + NB - 1) // NB) * NB
    G = n_pad // NB

    xp = jnp.pad(x_nchw[:, 0].astype(jnp.float32),
                 ((0, n_pad - n), (1, 1), (1, 1)))                # (n_pad, 30, 30)

    # enc1 patches, grouped by the 4 output phases of the 14x14 grid.
    # (Kept as XLA glue; could be folded into the kernel with the same shift
    #  machinery if input DMA ever becomes visible.)
    cols = []
    for py in (0, 1):
        for px in (0, 1):
            for ky in range(3):
                for kx in range(3):
                    r0, c0 = 2 * py + ky, 2 * px + kx
                    cols.append(xp[:, r0:r0 + 25:4, c0:c0 + 25:4])   # (n_pad, 7, 7)
    p1 = jnp.stack(cols, axis=-1).reshape(n_pad, 49, 36)
    p1 = p1.reshape(G, NB, 49, 36).transpose(0, 2, 1, 3)             # (G, 49, NB, 36)
    p1 = p1.reshape(G, RB, 36).astype(jnp.bfloat16)                  # contiguous blocks

    # Boundary masks (0/1, exact in bf16) for the in-kernel row shifts.
    ox = np.repeat(np.arange(49) % 7, NB)
    mask = np.stack([(ox > 0), (ox < 6)], axis=1).astype(np.float32)  # (RB, 2)
    mask = jnp.asarray(mask, jnp.bfloat16)

    out = _fused_call(p1, mask, params, NB)                          # (G, 49, NB, 16)

    # rows = (block, q, r, image), columns = (Y%4, X%4)  ->  (n, 1, 28, 28)
    o = out.reshape(G, 7, 7, NB, 4, 4)
    o = jnp.transpose(o, (0, 3, 1, 4, 2, 5)).reshape(n_pad, 28, 28)
    return o[:n, None, :, :]


# ----------------------------------------------------------------------------
# Pure-XLA reference (no Pallas), for a runtime correctness check
# ----------------------------------------------------------------------------
def _ref_forward(x_nchw, raw):
    x = jnp.transpose(x_nchw, (0, 2, 3, 1)).astype(jnp.float32)
    dn_names = ("NHWC", "OIHW", "NHWC")

    def conv(x, w, b, stride, pad):
        w = jnp.asarray(w)
        dn = jax.lax.conv_dimension_numbers(x.shape, w.shape, dn_names)
        y = jax.lax.conv_general_dilated(x, w, (stride, stride),
                                         [(pad, pad), (pad, pad)],
                                         dimension_numbers=dn)
        return y + jnp.asarray(b).reshape(1, 1, 1, -1)

    def convT(x, w, b, stride, pad, out_pad):
        wf = jnp.transpose(jnp.asarray(w)[:, :, ::-1, ::-1], (1, 0, 2, 3))
        k = w.shape[2]
        lo = k - 1 - pad
        dn = jax.lax.conv_dimension_numbers(x.shape, wf.shape, dn_names)
        y = jax.lax.conv_general_dilated(x, wf, (1, 1),
                                         [(lo, lo + out_pad), (lo, lo + out_pad)],
                                         lhs_dilation=(stride, stride),
                                         dimension_numbers=dn)
        return y + jnp.asarray(b).reshape(1, 1, 1, -1)

    x = jax.nn.relu(conv(x, raw["w_e1"], raw["b_e1"], 2, 1))
    x = jax.nn.relu(conv(x, raw["w_e2"], raw["b_e2"], 2, 1))
    x = jax.nn.relu(conv(x, raw["w_e3"], raw["b_e3"], 1, 0))
    x = jax.nn.relu(convT(x, raw["w_d1"], raw["b_d1"], 1, 0, 0))
    x = jax.nn.relu(convT(x, raw["w_d2"], raw["b_d2"], 2, 1, 1))
    x = jax.nn.sigmoid(convT(x, raw["w_d3"], raw["b_d3"], 2, 1, 1))
    return jnp.transpose(x, (0, 3, 1, 2))


if __name__ == "__main__":
    key = jax.random.PRNGKey(0)
    params, raw = init_params(key)
    fwd = jax.jit(conv_autoencoder_forward)

    # Small-batch check (NB=8, single grid step).
    x = jax.random.uniform(jax.random.fold_in(key, 999), (2, 1, 28, 28),
                           jnp.float32)
    y = jax.block_until_ready(fwd(x, params))
    assert y.shape == (2, 1, 28, 28), y.shape
    assert y.dtype == jnp.float32
    assert bool(jnp.all(jnp.isfinite(y)))
    assert bool(jnp.all((y >= -1e-5) & (y <= 1.0 + 1e-5)))   # sigmoid output range
    y_ref = jax.block_until_ready(_ref_forward(x, raw))
    max_err = float(jnp.max(jnp.abs(y - y_ref)))
    assert max_err < 5e-2, f"kernel vs XLA reference mismatch: {max_err}"
    # NOTE: tolerance is dominated by intentional bf16 weight/activation quantization.

    # Larger batch exercises the big-NB / multi-grid-step (megacore) path.
    x2 = jax.random.uniform(jax.random.fold_in(key, 123), (70, 1, 28, 28),
                            jnp.float32)
    y2 = jax.block_until_ready(fwd(x2, params))
    y2_ref = jax.block_until_ready(_ref_forward(x2, raw))
    max_err2 = float(jnp.max(jnp.abs(y2 - y2_ref)))
    assert y2.shape == (70, 1, 28, 28)
    assert max_err2 < 5e-2, f"kernel vs XLA reference mismatch (batch 70): {max_err2}"

    print("KERNEL_OK")
</pallas_src>

<mosaic_0001>
module attributes {stable_mosaic.version = 11 : i64} {
  func.func @kernel(%arg0: i32, %arg1: memref<1x392x36xbf16, #tpu.memory_space<vmem>>, %arg2: memref<392x2xbf16, #tpu.memory_space<vmem>>, %arg3: memref<36x64xbf16, #tpu.memory_space<vmem>>, %arg4: memref<1x64xf32, #tpu.memory_space<vmem>>, %arg5: memref<256x32xbf16, #tpu.memory_space<vmem>>, %arg6: memref<1x32xf32, #tpu.memory_space<vmem>>, %arg7: memref<1568x64xbf16, #tpu.memory_space<vmem>>, %arg8: memref<1x64xf32, #tpu.memory_space<vmem>>, %arg9: memref<64x1568xbf16, #tpu.memory_space<vmem>>, %arg10: memref<1x1568xf32, #tpu.memory_space<vmem>>, %arg11: memref<128x64xbf16, #tpu.memory_space<vmem>>, %arg12: memref<1x64xf32, #tpu.memory_space<vmem>>, %arg13: memref<256x16xbf16, #tpu.memory_space<vmem>>, %arg14: memref<1x16xf32, #tpu.memory_space<vmem>>, %arg15: memref<1x49x8x16xf32, #tpu.memory_space<vmem>>) attributes {dimension_semantics = [#tpu.dimension_semantics<parallel>], iteration_bounds = array<i64: 1>, scalar_prefetch = 0 : i64, scratch_operands = 0 : i64, tpu.core_type = #tpu.core_type<tc>, window_params = [{transform_indices = @transform_0, window_bounds = array<i64: 1, 392, 36>}, {pipeline_mode = #tpu.pipeline_mode<synchronous>, transform_indices = @transform_1, window_bounds = array<i64: 392, 2>}, {pipeline_mode = #tpu.pipeline_mode<synchronous>, transform_indices = @transform_2, window_bounds = array<i64: 36, 64>}, {pipeline_mode = #tpu.pipeline_mode<synchronous>, transform_indices = @transform_3, window_bounds = array<i64: 1, 64>}, {pipeline_mode = #tpu.pipeline_mode<synchronous>, transform_indices = @transform_4, window_bounds = array<i64: 256, 32>}, {pipeline_mode = #tpu.pipeline_mode<synchronous>, transform_indices = @transform_5, window_bounds = array<i64: 1, 32>}, {pipeline_mode = #tpu.pipeline_mode<synchronous>, transform_indices = @transform_6, window_bounds = array<i64: 1568, 64>}, {pipeline_mode = #tpu.pipeline_mode<synchronous>, transform_indices = @transform_7, window_bounds = array<i64: 1, 64>}, {pipeline_mode = #tpu.pipeline_mode<synchronous>, transform_indices = @transform_8, window_bounds = array<i64: 64, 1568>}, {pipeline_mode = #tpu.pipeline_mode<synchronous>, transform_indices = @transform_9, window_bounds = array<i64: 1, 1568>}, {pipeline_mode = #tpu.pipeline_mode<synchronous>, transform_indices = @transform_10, window_bounds = array<i64: 128, 64>}, {pipeline_mode = #tpu.pipeline_mode<synchronous>, transform_indices = @transform_11, window_bounds = array<i64: 1, 64>}, {pipeline_mode = #tpu.pipeline_mode<synchronous>, transform_indices = @transform_12, window_bounds = array<i64: 256, 16>}, {pipeline_mode = #tpu.pipeline_mode<synchronous>, transform_indices = @transform_13, window_bounds = array<i64: 1, 16>}, {transform_indices = @transform_14, window_bounds = array<i64: 1, 49, 8, 16>}]} {
    %c0 = arith.constant 0 : index
    %c0_0 = arith.constant 0 : index
    %0 = vector.load %arg2[%c0, %c0_0] : memref<392x2xbf16, #tpu.memory_space<vmem>>, vector<392x1xbf16>
    %c0_1 = arith.constant 0 : index
    %c1 = arith.constant 1 : index
    %1 = vector.load %arg2[%c0_1, %c1] : memref<392x2xbf16, #tpu.memory_space<vmem>>, vector<392x1xbf16>
    %c0_2 = arith.constant 0 : index
    %c0_3 = arith.constant 0 : index
    %c0_4 = arith.constant 0 : index
    %2 = vector.load %arg1[%c0_2, %c0_3, %c0_4] : memref<1x392x36xbf16, #tpu.memory_space<vmem>>, vector<1x392x36xbf16>
    %3 = vector.shape_cast %2 : vector<1x392x36xbf16> to vector<392x36xbf16>
    %c0_5 = arith.constant 0 : index
    %c0_6 = arith.constant 0 : index
    %4 = vector.load %arg3[%c0_5, %c0_6] : memref<36x64xbf16, #tpu.memory_space<vmem>>, vector<36x64xbf16>
    %cst = arith.constant dense<0.000000e+00> : vector<392x64xf32>
    %5 = tpu.matmul %3, %4, %cst {dimension_numbers = #tpu.dot_dimension_numbers<[1], [0], [0], [1], [0, 0, 1, 1], [], []>} : vector<392x36xbf16>, vector<36x64xbf16>, vector<392x64xf32> -> vector<392x64xf32>
    %c0_7 = arith.constant 0 : index
    %c0_8 = arith.constant 0 : index
    %6 = vector.load %arg4[%c0_7, %c0_8] : memref<1x64xf32, #tpu.memory_space<vmem>>, vector<1x64xf32>
    %7 = vector.broadcast %6 : vector<1x64xf32> to vector<392x64xf32>
    %8 = arith.addf %5, %7 : vector<392x64xf32>
    %cst_9 = arith.constant 0.000000e+00 : f32
    %9 = vector.broadcast %cst_9 : f32 to vector<392x64xf32>
    %10 = arith.maximumf %8, %9 : vector<392x64xf32>
    %11 = arith.truncf %10 : vector<392x64xf32> to vector<392x64xbf16>
    %cst_10 = arith.constant 0.000000e+00 : bf16
    %12 = vector.broadcast %cst_10 : bf16 to vector<8x64xbf16>
    %13 = vector.extract_strided_slice %11 {offsets = [0, 0], sizes = [384, 64], strides = [1, 1]} : vector<392x64xbf16> to vector<384x64xbf16>
    %14 = tpu.concatenate %12, %13 in 0 : vector<8x64xbf16>, vector<384x64xbf16> -> vector<392x64xbf16>
    %15 = vector.broadcast %0 : vector<392x1xbf16> to vector<392x64xbf16>
    %16 = arith.mulf %14, %15 : vector<392x64xbf16>
    %cst_11 = arith.constant 0.000000e+00 : bf16
    %17 = vector.broadcast %cst_11 : bf16 to vector<56x64xbf16>
    %18 = vector.extract_strided_slice %11 {offsets = [0, 0], sizes = [336, 64], strides = [1, 1]} : vector<392x64xbf16> to vector<336x64xbf16>
    %19 = tpu.concatenate %17, %18 in 0 : vector<56x64xbf16>, vector<336x64xbf16> -> vector<392x64xbf16>
    %cst_12 = arith.constant 0.000000e+00 : bf16
    %20 = vector.broadcast %cst_12 : bf16 to vector<64x64xbf16>
    %21 = vector.extract_strided_slice %11 {offsets = [0, 0], sizes = [328, 64], strides = [1, 1]} : vector<392x64xbf16> to vector<328x64xbf16>
    %22 = tpu.concatenate %20, %21 in 0 : vector<64x64xbf16>, vector<328x64xbf16> -> vector<392x64xbf16>
    %23 = vector.broadcast %0 : vector<392x1xbf16> to vector<392x64xbf16>
    %24 = arith.mulf %22, %23 : vector<392x64xbf16>
    %25 = tpu.concatenate %11, %16, %19, %24 in 1 : vector<392x64xbf16>, vector<392x64xbf16>, vector<392x64xbf16>, vector<392x64xbf16> -> vector<392x256xbf16>
    %c0_13 = arith.constant 0 : index
    %c0_14 = arith.constant 0 : index
    %26 = vector.load %arg5[%c0_13, %c0_14] : memref<256x32xbf16, #tpu.memory_space<vmem>>, vector<256x32xbf16>
    %cst_15 = arith.constant dense<0.000000e+00> : vector<392x32xf32>
    %27 = tpu.matmul %25, %26, %cst_15 {dimension_numbers = #tpu.dot_dimension_numbers<[1], [0], [0], [1], [0, 0, 1, 1], [], []>} : vector<392x256xbf16>, vector<256x32xbf16>, vector<392x32xf32> -> vector<392x32xf32>
    %c0_16 = arith.constant 0 : index
    %c0_17 = arith.constant 0 : index
    %28 = vector.load %arg6[%c0_16, %c0_17] : memref<1x32xf32, #tpu.memory_space<vmem>>, vector<1x32xf32>
    %29 = vector.broadcast %28 : vector<1x32xf32> to vector<392x32xf32>
    %30 = arith.addf %27, %29 : vector<392x32xf32>
    %cst_18 = arith.constant 0.000000e+00 : f32
    %31 = vector.broadcast %cst_18 : f32 to vector<392x32xf32>
    %32 = arith.maximumf %30, %31 : vector<392x32xf32>
    %33 = arith.truncf %32 : vector<392x32xf32> to vector<392x32xbf16>
    %34 = vector.extract_strided_slice %33 {offsets = [0, 0], sizes = [8, 32], strides = [1, 1]} : vector<392x32xbf16> to vector<8x32xbf16>
    %35 = vector.extract_strided_slice %33 {offsets = [8, 0], sizes = [8, 32], strides = [1, 1]} : vector<392x32xbf16> to vector<8x32xbf16>
    %36 = vector.extract_strided_slice %33 {offsets = [16, 0], sizes = [8, 32], strides = [1, 1]} : vector<392x32xbf16> to vector<8x32xbf16>
    %37 = vector.extract_strided_slice %33 {offsets = [24, 0], sizes = [8, 32], strides = [1, 1]} : vector<392x32xbf16> to vector<8x32xbf16>
    %38 = vector.extract_strided_slice %33 {offsets = [32, 0], sizes = [8, 32], strides = [1, 1]} : vector<392x32xbf16> to vector<8x32xbf16>
    %39 = vector.extract_strided_slice %33 {offsets = [40, 0], sizes = [8, 32], strides = [1, 1]} : vector<392x32xbf16> to vector<8x32xbf16>
    %40 = vector.extract_strided_slice %33 {offsets = [48, 0], sizes = [8, 32], strides = [1, 1]} : vector<392x32xbf16> to vector<8x32xbf16>
    %41 = vector.extract_strided_slice %33 {offsets = [56, 0], sizes = [8, 32], strides = [1, 1]} : vector<392x32xbf16> to vector<8x32xbf16>
    %42 = vector.extract_strided_slice %33 {offsets = [64, 0], sizes = [8, 32], strides = [1, 1]} : vector<392x32xbf16> to vector<8x32xbf16>
    %43 = vector.extract_strided_slice %33 {offsets = [72, 0], sizes = [8, 32], strides = [1, 1]} : vector<392x32xbf16> to vector<8x32xbf16>
    %44 = vector.extract_strided_slice %33 {offsets = [80, 0], sizes = [8, 32], strides = [1, 1]} : vector<392x32xbf16> to vector<8x32xbf16>
    %45 = vector.extract_strided_slice %33 {offsets = [88, 0], sizes = [8, 32], strides = [1, 1]} : vector<392x32xbf16> to vector<8x32xbf16>
    %46 = vector.extract_strided_slice %33 {offsets = [96, 0], sizes = [8, 32], strides = [1, 1]} : vector<392x32xbf16> to vector<8x32xbf16>
    %47 = vector.extract_strided_slice %33 {offsets = [104, 0], sizes = [8, 32], strides = [1, 1]} : vector<392x32xbf16> to vector<8x32xbf16>
    %48 = vector.extract_strided_slice %33 {offsets = [112, 0], sizes = [8, 32], strides = [1, 1]} : vector<392x32xbf16> to vector<8x32xbf16>
    %49 = vector.extract_strided_slice %33 {offsets = [120, 0], sizes = [8, 32], strides = [1, 1]} : vector<392x32xbf16> to vector<8x32xbf16>
    %50 = vector.extract_strided_slice %33 {offsets = [128, 0], sizes = [8, 32], strides = [1, 1]} : vector<392x32xbf16> to vector<8x32xbf16>
    %51 = vector.extract_strided_slice %33 {offsets = [136, 0], sizes = [8, 32], strides = [1, 1]} : vector<392x32xbf16> to vector<8x32xbf16>
    %52 = vector.extract_strided_slice %33 {offsets = [144, 0], sizes = [8, 32], strides = [1, 1]} : vector<392x32xbf16> to vector<8x32xbf16>
    %53 = vector.extract_strided_slice %33 {offsets = [152, 0], sizes = [8, 32], strides = [1, 1]} : vector<392x32xbf16> to vector<8x32xbf16>
    %54 = vector.extract_strided_slice %33 {offsets = [160, 0], sizes = [8, 32], strides = [1, 1]} : vector<392x32xbf16> to vector<8x32xbf16>
    %55 = vector.extract_strided_slice %33 {offsets = [168, 0], sizes = [8, 32], strides = [1, 1]} : vector<392x32xbf16> to vector<8x32xbf16>
    %56 = vector.extract_strided_slice %33 {offsets = [176, 0], sizes = [8, 32], strides = [1, 1]} : vector<392x32xbf16> to vector<8x32xbf16>
    %57 = vector.extract_strided_slice %33 {offsets = [184, 0], sizes = [8, 32], strides = [1, 1]} : vector<392x32xbf16> to vector<8x32xbf16>
    %58 = vector.extract_strided_slice %33 {offsets = [192, 0], sizes = [8, 32], strides = [1, 1]} : vector<392x32xbf16> to vector<8x32xbf16>
    %59 = vector.extract_strided_slice %33 {offsets = [200, 0], sizes = [8, 32], strides = [1, 1]} : vector<392x32xbf16> to vector<8x32xbf16>
    %60 = vector.extract_strided_slice %33 {offsets = [208, 0], sizes = [8, 32], strides = [1, 1]} : vector<392x32xbf16> to vector<8x32xbf16>
    %61 = vector.extract_strided_slice %33 {offsets = [216, 0], sizes = [8, 32], strides = [1, 1]} : vector<392x32xbf16> to vector<8x32xbf16>
    %62 = vector.extract_strided_slice %33 {offsets = [224, 0], sizes = [8, 32], strides = [1, 1]} : vector<392x32xbf16> to vector<8x32xbf16>
    %63 = vector.extract_strided_slice %33 {offsets = [232, 0], sizes = [8, 32], strides = [1, 1]} : vector<392x32xbf16> to vector<8x32xbf16>
    %64 = vector.extract_strided_slice %33 {offsets = [240, 0], sizes = [8, 32], strides = [1, 1]} : vector<392x32xbf16> to vector<8x32xbf16>
    %65 = vector.extract_strided_slice %33 {offsets = [248, 0], sizes = [8, 32], strides = [1, 1]} : vector<392x32xbf16> to vector<8x32xbf16>
    %66 = vector.extract_strided_slice %33 {offsets = [256, 0], sizes = [8, 32], strides = [1, 1]} : vector<392x32xbf16> to vector<8x32xbf16>
    %67 = vector.extract_strided_slice %33 {offsets = [264, 0], sizes = [8, 32], strides = [1, 1]} : vector<392x32xbf16> to vector<8x32xbf16>
    %68 = vector.extract_strided_slice %33 {offsets = [272, 0], sizes = [8, 32], strides = [1, 1]} : vector<392x32xbf16> to vector<8x32xbf16>
    %69 = vector.extract_strided_slice %33 {offsets = [280, 0], sizes = [8, 32], strides = [1, 1]} : vector<392x32xbf16> to vector<8x32xbf16>
    %70 = vector.extract_strided_slice %33 {offsets = [288, 0], sizes = [8, 32], strides = [1, 1]} : vector<392x32xbf16> to vector<8x32xbf16>
    %71 = vector.extract_strided_slice %33 {offsets = [296, 0], sizes = [8, 32], strides = [1, 1]} : vector<392x32xbf16> to vector<8x32xbf16>
    %72 = vector.extract_strided_slice %33 {offsets = [304, 0], sizes = [8, 32], strides = [1, 1]} : vector<392x32xbf16> to vector<8x32xbf16>
    %73 = vector.extract_strided_slice %33 {offsets = [312, 0], sizes = [8, 32], strides = [1, 1]} : vector<392x32xbf16> to vector<8x32xbf16>
    %74 = vector.extract_strided_slice %33 {offsets = [320, 0], sizes = [8, 32], strides = [1, 1]} : vector<392x32xbf16> to vector<8x32xbf16>
    %75 = vector.extract_strided_slice %33 {offsets = [328, 0], sizes = [8, 32], strides = [1, 1]} : vector<392x32xbf16> to vector<8x32xbf16>
    %76 = vector.extract_strided_slice %33 {offsets = [336, 0], sizes = [8, 32], strides = [1, 1]} : vector<392x32xbf16> to vector<8x32xbf16>
    %77 = vector.extract_strided_slice %33 {offsets = [344, 0], sizes = [8, 32], strides = [1, 1]} : vector<392x32xbf16> to vector<8x32xbf16>
    %78 = vector.extract_strided_slice %33 {offsets = [352, 0], sizes = [8, 32], strides = [1, 1]} : vector<392x32xbf16> to vector<8x32xbf16>
    %79 = vector.extract_strided_slice %33 {offsets = [360, 0], sizes = [8, 32], strides = [1, 1]} : vector<392x32xbf16> to vector<8x32xbf16>
    %80 = vector.extract_strided_slice %33 {offsets = [368, 0], sizes = [8, 32], strides = [1, 1]} : vector<392x32xbf16> to vector<8x32xbf16>
    %81 = vector.extract_strided_slice %33 {offsets = [376, 0], sizes = [8, 32], strides = [1, 1]} : vector<392x32xbf16> to vector<8x32xbf16>
    %82 = vector.extract_strided_slice %33 {offsets = [384, 0], sizes = [8, 32], strides = [1, 1]} : vector<392x32xbf16> to vector<8x32xbf16>
    %83 = tpu.concatenate %34, %35, %36, %37, %38, %39, %40, %41, %42, %43, %44, %45, %46, %47, %48, %49 in 1 : vector<8x32xbf16>, vector<8x32xbf16>, vector<8x32xbf16>, vector<8x32xbf16>, vector<8x32xbf16>, vector<8x32xbf16>, vector<8x32xbf16>, vector<8x32xbf16>, vector<8x32xbf16>, vector<8x32xbf16>, vector<8x32xbf16>, vector<8x32xbf16>, vector<8x32xbf16>, vector<8x32xbf16>, vector<8x32xbf16>, vector<8x32xbf16> -> vector<8x512xbf16>
    %84 = tpu.concatenate %50, %51, %52, %53, %54, %55, %56, %57, %58, %59, %60, %61, %62, %63, %64, %65 in 1 : vector<8x32xbf16>, vector<8x32xbf16>, vector<8x32xbf16>, vector<8x32xbf16>, vector<8x32xbf16>, vector<8x32xbf16>, vector<8x32xbf16>, vector<8x32xbf16>, vector<8x32xbf16>, vector<8x32xbf16>, vector<8x32xbf16>, vector<8x32xbf16>, vector<8x32xbf16>, vector<8x32xbf16>, vector<8x32xbf16>, vector<8x32xbf16> -> vector<8x512xbf16>
    %85 = tpu.concatenate %66, %67, %68, %69, %70, %71, %72, %73, %74, %75, %76, %77, %78, %79, %80, %81 in 1 : vector<8x32xbf16>, vector<8x32xbf16>, vector<8x32xbf16>, vector<8x32xbf16>, vector<8x32xbf16>, vector<8x32xbf16>, vector<8x32xbf16>, vector<8x32xbf16>, vector<8x32xbf16>, vector<8x32xbf16>, vector<8x32xbf16>, vector<8x32xbf16>, vector<8x32xbf16>, vector<8x32xbf16>, vector<8x32xbf16>, vector<8x32xbf16> -> vector<8x512xbf16>
    %86 = tpu.concatenate %83, %84, %85, %82 in 1 : vector<8x512xbf16>, vector<8x512xbf16>, vector<8x512xbf16>, vector<8x32xbf16> -> vector<8x1568xbf16>
    %c0_19 = arith.constant 0 : index
    %c0_20 = arith.constant 0 : index
    %87 = vector.load %arg7[%c0_19, %c0_20] : memref<1568x64xbf16, #tpu.memory_space<vmem>>, vector<1568x64xbf16>
    %cst_21 = arith.constant dense<0.000000e+00> : vector<8x64xf32>
    %88 = tpu.matmul %86, %87, %cst_21 {dimension_numbers = #tpu.dot_dimension_numbers<[1], [0], [0], [1], [0, 0, 1, 1], [], []>} : vector<8x1568xbf16>, vector<1568x64xbf16>, vector<8x64xf32> -> vector<8x64xf32>
    %c0_22 = arith.constant 0 : index
    %c0_23 = arith.constant 0 : index
    %89 = vector.load %arg8[%c0_22, %c0_23] : memref<1x64xf32, #tpu.memory_space<vmem>>, vector<1x64xf32>
    %90 = vector.broadcast %89 : vector<1x64xf32> to vector<8x64xf32>
    %91 = arith.addf %88, %90 : vector<8x64xf32>
    %cst_24 = arith.constant 0.000000e+00 : f32
    %92 = vector.broadcast %cst_24 : f32 to vector<8x64xf32>
    %93 = arith.maximumf %91, %92 : vector<8x64xf32>
    %94 = arith.truncf %93 : vector<8x64xf32> to vector<8x64xbf16>
    %c0_25 = arith.constant 0 : index
    %c0_26 = arith.constant 0 : index
    %95 = vector.load %arg9[%c0_25, %c0_26] : memref<64x1568xbf16, #tpu.memory_space<vmem>>, vector<64x1568xbf16>
    %cst_27 = arith.constant dense<0.000000e+00> : vector<8x1568xf32>
    %96 = tpu.matmul %94, %95, %cst_27 {dimension_numbers = #tpu.dot_dimension_numbers<[1], [0], [0], [1], [0, 0, 1, 1], [], []>} : vector<8x64xbf16>, vector<64x1568xbf16>, vector<8x1568xf32> -> vector<8x1568xf32>
    %c0_28 = arith.constant 0 : index
    %c0_29 = arith.constant 0 : index
    %97 = vector.load %arg10[%c0_28, %c0_29] : memref<1x1568xf32, #tpu.memory_space<vmem>>, vector<1x1568xf32>
    %98 = vector.broadcast %97 : vector<1x1568xf32> to vector<8x1568xf32>
    %99 = arith.addf %96, %98 : vector<8x1568xf32>
    %cst_30 = arith.constant 0.000000e+00 : f32
    %100 = vector.broadcast %cst_30 : f32 to vector<8x1568xf32>
    %101 = arith.maximumf %99, %100 : vector<8x1568xf32>
    %102 = arith.truncf %101 : vector<8x1568xf32> to vector<8x1568xbf16>
    %103 = vector.extract_strided_slice %102 {offsets = [0, 0], sizes = [8, 32], strides = [1, 1]} : vector<8x1568xbf16> to vector<8x32xbf16>
    %104 = vector.extract_strided_slice %102 {offsets = [0, 32], sizes = [8, 32], strides = [1, 1]} : vector<8x1568xbf16> to vector<8x32xbf16>
    %105 = vector.extract_strided_slice %102 {offsets = [0, 64], sizes = [8, 32], strides = [1, 1]} : vector<8x1568xbf16> to vector<8x32xbf16>
    %106 = vector.extract_strided_slice %102 {offsets = [0, 96], sizes = [8, 32], strides = [1, 1]} : vector<8x1568xbf16> to vector<8x32xbf16>
    %107 = vector.extract_strided_slice %102 {offsets = [0, 128], sizes = [8, 32], strides = [1, 1]} : vector<8x1568xbf16> to vector<8x32xbf16>
    %108 = vector.extract_strided_slice %102 {offsets = [0, 160], sizes = [8, 32], strides = [1, 1]} : vector<8x1568xbf16> to vector<8x32xbf16>
    %109 = vector.extract_strided_slice %102 {offsets = [0, 192], sizes = [8, 32], strides = [1, 1]} : vector<8x1568xbf16> to vector<8x32xbf16>
    %110 = vector.extract_strided_slice %102 {offsets = [0, 224], sizes = [8, 32], strides = [1, 1]} : vector<8x1568xbf16> to vector<8x32xbf16>
    %111 = vector.extract_strided_slice %102 {offsets = [0, 256], sizes = [8, 32], strides = [1, 1]} : vector<8x1568xbf16> to vector<8x32xbf16>
    %112 = vector.extract_strided_slice %102 {offsets = [0, 288], sizes = [8, 32], strides = [1, 1]} : vector<8x1568xbf16> to vector<8x32xbf16>
    %113 = vector.extract_strided_slice %102 {offsets = [0, 320], sizes = [8, 32], strides = [1, 1]} : vector<8x1568xbf16> to vector<8x32xbf16>
    %114 = vector.extract_strided_slice %102 {offsets = [0, 352], sizes = [8, 32], strides = [1, 1]} : vector<8x1568xbf16> to vector<8x32xbf16>
    %115 = vector.extract_strided_slice %102 {offsets = [0, 384], sizes = [8, 32], strides = [1, 1]} : vector<8x1568xbf16> to vector<8x32xbf16>
    %116 = vector.extract_strided_slice %102 {offsets = [0, 416], sizes = [8, 32], strides = [1, 1]} : vector<8x1568xbf16> to vector<8x32xbf16>
    %117 = vector.extract_strided_slice %102 {offsets = [0, 448], sizes = [8, 32], strides = [1, 1]} : vector<8x1568xbf16> to vector<8x32xbf16>
    %118 = vector.extract_strided_slice %102 {offsets = [0, 480], sizes = [8, 32], strides = [1, 1]} : vector<8x1568xbf16> to vector<8x32xbf16>
    %119 = vector.extract_strided_slice %102 {offsets = [0, 512], sizes = [8, 32], strides = [1, 1]} : vector<8x1568xbf16> to vector<8x32xbf16>
    %120 = vector.extract_strided_slice %102 {offsets = [0, 544], sizes = [8, 32], strides = [1, 1]} : vector<8x1568xbf16> to vector<8x32xbf16>
    %121 = vector.extract_strided_slice %102 {offsets = [0, 576], sizes = [8, 32], strides = [1, 1]} : vector<8x1568xbf16> to vector<8x32xbf16>
    %122 = vector.extract_strided_slice %102 {offsets = [0, 608], sizes = [8, 32], strides = [1, 1]} : vector<8x1568xbf16> to vector<8x32xbf16>
    %123 = vector.extract_strided_slice %102 {offsets = [0, 640], sizes = [8, 32], strides = [1, 1]} : vector<8x1568xbf16> to vector<8x32xbf16>
    %124 = vector.extract_strided_slice %102 {offsets = [0, 672], sizes = [8, 32], strides = [1, 1]} : vector<8x1568xbf16> to vector<8x32xbf16>
    %125 = vector.extract_strided_slice %102 {offsets = [0, 704], sizes = [8, 32], strides = [1, 1]} : vector<8x1568xbf16> to vector<8x32xbf16>
    %126 = vector.extract_strided_slice %102 {offsets = [0, 736], sizes = [8, 32], strides = [1, 1]} : vector<8x1568xbf16> to vector<8x32xbf16>
    %127 = vector.extract_strided_slice %102 {offsets = [0, 768], sizes = [8, 32], strides = [1, 1]} : vector<8x1568xbf16> to vector<8x32xbf16>
    %128 = vector.extract_strided_slice %102 {offsets = [0, 800], sizes = [8, 32], strides = [1, 1]} : vector<8x1568xbf16> to vector<8x32xbf16>
    %129 = vector.extract_strided_slice %102 {offsets = [0, 832], sizes = [8, 32], strides = [1, 1]} : vector<8x1568xbf16> to vector<8x32xbf16>
    %130 = vector.extract_strided_slice %102 {offsets = [0, 864], sizes = [8, 32], strides = [1, 1]} : vector<8x1568xbf16> to vector<8x32xbf16>
    %131 = vector.extract_strided_slice %102 {offsets = [0, 896], sizes = [8, 32], strides = [1, 1]} : vector<8x1568xbf16> to vector<8x32xbf16>
    %132 = vector.extract_strided_slice %102 {offsets = [0, 928], sizes = [8, 32], strides = [1, 1]} : vector<8x1568xbf16> to vector<8x32xbf16>
    %133 = vector.extract_strided_slice %102 {offsets = [0, 960], sizes = [8, 32], strides = [1, 1]} : vector<8x1568xbf16> to vector<8x32xbf16>
    %134 = vector.extract_strided_slice %102 {offsets = [0, 992], sizes = [8, 32], strides = [1, 1]} : vector<8x1568xbf16> to vector<8x32xbf16>
    %135 = vector.extract_strided_slice %102 {offsets = [0, 1024], sizes = [8, 32], strides = [1, 1]} : vector<8x1568xbf16> to vector<8x32xbf16>
    %136 = vector.extract_strided_slice %102 {offsets = [0, 1056], sizes = [8, 32], strides = [1, 1]} : vector<8x1568xbf16> to vector<8x32xbf16>
    %137 = vector.extract_strided_slice %102 {offsets = [0, 1088], sizes = [8, 32], strides = [1, 1]} : vector<8x1568xbf16> to vector<8x32xbf16>
    %138 = vector.extract_strided_slice %102 {offsets = [0, 1120], sizes = [8, 32], strides = [1, 1]} : vector<8x1568xbf16> to vector<8x32xbf16>
    %139 = vector.extract_strided_slice %102 {offsets = [0, 1152], sizes = [8, 32], strides = [1, 1]} : vector<8x1568xbf16> to vector<8x32xbf16>
    %140 = vector.extract_strided_slice %102 {offsets = [0, 1184], sizes = [8, 32], strides = [1, 1]} : vector<8x1568xbf16> to vector<8x32xbf16>
    %141 = vector.extract_strided_slice %102 {offsets = [0, 1216], sizes = [8, 32], strides = [1, 1]} : vector<8x1568xbf16> to vector<8x32xbf16>
    %142 = vector.extract_strided_slice %102 {offsets = [0, 1248], sizes = [8, 32], strides = [1, 1]} : vector<8x1568xbf16> to vector<8x32xbf16>
    %143 = vector.extract_strided_slice %102 {offsets = [0, 1280], sizes = [8, 32], strides = [1, 1]} : vector<8x1568xbf16> to vector<8x32xbf16>
    %144 = vector.extract_strided_slice %102 {offsets = [0, 1312], sizes = [8, 32], strides = [1, 1]} : vector<8x1568xbf16> to vector<8x32xbf16>
    %145 = vector.extract_strided_slice %102 {offsets = [0, 1344], sizes = [8, 32], strides = [1, 1]} : vector<8x1568xbf16> to vector<8x32xbf16>
    %146 = vector.extract_strided_slice %102 {offsets = [0, 1376], sizes = [8, 32], strides = [1, 1]} : vector<8x1568xbf16> to vector<8x32xbf16>
    %147 = vector.extract_strided_slice %102 {offsets = [0, 1408], sizes = [8, 32], strides = [1, 1]} : vector<8x1568xbf16> to vector<8x32xbf16>
    %148 = vector.extract_strided_slice %102 {offsets = [0, 1440], sizes = [8, 32], strides = [1, 1]} : vector<8x1568xbf16> to vector<8x32xbf16>
    %149 = vector.extract_strided_slice %102 {offsets = [0, 1472], sizes = [8, 32], strides = [1, 1]} : vector<8x1568xbf16> to vector<8x32xbf16>
    %150 = vector.extract_strided_slice %102 {offsets = [0, 1504], sizes = [8, 32], strides = [1, 1]} : vector<8x1568xbf16> to vector<8x32xbf16>
    %151 = vector.extract_strided_slice %102 {offsets = [0, 1536], sizes = [8, 32], strides = [1, 1]} : vector<8x1568xbf16> to vector<8x32xbf16>
    %152 = tpu.concatenate %103, %104, %105, %106, %107, %108, %109, %110, %111, %112, %113, %114, %115, %116, %117, %118 in 0 : vector<8x32xbf16>, vector<8x32xbf16>, vector<8x32xbf16>, vector<8x32xbf16>, vector<8x32xbf16>, vector<8x32xbf16>, vector<8x32xbf16>, vector<8x32xbf16>, vector<8x32xbf16>, vector<8x32xbf16>, vector<8x32xbf16>, vector<8x32xbf16>, vector<8x32xbf16>, vector<8x32xbf16>, vector<8x32xbf16>, vector<8x32xbf16> -> vector<128x32xbf16>
    %153 = tpu.concatenate %119, %120, %121, %122, %123, %124, %125, %126, %127, %128, %129, %130, %131, %132, %133, %134 in 0 : vector<8x32xbf16>, vector<8x32xbf16>, vector<8x32xbf16>, vector<8x32xbf16>, vector<8x32xbf16>, vector<8x32xbf16>, vector<8x32xbf16>, vector<8x32xbf16>, vector<8x32xbf16>, vector<8x32xbf16>, vector<8x32xbf16>, vector<8x32xbf16>, vector<8x32xbf16>, vector<8x32xbf16>, vector<8x32xbf16>, vector<8x32xbf16> -> vector<128x32xbf16>
    %154 = tpu.concatenate %135, %136, %137, %138, %139, %140, %141, %142, %143, %144, %145, %146, %147, %148, %149, %150 in 0 : vector<8x32xbf16>, vector<8x32xbf16>, vector<8x32xbf16>, vector<8x32xbf16>, vector<8x32xbf16>, vector<8x32xbf16>, vector<8x32xbf16>, vector<8x32xbf16>, vector<8x32xbf16>, vector<8x32xbf16>, vector<8x32xbf16>, vector<8x32xbf16>, vector<8x32xbf16>, vector<8x32xbf16>, vector<8x32xbf16>, vector<8x32xbf16> -> vector<128x32xbf16>
    %155 = tpu.concatenate %152, %153, %154, %151 in 0 : vector<128x32xbf16>, vector<128x32xbf16>, vector<128x32xbf16>, vector<8x32xbf16> -> vector<392x32xbf16>
    %156 = vector.extract_strided_slice %155 {offsets = [8, 0], sizes = [384, 32], strides = [1, 1]} : vector<392x32xbf16> to vector<384x32xbf16>
    %cst_31 = arith.constant 0.000000e+00 : bf16
    %157 = vector.broadcast %cst_31 : bf16 to vector<8x32xbf16>
    %158 = tpu.concatenate %156, %157 in 0 : vector<384x32xbf16>, vector<8x32xbf16> -> vector<392x32xbf16>
    %159 = vector.broadcast %1 : vector<392x1xbf16> to vector<392x32xbf16>
    %160 = arith.mulf %158, %159 : vector<392x32xbf16>
    %161 = vector.extract_strided_slice %155 {offsets = [56, 0], sizes = [336, 32], strides = [1, 1]} : vector<392x32xbf16> to vector<336x32xbf16>
    %cst_32 = arith.constant 0.000000e+00 : bf16
    %162 = vector.broadcast %cst_32 : bf16 to vector<56x32xbf16>
    %163 = tpu.concatenate %161, %162 in 0 : vector<336x32xbf16>, vector<56x32xbf16> -> vector<392x32xbf16>
    %164 = vector.extract_strided_slice %155 {offsets = [64, 0], sizes = [328, 32], strides = [1, 1]} : vector<392x32xbf16> to vector<328x32xbf16>
    %cst_33 = arith.constant 0.000000e+00 : bf16
    %165 = vector.broadcast %cst_33 : bf16 to vector<64x32xbf16>
    %166 = tpu.concatenate %164, %165 in 0 : vector<328x32xbf16>, vector<64x32xbf16> -> vector<392x32xbf16>
    %167 = vector.broadcast %1 : vector<392x1xbf16> to vector<392x32xbf16>
    %168 = arith.mulf %166, %167 : vector<392x32xbf16>
    %169 = tpu.concatenate %155, %160, %163, %168 in 1 : vector<392x32xbf16>, vector<392x32xbf16>, vector<392x32xbf16>, vector<392x32xbf16> -> vector<392x128xbf16>
    %c0_34 = arith.constant 0 : index
    %c0_35 = arith.constant 0 : index
    %170 = vector.load %arg11[%c0_34, %c0_35] : memref<128x64xbf16, #tpu.memory_space<vmem>>, vector<128x64xbf16>
    %cst_36 = arith.constant dense<0.000000e+00> : vector<392x64xf32>
    %171 = tpu.matmul %169, %170, %cst_36 {dimension_numbers = #tpu.dot_dimension_numbers<[1], [0], [0], [1], [0, 0, 1, 1], [], []>} : vector<392x128xbf16>, vector<128x64xbf16>, vector<392x64xf32> -> vector<392x64xf32>
    %c0_37 = arith.constant 0 : index
    %c0_38 = arith.constant 0 : index
    %172 = vector.load %arg12[%c0_37, %c0_38] : memref<1x64xf32, #tpu.memory_space<vmem>>, vector<1x64xf32>
    %173 = vector.broadcast %172 : vector<1x64xf32> to vector<392x64xf32>
    %174 = arith.addf %171, %173 : vector<392x64xf32>
    %cst_39 = arith.constant 0.000000e+00 : f32
    %175 = vector.broadcast %cst_39 : f32 to vector<392x64xf32>
    %176 = arith.maximumf %174, %175 : vector<392x64xf32>
    %177 = arith.truncf %176 : vector<392x64xf32> to vector<392x64xbf16>
    %178 = vector.extract_strided_slice %177 {offsets = [8, 0], sizes = [384, 64], strides = [1, 1]} : vector<392x64xbf16> to vector<384x64xbf16>
    %cst_40 = arith.constant 0.000000e+00 : bf16
    %179 = vector.broadcast %cst_40 : bf16 to vector<8x64xbf16>
    %180 = tpu.concatenate %178, %179 in 0 : vector<384x64xbf16>, vector<8x64xbf16> -> vector<392x64xbf16>
    %181 = vector.broadcast %1 : vector<392x1xbf16> to vector<392x64xbf16>
    %182 = arith.mulf %180, %181 : vector<392x64xbf16>
    %183 = vector.extract_strided_slice %177 {offsets = [56, 0], sizes = [336, 64], strides = [1, 1]} : vector<392x64xbf16> to vector<336x64xbf16>
    %cst_41 = arith.constant 0.000000e+00 : bf16
    %184 = vector.broadcast %cst_41 : bf16 to vector<56x64xbf16>
    %185 = tpu.concatenate %183, %184 in 0 : vector<336x64xbf16>, vector<56x64xbf16> -> vector<392x64xbf16>
    %186 = vector.extract_strided_slice %177 {offsets = [64, 0], sizes = [328, 64], strides = [1, 1]} : vector<392x64xbf16> to vector<328x64xbf16>
    %cst_42 = arith.constant 0.000000e+00 : bf16
    %187 = vector.broadcast %cst_42 : bf16 to vector<64x64xbf16>
    %188 = tpu.concatenate %186, %187 in 0 : vector<328x64xbf16>, vector<64x64xbf16> -> vector<392x64xbf16>
    %189 = vector.broadcast %1 : vector<392x1xbf16> to vector<392x64xbf16>
    %190 = arith.mulf %188, %189 : vector<392x64xbf16>
    %191 = tpu.concatenate %177, %182, %185, %190 in 1 : vector<392x64xbf16>, vector<392x64xbf16>, vector<392x64xbf16>, vector<392x64xbf16> -> vector<392x256xbf16>
    %c0_43 = arith.constant 0 : index
    %c0_44 = arith.constant 0 : index
    %192 = vector.load %arg13[%c0_43, %c0_44] : memref<256x16xbf16, #tpu.memory_space<vmem>>, vector<256x16xbf16>
    %cst_45 = arith.constant dense<0.000000e+00> : vector<392x16xf32>
    %193 = tpu.matmul %191, %192, %cst_45 {dimension_numbers = #tpu.dot_dimension_numbers<[1], [0], [0], [1], [0, 0, 1, 1], [], []>} : vector<392x256xbf16>, vector<256x16xbf16>, vector<392x16xf32> -> vector<392x16xf32>
    %c0_46 = arith.constant 0 : index
    %c0_47 = arith.constant 0 : index
    %194 = vector.load %arg14[%c0_46, %c0_47] : memref<1x16xf32, #tpu.memory_space<vmem>>, vector<1x16xf32>
    %195 = vector.broadcast %194 : vector<1x16xf32> to vector<392x16xf32>
    %196 = arith.addf %193, %195 : vector<392x16xf32>
    %cst_48 = arith.constant 5.000000e-01 : f32
    %197 = vector.broadcast %cst_48 : f32 to vector<392x16xf32>
    %198 = arith.mulf %197, %196 : vector<392x16xf32>
    %199 = math.tanh %198 : vector<392x16xf32>
    %cst_49 = arith.constant 5.000000e-01 : f32
    %200 = vector.broadcast %cst_49 : f32 to vector<392x16xf32>
    %201 = arith.mulf %200, %199 : vector<392x16xf32>
    %cst_50 = arith.constant 5.000000e-01 : f32
    %202 = vector.broadcast %cst_50 : f32 to vector<392x16xf32>
    %203 = arith.addf %201, %202 : vector<392x16xf32>
    %204 = vector.shape_cast %203 : vector<392x16xf32> to vector<49x8x16xf32>
    %c0_51 = arith.constant 0 : index
    %c0_52 = arith.constant 0 : index
    %c0_53 = arith.constant 0 : index
    %c0_54 = arith.constant 0 : index
    %205 = vector.load %arg15[%c0_51, %c0_52, %c0_53, %c0_54] : memref<1x49x8x16xf32, #tpu.memory_space<vmem>>, vector<1x49x8x16xf32>
    %206 = vector.shape_cast %205 : vector<1x49x8x16xf32> to vector<49x8x16xf32>
    %207 = vector.shape_cast %204 : vector<49x8x16xf32> to vector<1x49x8x16xf32>
    tpu.vector_store %arg15[%c0_51, %c0_52, %c0_53, %c0_54], %207 {strides = array<i32>} : memref<1x49x8x16xf32, #tpu.memory_space<vmem>>, vector<1x49x8x16xf32>,
    return
  }
  func.func @transform_0(%arg0: i32) -> (i32, i32, i32) {
    %c0_i32 = arith.constant 0 : i32
    %c0_i32_0 = arith.constant 0 : i32
    %c0_i32_1 = arith.constant 0 : i32
    return %arg0, %c0_i32, %c0_i32_0 : i32, i32, i32
  }
  func.func @transform_1(%arg0: i32) -> (i32, i32) {
    %c0_i32 = arith.constant 0 : i32
    %c0_i32_0 = arith.constant 0 : i32
    %c0_i32_1 = arith.constant 0 : i32
    return %c0_i32, %c0_i32_0 : i32, i32
  }
  func.func @transform_2(%arg0: i32) -> (i32, i32) {
    %c0_i32 = arith.constant 0 : i32
    %c0_i32_0 = arith.constant 0 : i32
    %c0_i32_1 = arith.constant 0 : i32
    return %c0_i32, %c0_i32_0 : i32, i32
  }
  func.func @transform_3(%arg0: i32) -> (i32, i32) {
    %c0_i32 = arith.constant 0 : i32
    %c0_i32_0 = arith.constant 0 : i32
    %c0_i32_1 = arith.constant 0 : i32
    return %c0_i32, %c0_i32_0 : i32, i32
  }
  func.func @transform_4(%arg0: i32) -> (i32, i32) {
    %c0_i32 = arith.constant 0 : i32
    %c0_i32_0 = arith.constant 0 : i32
    %c0_i32_1 = arith.constant 0 : i32
    return %c0_i32, %c0_i32_0 : i32, i32
  }
  func.func @transform_5(%arg0: i32) -> (i32, i32) {
    %c0_i32 = arith.constant 0 : i32
    %c0_i32_0 = arith.constant 0 : i32
    %c0_i32_1 = arith.constant 0 : i32
    return %c0_i32, %c0_i32_0 : i32, i32
  }
  func.func @transform_6(%arg0: i32) -> (i32, i32) {
    %c0_i32 = arith.constant 0 : i32
    %c0_i32_0 = arith.constant 0 : i32
    %c0_i32_1 = arith.constant 0 : i32
    return %c0_i32, %c0_i32_0 : i32, i32
  }
  func.func @transform_7(%arg0: i32) -> (i32, i32) {
    %c0_i32 = arith.constant 0 : i32
    %c0_i32_0 = arith.constant 0 : i32
    %c0_i32_1 = arith.constant 0 : i32
    return %c0_i32, %c0_i32_0 : i32, i32
  }
  func.func @transform_8(%arg0: i32) -> (i32, i32) {
    %c0_i32 = arith.constant 0 : i32
    %c0_i32_0 = arith.constant 0 : i32
    %c0_i32_1 = arith.constant 0 : i32
    return %c0_i32, %c0_i32_0 : i32, i32
  }
  func.func @transform_9(%arg0: i32) -> (i32, i32) {
    %c0_i32 = arith.constant 0 : i32
    %c0_i32_0 = arith.constant 0 : i32
    %c0_i32_1 = arith.constant 0 : i32
    return %c0_i32, %c0_i32_0 : i32, i32
  }
  func.func @transform_10(%arg0: i32) -> (i32, i32) {
    %c0_i32 = arith.constant 0 : i32
    %c0_i32_0 = arith.constant 0 : i32
    %c0_i32_1 = arith.constant 0 : i32
    return %c0_i32, %c0_i32_0 : i32, i32
  }
  func.func @transform_11(%arg0: i32) -> (i32, i32) {
    %c0_i32 = arith.constant 0 : i32
    %c0_i32_0 = arith.constant 0 : i32
    %c0_i32_1 = arith.constant 0 : i32
    return %c0_i32, %c0_i32_0 : i32, i32
  }
  func.func @transform_12(%arg0: i32) -> (i32, i32) {
    %c0_i32 = arith.constant 0 : i32
    %c0_i32_0 = arith.constant 0 : i32
    %c0_i32_1 = arith.constant 0 : i32
    return %c0_i32, %c0_i32_0 : i32, i32
  }
  func.func @transform_13(%arg0: i32) -> (i32, i32) {
    %c0_i32 = arith.constant 0 : i32
    %c0_i32_0 = arith.constant 0 : i32
    %c0_i32_1 = arith.constant 0 : i32
    return %c0_i32, %c0_i32_0 : i32, i32
  }
  func.func @transform_14(%arg0: i32) -> (i32, i32, i32, i32) {
    %c0_i32 = arith.constant 0 : i32
    %c0_i32_0 = arith.constant 0 : i32
    %c0_i32_1 = arith.constant 0 : i32
    %c0_i32_2 = arith.constant 0 : i32
    return %arg0, %c0_i32, %c0_i32_0, %c0_i32_1 : i32, i32, i32, i32
  }
}

</mosaic_0001>

<bundles_post_ra>
// kernel: conv_autoencoder_forward.1
= control target key start
LH: loop header
LB: loop body
LE: loop exit
PB: predicated region body
PF: predicated region fallthrough
CT: control target
= control target key end

     0   :  { %v11826_v0 = vmov 0   ;;  %v11828_v2 = vmov 0.0   ;;  %vm372_vm0 = vcmask 1041408   ;;  %vm8392_vm1 = vmmov 0   ;;  %s8394_s25 = smov 64   ;;  %s8395_s24 = smov 32   ;;  %s11811_s1 = inlined_call_operand.vmem [shape: bf16[392,2], index: 1, kind: input, shape index: {}]   ;;  %s11812_s2 = inlined_call_operand.vmem [shape: bf16[36,64], index: 2, kind: input, shape index: {}]   ;;  %s11813_s0 = inlined_call_operand.vmem [shape: bf16[1,392,36], index: 0, kind: input, shape index: {}]   ;;  %s11814_s4 = inlined_call_operand.vmem [shape: bf16[256,32], index: 4, kind: input, shape index: {}]   ;;  %s11815_s3 = inlined_call_operand.vmem [shape: f32[1,64], index: 3, kind: input, shape index: {}]   ;;  %s11816_s5 = inlined_call_operand.vmem [shape: f32[1,32], index: 5, kind: input, shape index: {}]   ;;  %s11817_s6 = inlined_call_operand.vmem [shape: bf16[1568,64], index: 6, kind: input, shape index: {}]   ;;  %s11818_s7 = inlined_call_operand.vmem [shape: f32[1,64], index: 7, kind: input, shape index: {}]   ;;  %s11819_s8 = inlined_call_operand.vmem [shape: bf16[64,1568], index: 8, kind: input, shape index: {}]   ;;  %s11820_s9 = inlined_call_operand.vmem [shape: f32[1,1568], index: 9, kind: input, shape index: {}]   ;;  %s11821_s10 = inlined_call_operand.vmem [shape: bf16[128,64], index: 10, kind: input, shape index: {}]   ;;  %s11822_s11 = inlined_call_operand.vmem [shape: f32[1,64], index: 11, kind: input, shape index: {}]   ;;  %s11823_s12 = inlined_call_operand.vmem [shape: bf16[256,16], index: 12, kind: input, shape index: {}]   ;;  %s11824_s13 = inlined_call_operand.vmem [shape: f32[1,16], index: 13, kind: input, shape index: {}]   ;;  %s11825_s14 = inlined_call_operand.vmem [shape: f32[1,49,8,16], index: 14, kind: output, shape index: {}]  }
   0x1   :  { %7994 = vset.pattern.permute.xlu0 %v11826_v0  ;;  %v48_v1 = vld [vmem:[%s11811_s1] sm:$0xf]  ;;  %7744 = vmatprep.subr.bf16.mxu0 %v11828_v2  ;;  %v49_v4 = vld [vmem:[%s11811_s1 + $0x4] sm:$0xf]  ;;  %v50_v5 = vld [vmem:[%s11811_s1 + $0x8] sm:$0xf]  ;;  %v791_v42 = vlaneseq }
   0x2   :  { %785 = vperm.xlu0 %7994, %v48_v1   ;;  %v7998_v3 = vld [vmem:[%s11812_s2] sm:$0xff]   ;;  %7995 = vset.pattern.permute.xlu1 %v11826_v0  ;;  %v7999_v6 = vld [vmem:[%s11812_s2 + $0x8] sm:$0xff]   ;;  %v8000_v7 = vld [vmem:[%s11812_s2 + $0x10] ss:$0 sps:$4 sm:$0x33]   ;;  %vm296_vm2 = vcmask 293888  }
   0x3   :  { %7750 = vmatprep.mubr.msk.bf16.mxu0 %vm8392_vm1, %v11828_v2  ;;  %2051 = vmatprep.subr.bf16.mxu1 %v11826_v0  ;;  %v51_v8 = vld [vmem:[%s11811_s1 + $0xc] sm:$0xf]  ;;  %v52_v9 = vld [vmem:[%s11811_s1 + $0x10] sm:$0xf]  ;;  %v374_v10 = vsel %vm372_vm0, %v8000_v7, 0  ;;  %v8001_v12 = vld [vmem:[%s11813_s0] sm:$0xff]  }
   0x4   :  { %7745 = vmatpush3.bf16.msra.mxu0 %v7998_v3  ;;  %809 = vperm.xlu1 %7995, %v50_v5   ;;  %v53_v11 = vld [vmem:[%s11811_s1 + $0x14] sm:$0xf]  ;;  %v55_v13 = vld [vmem:[%s11811_s1 + $0x1c] sm:$0xf]  ;;  %v54_v14 = vld [vmem:[%s11811_s1 + $0x18] sm:$0xf] }
   0x5   :  { %7746 = vmatprep.subr.bf16.mxu0 %v11828_v2  ;;  %v56_v15 = vld [vmem:[%s11811_s1 + $0x20] sm:$0xf]  ;;  %v57_v16 = vld [vmem:[%s11811_s1 + $0x24] sm:$0xf]  ;;  %v8002_v17 = vld [vmem:[%s11813_s0 + $0x8] sm:$0xff]   ;;  %v8638_v45 = vshrl.u32 %v791_v42, 7 }
   0x6   :  { %797 = vperm.xlu0 %7994, %v49_v4   ;;  %v58_v18 = vld [vmem:[%s11811_s1 + $0x28] sm:$0xf]  ;;  %v59_v19 = vld [vmem:[%s11811_s1 + $0x2c] sm:$0xf]  ;;  %v61_v20 = vld [vmem:[%s11811_s1 + $0x34] sm:$0xf] }
   0x7   :  { %v60_v21 = vld [vmem:[%s11811_s1 + $0x30] sm:$0xf]  ;;  %v63_v23 = vld [vmem:[%s11811_s1 + $0x3c] sm:$0xf]  ;;  %v62_v24 = vld [vmem:[%s11811_s1 + $0x38] sm:$0xf] }
   0x8   :  { %7747 = vmatpush3.bf16.msra.mxu0 %v7999_v6  ;;  %821 = vperm.xlu1 %7995, %v51_v8   ;;  %v8003_v22 = vld [vmem:[%s11813_s0 + $0x10] sm:$0xff]   ;;  %v64_v25 = vld [vmem:[%s11811_s1 + $0x40] sm:$0xf]  ;;  %v65_v26 = vld [vmem:[%s11811_s1 + $0x44] sm:$0xf]  ;;  %vm706_vm3 = vcmask 1043456  }
   0x9   :  { %7748 = vmatprep.subr.bf16.mxu0 %v11828_v2  ;;  %v8004_v27 = vld [vmem:[%s11813_s0 + $0x18] sm:$0xff]   ;;  %v66_v28 = vld [vmem:[%s11811_s1 + $0x48] sm:$0xf]  ;;  %v67_v29 = vld [vmem:[%s11811_s1 + $0x4c] sm:$0xf]  ;;  %vm1719_vm4 = vcmask 523264  }
   0xa   :  { %833 = vperm.xlu0 %7994, %v52_v9   ;;  %v8005_v30 = vld [vmem:[%s11813_s0 + $0x20] sm:$0xff]   ;;  %v8006_v31 = vld [vmem:[%s11813_s0 + $0x28] sm:$0xff]   ;;  %v8007_v32 = vld [vmem:[%s11813_s0 + $0x30] sm:$0xff]   ;;  %v8393_v40 = vmov 839922192   ;;  %s8396_s26 = smov 96  }
   0xb   :  { %v8008_v33 = vld [vmem:[%s11813_s0 + $0x38] sm:$0xff]   ;;  %v8009_v34 = vld [vmem:[%s11813_s0 + $0x40] sm:$0xff]   ;;  %v8010_v35 = vld [vmem:[%s11813_s0 + $0x48] sm:$0xff]   ;;  %v789_v41 = vunpack.c.l.s4 %v8393_v40  ;;  %vm2397_vm6 = vcmask 261120   ;;  %vm2403_vm7 = vcmask 785408   ;;  %vm7169_vm8 = vcmask 130048  }
   0xc   :  { %7749 = vmatpush3.bf16.msra.mxu0 %v374_v10  ;;  %845 = vperm.xlu1 %7995, %v53_v11   ;;  %v8011_v36 = vld [vmem:[%s11813_s0 + $0x50] sm:$0xff]   ;;  %v8012_v37 = vld [vmem:[%s11813_s0 + $0x58] sm:$0xff]   ;;  %v8013_v38 = vld [vmem:[%s11813_s0 + $0x60] sm:$0xff]  }
   0xd   :  { %v8014_v39 = vld [vmem:[%s11813_s0 + $0x68] sm:$0xff]   ;;  %v8015_v43 = vld [vmem:[%s11813_s0 + $0x70] sm:$0xff]   ;;  %v790_v44 = vunpack.c.0.s8 %v789_v41  ;;  %v8016_v49 = vld [vmem:[%s11813_s0 + $0x78] sm:$0xff]  }
   0xe   :  { %857 = vperm.xlu0 %7994, %v54_v14   ;;  %v8017_v58 = vld [vmem:[%s11813_s0 + $0x80] sm:$0xff]   ;;  %v69_v60 = vld [vmem:[%s11811_s1 + $0x54] sm:$0xf]  ;;  %v8018_v4 = vld [vmem:[%s11813_s0 + $0x88] sm:$0xff]  }
   0xf   :  { %7751 = vmatmul.mubr.msk.bf16.vlgmr.msra.gmra.mrb[0].mxu0 %vm296_vm2, %v8001_v12  ;;  %v8642_v46 = vsub.s32 %v790_v44, %v8638_v45  ;;  %v71_v6 = vld [vmem:[%s11811_s1 + $0x5c] sm:$0xf]  ;;  %v8019_v8 = vld [vmem:[%s11813_s0 + $0x90] sm:$0xff]   ;;  %v72_v9 = vld [vmem:[%s11811_s1 + $0x60] sm:$0xf] }
  0x10   :  { %7754 = vmatprep.mubr.msk.bf16.mxu0 %vm8392_vm1, %v11828_v2  ;;  %869 = vperm.xlu1 %7995, %v55_v13   ;;  %v8020_v10 = vld [vmem:[%s11813_s0 + $0x98] sm:$0xff]   ;;  %v8021_v11 = vld [vmem:[%s11814_s4] sm:$0xff]   ;;  %v8023_v12 = vld [vmem:[%s11814_s4 + $0x8] sm:$0xff]  }
  0x11   :  { %2052 = vmatpush1.bf16.msra.mxu1 %v8021_v11  ;;  %v8022_v13 = vld [vmem:[%s11813_s0 + $0xa0] sm:$0xff]   ;;  %v8024_v14 = vld [vmem:[%s11814_s4 + $0x10] sm:$0xff]   ;;  %vm8847_vm5 = vmneg %vm1719_vm4 }
  0x12   :  { %881 = vperm.xlu0 %7994, %v56_v15   ;;  %2053 = vmatprep.subr.bf16.mxu1 %v11826_v0  ;;  %v8026_v15 = vld [vmem:[%s11814_s4 + $0x18] sm:$0xff]  }
  0x14   :  { %893 = vperm.xlu1 %7995, %v57_v16   ;;  %v8025_v16 = vld [vmem:[%s11813_s0 + $0xa8] sm:$0xff]  }
  0x15   :  { %2054 = vmatpush1.bf16.msra.mxu1 %v8023_v12 }
  0x16   :  { %905 = vperm.xlu0 %7994, %v58_v18   ;;  %2055 = vmatprep.subr.bf16.mxu1 %v11826_v0  ;;  %v8029_v18 = vld [vmem:[%s11814_s4 + $0x28] sm:$0xff]  }
  0x17   :  { %7755 = vmatmul.mubr.msk.bf16.gmra.mrb[4].mxu0 %vm296_vm2, %v8002_v17  ;;  %v8027_v17 = vld [vmem:[%s11814_s4 + $0x20] sm:$0xff]  }
  0x18   :  { %7758 = vmatprep.mubr.msk.bf16.mxu0 %vm8392_vm1, %v11828_v2  ;;  %917 = vperm.xlu1 %7995, %v59_v19   ;;  %v8028_v19 = vld [vmem:[%s11813_s0 + $0xb0] sm:$0xff]  }
  0x19   :  { %2056 = vmatpush1.bf16.msra.mxu1 %v8024_v14 }
  0x1a   :  { %929 = vperm.xlu0 %7994, %v60_v21   ;;  %2057 = vmatprep.subr.bf16.mxu1 %v11826_v0  ;;  %v8032_v21 = vld [vmem:[%s11814_s4 + $0x38] sm:$0xff]  }
  0x1c   :  { %941 = vperm.xlu1 %7995, %v61_v20   ;;  %v8030_v20 = vld [vmem:[%s11814_s4 + $0x30] sm:$0xff]  }
  0x1d   :  { %2058 = vmatpush1.bf16.msra.mxu1 %v8026_v15  ;;  %v70_v15 = vld [vmem:[%s11811_s1 + $0x58] sm:$0xf] }
  0x1e   :  { %953 = vperm.xlu0 %7994, %v62_v24   ;;  %2059 = vmatprep.subr.bf16.mxu1 %v11826_v0  ;;  %v8034_v24 = vld [vmem:[%s11814_s4 + $0x48] sm:$0xff]  }
  0x1f   :  { %7759 = vmatmul.mubr.msk.bf16.gmra.mrb[8].mxu0 %vm296_vm2, %v8003_v22  ;;  %v8033_v22 = vld [vmem:[%s11814_s4 + $0x40] sm:$0xff]  }
  0x20   :  { %7762 = vmatprep.mubr.msk.bf16.mxu0 %vm8392_vm1, %v11828_v2  ;;  %965 = vperm.xlu1 %7995, %v63_v23   ;;  %v8031_v23 = vld [vmem:[%s11813_s0 + $0xb8] sm:$0xff]  }
  0x21   :  { %2060 = vmatpush1.bf16.msra.mxu1 %v8027_v17 }
  0x22   :  { %977 = vperm.xlu0 %7994, %v64_v25   ;;  %2061 = vmatprep.subr.bf16.mxu1 %v11826_v0  ;;  %v8035_v25 = vld [vmem:[%s11814_s4 + $0x50] sm:$0xff]  }
  0x24   :  { %989 = vperm.xlu1 %7995, %v65_v26   ;;  %v8036_v26 = vld [vmem:[%s11814_s4 + $0x58] sm:$0xff]  }
  0x25   :  { %2062 = vmatpush1.bf16.msra.mxu1 %v8029_v18 }
  0x26   :  { %1001 = vperm.xlu0 %7994, %v66_v28   ;;  %2063 = vmatprep.subr.bf16.mxu1 %v11826_v0 }
  0x27   :  { %7763 = vmatmul.mubr.msk.bf16.gmra.mrb[12].mxu0 %vm296_vm2, %v8004_v27  ;;  %v8037_v27 = vld [vmem:[%s11814_s4 + $0x60] sm:$0xff]  }
  0x28   :  { %7766 = vmatprep.mubr.msk.bf16.mxu0 %vm8392_vm1, %v11828_v2  ;;  %1013 = vperm.xlu1 %7995, %v67_v29   ;;  %v8038_v29 = vld [vmem:[%s11814_s4 + $0x68] sm:$0xff]  }
  0x29   :  { %2064 = vmatpush1.bf16.msra.mxu1 %v8030_v20 }
  0x2a   :  { %2065 = vmatprep.subr.bf16.mxu1 %v11826_v0 }
  0x2d   :  { %2066 = vmatpush1.bf16.msra.mxu1 %v8032_v21 }
  0x2e   :  { %2067 = vmatprep.subr.bf16.mxu1 %v11826_v0 }
  0x2f   :  { %7767 = vmatmul.mubr.msk.bf16.gmra.mrb[16].mxu0 %vm296_vm2, %v8005_v30  ;;  %v8039_v30 = vld [vmem:[%s11814_s4 + $0x70] sm:$0xff]  }
  0x30   :  { %7770 = vmatprep.mubr.msk.bf16.mxu0 %vm8392_vm1, %v11828_v2 }
  0x31   :  { %2068 = vmatpush1.bf16.msra.mxu1 %v8033_v22 }
  0x32   :  { %2069 = vmatprep.subr.bf16.mxu1 %v11826_v0 }
  0x35   :  { %2070 = vmatpush1.bf16.msra.mxu1 %v8034_v24 }
  0x36   :  { %2071 = vmatprep.subr.bf16.mxu1 %v11826_v0 }
  0x37   :  { %7771 = vmatmul.mubr.msk.bf16.gmra.mrb[20].mxu0 %vm296_vm2, %v8006_v31 }
  0x38   :  { %7774 = vmatprep.mubr.msk.bf16.mxu0 %vm8392_vm1, %v11828_v2 }
  0x39   :  { %2072 = vmatpush1.bf16.msra.mxu1 %v8035_v25 }
  0x3a   :  { %2073 = vmatprep.subr.bf16.mxu1 %v11826_v0 }
  0x3d   :  { %2074 = vmatpush1.bf16.msra.mxu1 %v8036_v26 }
  0x3e   :  { %2075 = vmatprep.subr.bf16.mxu1 %v11826_v0 }
  0x3f   :  { %7775 = vmatmul.mubr.msk.bf16.gmra.mrb[24].mxu0 %vm296_vm2, %v8007_v32  ;;  %v8040_v32 = vld [vmem:[%s11814_s4 + $0x78] sm:$0xff]  }
  0x40   :  { %7778 = vmatprep.mubr.msk.bf16.mxu0 %vm8392_vm1, %v11828_v2 }
  0x41   :  { %2076 = vmatpush1.bf16.msra.mxu1 %v8037_v27 }
  0x42   :  { %2077 = vmatprep.subr.bf16.mxu1 %v11826_v0 }
  0x45   :  { %2078 = vmatpush1.bf16.msra.mxu1 %v8038_v29 }
  0x46   :  { %2079 = vmatprep.subr.bf16.mxu1 %v11826_v0 }
  0x47   :  { %7779 = vmatmul.mubr.msk.bf16.gmra.mrb[28].mxu0 %vm296_vm2, %v8008_v33  ;;  %v8797_v33 = vld [vmem:[%s11815_s3] ss:$0 sm:$0xff] }
  0x48   :  { %7782 = vmatprep.mubr.msk.bf16.mxu0 %vm8392_vm1, %v11828_v2 }
  0x49   :  { %2080 = vmatpush1.bf16.msra.mxu1 %v8039_v30 }
  0x4a   :  { %2081 = vmatprep.subr.bf16.mxu1 %v11826_v0 }
  0x4d   :  { %2082 = vmatpush1.bf16.msra.mxu1 %v8040_v32 }
  0x4f   :  { %7783 = vmatmul.mubr.msk.bf16.gmra.mrb[32].mxu0 %vm296_vm2, %v8009_v34 }
  0x50   :  { %7786 = vmatprep.mubr.msk.bf16.mxu0 %vm8392_vm1, %v11828_v2 }
  0x57   :  { %7787 = vmatmul.mubr.msk.bf16.gmra.mrb[36].mxu0 %vm296_vm2, %v8010_v35 }
  0x58   :  { %7790 = vmatprep.mubr.msk.bf16.mxu0 %vm8392_vm1, %v11828_v2 }
  0x5f   :  { %7791 = vmatmul.mubr.msk.bf16.gmra.mrb[40].mxu0 %vm296_vm2, %v8011_v36 }
  0x60   :  { %7794 = vmatprep.mubr.msk.bf16.mxu0 %vm8392_vm1, %v11828_v2 }
  0x67   :  { %7795 = vmatmul.mubr.msk.bf16.gmra.mrb[44].mxu0 %vm296_vm2, %v8012_v37 }
  0x68   :  { %7798 = vmatprep.mubr.msk.bf16.mxu0 %vm8392_vm1, %v11828_v2 }
  0x6f   :  { %7799 = vmatmul.mubr.msk.bf16.gmra.mrb[48].mxu0 %vm296_vm2, %v8013_v38 }
  0x70   :  { %7802 = vmatprep.mubr.msk.bf16.mxu0 %vm8392_vm1, %v11828_v2 }
  0x77   :  { %7803 = vmatmul.mubr.msk.bf16.gmra.mrb[52].mxu0 %vm296_vm2, %v8014_v39 }
  0x78   :  { %7806 = vmatprep.mubr.msk.bf16.mxu0 %vm8392_vm1, %v11828_v2 }
  0x7f   :  { %7807 = vmatmul.mubr.msk.bf16.gmra.mrb[56].mxu0 %vm296_vm2, %v8015_v43 }
  0x80   :  { %7810 = vmatprep.mubr.msk.bf16.mxu0 %vm8392_vm1, %v11828_v2 }
  0x81   :  { %v786_v47 = vpop.permute.xlu0 %785 }
  0x82   :  { %v794_v50 = vrot.slane %v786_v47, %v8642_v46 }
  0x83   :  { %v810_v48 = vpop.permute.xlu1 %809 }
  0x84   :  { %v818_v55 = vrot.slane %v810_v48, %v8642_v46 }
  0x85   :  { %v798_v51 = vpop.permute.xlu0 %797 }
  0x86   :  { %v806_v52 = vrot.slane %v798_v51, %v8642_v46 }
  0x87   :  { %v822_v53 = vpop.permute.xlu1 %821  ;;  %7811 = vmatmul.mubr.msk.bf16.gmra.mrb[60].mxu0 %vm296_vm2, %v8016_v49 }
  0x88   :  { %v8652_v54 = vcombine.low %v794_v50, %v806_v52  ;;  %v830_v56 = vrot.slane %v822_v53, %v8642_v46  ;;  %7814 = vmatprep.mubr.msk.bf16.mxu0 %vm8392_vm1, %v11828_v2 }
  0x89   :  { %v834_v62 = vpop.permute.xlu0 %833 }
  0x8a   :  { %v1544_v57 = vmul.bf16 0, %v8652_v54  ;;  %v8663_v59 = vcombine.low %v818_v55, %v830_v56  ;;  %v842_v3 = vrot.slane %v834_v62, %v8642_v46  ;;  %v68_v62 = vld [vmem:[%s11811_s1 + $0x50] sm:$0xf] }
  0x8b   :  { %v846_v61 = vpop.permute.xlu1 %845 }
  0x8c   :  { %1669 = vrot.lane.b32.xlu1 %v1544_v57, %s8394_s25  ;;  %v1545_v63 = vmul.bf16 0, %v8663_v59  ;;  %v854_v1 = vrot.slane %v846_v61, %v8642_v46 }
  0x8e   :  { %v8678_v5 = vcombine.low %v842_v3, %v854_v1 }
  0x8f   :  { %7815 = vmatmul.mubr.msk.bf16.gmra.mrb[64].mxu0 %vm296_vm2, %v8017_v58  ;;  %v8778_v28 = vpop.permute.xlu1 %869 }
  0x90   :  { %1037 = vperm.xlu1 %7995, %v69_v60   ;;  %7818 = vmatprep.mubr.msk.bf16.mxu0 %vm8392_vm1, %v11828_v2  ;;  %v1546_v7 = vmul.bf16 0, %v8678_v5 }
  0x93   :  { %v8788_v31 = vpop.permute.xlu1 %893 }
  0x94   :  { %1671 = vrot.lane.b32.xlu1 %v1545_v63, %s8394_s25 }
  0x97   :  { %7819 = vmatmul.mubr.msk.bf16.gmra.mrb[68].mxu0 %vm296_vm2, %v8018_v4  ;;  %v8799_v34 = vpop.permute.xlu1 %917 }
  0x98   :  { %1061 = vperm.xlu1 %7995, %v71_v6   ;;  %7822 = vmatprep.mubr.msk.bf16.mxu0 %vm8392_vm1, %v11828_v2 }
  0x9b   :  { %v8803_v43 = vpop.permute.xlu1 %941 }
  0x9c   :  { %1673 = vrot.lane.b32.xlu1 %v1546_v7, %s8394_s25 }
  0x9f   :  { %7823 = vmatmul.mubr.msk.bf16.gmra.mrb[72].mxu0 %vm296_vm2, %v8019_v8  ;;  %v8813_v56 = vpop.permute.xlu1 %965 }
  0xa0   :  { %1073 = vperm.xlu1 %7995, %v72_v9   ;;  %7826 = vmatprep.mubr.msk.bf16.mxu0 %vm8392_vm1, %v11828_v2 }
  0xa3   :  { %v8825_v6 = vpop.permute.xlu1 %989 }
  0xa7   :  { %7827 = vmatmul.mubr.msk.bf16.gmra.mrb[76].mxu0 %vm296_vm2, %v8020_v10  ;;  %v8842_v18 = vpop.permute.xlu1 %1013 }
  0xa8   :  { %7830 = vmatprep.mubr.msk.bf16.mxu0 %vm8392_vm1, %v11828_v2 }
  0xaf   :  { %7831 = vmatmul.mubr.msk.bf16.gmra.mrb[80].mxu0 %vm296_vm2, %v8022_v13  ;;  %v858_v13 = vpop.permute.xlu0 %857 }
  0xb0   :  { %7834 = vmatprep.mubr.msk.bf16.mxu0 %vm8392_vm1, %v11828_v2  ;;  %v866_v17 = vrot.slane %v858_v13, %v8642_v46  ;;  %v75_v13 = vld [vmem:[%s11811_s1 + $0x6c] sm:$0xf] }
  0xb7   :  { %7835 = vmatmul.mubr.msk.bf16.gmra.mrb[84].mxu0 %vm296_vm2, %v8025_v16  ;;  %v878_v16 = vrot.slane %v8778_v28, %v8642_v46 }
  0xb8   :  { %7838 = vmatprep.mubr.msk.bf16.mxu0 %vm8392_vm1, %v11828_v2 }
  0xb9   :  { %v7280_v28 = vcombine.low %v866_v17, %v878_v16 }
  0xbf   :  { %7839 = vmatmul.mubr.msk.bf16.gmra.mrb[88].mxu0 %vm296_vm2, %v8028_v19 }
  0xc0   :  { %7842 = vmatprep.mubr.msk.bf16.mxu0 %vm8392_vm1, %v11828_v2 }
  0xc7   :  { %7843 = vmatmul.mubr.msk.bf16.gmra.mrb[92].mxu0 %vm296_vm2, %v8031_v23  ;;  %v11842_v23 = vmov 0 }
  0xc8   :  { %7846 = vmatprep.mubr.msk.bf16.mxu0 %vm8392_vm1, %v11828_v2  ;;  %v11843_v23 = vsel %vm8847_vm5, 4294967295, %v11842_v23 }
  0xc9   :  { %11844 = vst [vmem:[#allocation2_spill] sm:$0xff] %v11843_v23 }
  0xe2   :  { %v410_v35 = vpop.f32.mrb[0].mxu0 }
  0xe3   :  { %v411_v36 = vadd.f32 %v8797_v33, %v410_v35  ;;  %v7752_v37 = vpop.f32.mrb[1].mxu0  ;;  %v882_v35 = vpop.permute.xlu0 %881 }
  0xe4   :  { %v413_v38 = vpop.f32.mrb[2].mxu0  ;;  %v902_v37 = vrot.slane %v8788_v31, %v8642_v46  ;;  %v73_v31 = vld [vmem:[%s11811_s1 + $0x64] sm:$0xf] }
  0xe5   :  { %v414_v39 = vadd.f32 %v8797_v33, %v413_v38  ;;  %v7753_v40 = vpop.f32.mrb[3].mxu0  ;;  %v608_v41 = vmax.f32 %v411_v36, 0.0  ;;  %v890_v38 = vrot.slane %v882_v35, %v8642_v46 }
  0xe6   :  { %v1547_v40 = vmul.bf16 0, %v7280_v28 }
  0xe7   :  { %v609_v42 = vmax.f32 %v414_v39, 0.0 }
  0xe9   :  { %v8805_v44 = vpack.c.bf16 %v609_v42, %v608_v41 }
  0xea   :  { %v418_v47 = vpop.f32.mrb[4].mxu0 }
  0xeb   :  { %v419_v48 = vadd.f32 %v8797_v33, %v418_v47  ;;  %v7756_v49 = vpop.f32.mrb[5].mxu0  ;;  %v707_v50 = vrot.slane %v8805_v44, 4 }
  0xec   :  { %v421_v51 = vpop.f32.mrb[6].mxu0 }
  0xed   :  { %v422_v52 = vadd.f32 %v8797_v33, %v421_v51  ;;  %v7757_v53 = vpop.f32.mrb[7].mxu0  ;;  %v8811_v55 = vsel %vm706_vm3, 0, %v707_v50  ;;  %v610_v58 = vmax.f32 %v419_v48, 0.0 }
  0xee   :  { %v1519_v57 = vmul.bf16 %v8652_v54, %v8811_v55 }
  0xef   :  { %v611_v60 = vmax.f32 %v422_v52, 0.0  ;;  %v7281_v52 = vcombine.low %v890_v38, %v902_v37  ;;  %v77_v38 = vld [vmem:[%s11811_s1 + $0x74] sm:$0xf] }
  0xf0   :  { %1594 = vrot.lane.b32.xlu0 %v1519_v57, %s8394_s25 }
  0xf1   :  { %v8818_v61 = vpack.c.bf16 %v611_v60, %v610_v58  ;;  %v74_v60 = vld [vmem:[%s11811_s1 + $0x68] sm:$0xf] }
  0xf2   :  { %v426_v63 = vpop.f32.mrb[8].mxu0 }
  0xf3   :  { %v708_v1 = vrot.slane %v8818_v61, 4  ;;  %v427_v3 = vadd.f32 %v8797_v33, %v426_v63  ;;  %v7760_v4 = vpop.f32.mrb[9].mxu0  ;;  %v1548_v63 = vmul.bf16 %v7281_v52, %v8805_v44 }
  0xf4   :  { %1025 = vperm.xlu0 %7994, %v68_v62   ;;  %v429_v54 = vpop.f32.mrb[10].mxu0 }
  0xf5   :  { %v430_v7 = vadd.f32 %v8797_v33, %v429_v54  ;;  %v7761_v8 = vpop.f32.mrb[11].mxu0  ;;  %v8829_v9 = vsel %vm706_vm3, %v707_v50, %v708_v1  ;;  %v612_v11 = vmax.f32 %v427_v3, 0.0 }
  0xf6   :  { %v1520_v10 = vmul.bf16 %v8663_v59, %v8829_v9 }
  0xf7   :  { %v613_v12 = vmax.f32 %v430_v7, 0.0  ;;  %v926_v7 = vrot.slane %v8799_v34, %v8642_v46 }
  0xf8   :  { %1596 = vrot.lane.b32.xlu0 %v1520_v10, %s8394_s25 }
  0xf9   :  { %v8834_v14 = vpack.c.bf16 %v613_v12, %v612_v11 }
  0xfa   :  { %v434_v59 = vpop.f32.mrb[12].mxu0 }
  0xfb   :  { %v710_v19 = vrot.slane %v8834_v14, 4  ;;  %v435_v20 = vadd.f32 %v8797_v33, %v434_v59  ;;  %v7764_v21 = vpop.f32.mrb[13].mxu0 }
  0xfc   :  { %1049 = vperm.xlu0 %7994, %v70_v15   ;;  %v437_v22 = vpop.f32.mrb[14].mxu0 }
  0xfd   :  { %v614_v24 = vmax.f32 %v435_v20, 0.0  ;;  %v438_v25 = vadd.f32 %v8797_v33, %v437_v22  ;;  %v7765_v26 = vpop.f32.mrb[15].mxu0  ;;  %v8853_v27 = vsel %vm706_vm3, %v708_v1, %v710_v19  ;;  %v906_v1 = vpop.permute.xlu0 %905  ;;  %v76_v20 = vld [vmem:[%s11811_s1 + $0x70] sm:$0xf] }
  0xfe   :  { %v1521_v29 = vmul.bf16 %v8678_v5, %v8853_v27  ;;  %v1670_v30 = vpop.permute.xlu1 %1669  ;;  %v914_v8 = vrot.slane %v906_v1, %v8642_v46 }
  0xff   :  { %v615_v32 = vmax.f32 %v438_v25, 0.0  ;;  %7320 = vmatprep.mubr.msk.bf16.mxu1 %vm8847_vm5, %v1670_v30 }
 0x100   :  { %1598 = vrot.lane.b32.xlu0 %v1521_v29, %s8394_s25  ;;  %v7282_v59 = vcombine.low %v914_v8, %v926_v7  ;;  %v950_v29 = vrot.slane %v8803_v43, %v8642_v46 }
 0x101   :  { %v8860_v36 = vpack.c.bf16 %v615_v32, %v614_v24  ;;  %v930_v24 = vpop.permute.xlu0 %929 }
 0x102   :  { %v442_v39 = vpop.f32.mrb[16].mxu0  ;;  %v1549_v22 = vmul.bf16 %v7282_v59, %v8818_v61  ;;  %v938_v30 = vrot.slane %v930_v24, %v8642_v46 }
 0x103   :  { %v712_v41 = vrot.slane %v8860_v36, 4  ;;  %v443_v5 = vadd.f32 %v8797_v33, %v442_v39  ;;  %v7768_v42 = vpop.f32.mrb[17].mxu0 }
 0x104   :  { %1675 = vrot.lane.b32.xlu0 %v1547_v40, %s8394_s25  ;;  %v445_v47 = vpop.f32.mrb[18].mxu0 }
 0x105   :  { %v616_v48 = vmax.f32 %v443_v5, 0.0  ;;  %v446_v49 = vadd.f32 %v8797_v33, %v445_v47  ;;  %v7769_v50 = vpop.f32.mrb[19].mxu0  ;;  %v8873_v51 = vsel %vm706_vm3, %v710_v19, %v712_v41  ;;  %v7283_v5 = vcombine.low %v938_v30, %v950_v29  ;;  %v78_v47 = vld [vmem:[%s11811_s1 + $0x78] sm:$0xf] }
 0x106   :  { %v1522_v53 = vmul.bf16 %v7280_v28, %v8873_v51  ;;  %v954_v50 = vpop.permute.xlu0 %953 }
 0x107   :  { %v617_v57 = vmax.f32 %v446_v49, 0.0  ;;  %v1550_v49 = vmul.bf16 %v7283_v5, %v8834_v14 }
 0x108   :  { %1085 = vperm.xlu0 %7994, %v73_v31   ;;  %1600 = vrot.lane.b32.xlu1 %v1522_v53, %s8394_s25 }
 0x109   :  { %v8877_v58 = vpack.c.bf16 %v617_v57, %v616_v48  ;;  %v974_v57 = vrot.slane %v8813_v56, %v8642_v46 }
 0x10a   :  { %v450_v62 = vpop.f32.mrb[20].mxu0 }
 0x10b   :  { %v714_v3 = vrot.slane %v8877_v58, 4  ;;  %v451_v4 = vadd.f32 %v8797_v33, %v450_v62  ;;  %v7772_v54 = vpop.f32.mrb[21].mxu0 }
 0x10c   :  { %1677 = vrot.lane.b32.xlu0 %v1548_v63, %s8394_s25  ;;  %1097 = vperm.xlu1 %7995, %v74_v60   ;;  %v453_v10 = vpop.f32.mrb[22].mxu0  ;;  %v962_v60 = vrot.slane %v954_v50, %v8642_v46 }
 0x10d   :  { %v618_v11 = vmax.f32 %v451_v4, 0.0  ;;  %v454_v12 = vadd.f32 %v8797_v33, %v453_v10  ;;  %v8894_v15 = vsel %vm706_vm3, %v712_v41, %v714_v3  ;;  %v7773_v16 = vpop.f32.mrb[23].mxu0 }
 0x10e   :  { %v1523_v17 = vmul.bf16 %v7281_v52, %v8894_v15  ;;  %v7284_v8 = vcombine.low %v962_v60, %v974_v57  ;;  %v978_v16 = vpop.permute.xlu0 %977 }
 0x10f   :  { %v619_v34 = vmax.f32 %v454_v12, 0.0 }
 0x110   :  { %1109 = vperm.xlu0 %7994, %v75_v13   ;;  %1602 = vrot.lane.b32.xlu1 %v1523_v17, %s8394_s25  ;;  %v1551_v13 = vmul.bf16 %v7284_v8, %v8860_v36 }
 0x111   :  { %v8898_v19 = vpack.c.bf16 %v619_v34, %v618_v11  ;;  %v80_v11 = vld [vmem:[%s11811_s1 + $0x80] sm:$0xf] }
 0x112   :  { %v458_v21 = vpop.f32.mrb[24].mxu0 }
 0x113   :  { %v716_v25 = vrot.slane %v8898_v19, 4  ;;  %v459_v26 = vadd.f32 %v8797_v33, %v458_v21  ;;  %v7776_v28 = vpop.f32.mrb[25].mxu0  ;;  %v986_v21 = vrot.slane %v978_v16, %v8642_v46 }
 0x114   :  { %1679 = vrot.lane.b32.xlu0 %v1549_v22, %s8394_s25  ;;  %1121 = vperm.xlu1 %7995, %v76_v20   ;;  %v461_v32 = vpop.f32.mrb[26].mxu0  ;;  %v998_v20 = vrot.slane %v8825_v6, %v8642_v46 }
 0x115   :  { %v620_v35 = vmax.f32 %v459_v26, 0.0  ;;  %v462_v37 = vadd.f32 %v8797_v33, %v461_v32  ;;  %v8915_v39 = vsel %vm706_vm3, %v714_v3, %v716_v25  ;;  %v7777_v40 = vpop.f32.mrb[27].mxu0  ;;  %v79_v3 = vld [vmem:[%s11811_s1 + $0x7c] sm:$0xf]  ;;  %v81_v26 = vld [vmem:[%s11811_s1 + $0x84] sm:$0xf] }
 0x116   :  { %v1524_v41 = vmul.bf16 %v7282_v59, %v8915_v39  ;;  %v7285_v32 = vcombine.low %v986_v21, %v998_v20 }
 0x117   :  { %v621_v43 = vmax.f32 %v462_v37, 0.0 }
 0x118   :  { %1133 = vperm.xlu0 %7994, %v77_v38   ;;  %1604 = vrot.lane.b32.xlu1 %v1524_v41, %s8394_s25  ;;  %v82_v38 = vld [vmem:[%s11811_s1 + $0x88] sm:$0xf]  ;;  %v1552_v41 = vmul.bf16 %v7285_v32, %v8877_v58 }
 0x119   :  { %v8919_v42 = vpack.c.bf16 %v621_v43, %v620_v35  ;;  %v1002_v35 = vpop.permute.xlu0 %1001 }
 0x11a   :  { %v466_v48 = vpop.f32.mrb[28].mxu0 }
 0x11b   :  { %v718_v31 = vrot.slane %v8919_v42, 4  ;;  %v467_v52 = vadd.f32 %v8797_v33, %v466_v48  ;;  %v7780_v53 = vpop.f32.mrb[29].mxu0  ;;  %v1022_v48 = vrot.slane %v8842_v18, %v8642_v46 }
 0x11c   :  { %1681 = vrot.lane.b32.xlu0 %v1550_v49, %s8394_s25  ;;  %1145 = vperm.xlu1 %7995, %v78_v47   ;;  %v469_v62 = vpop.f32.mrb[30].mxu0  ;;  %v1010_v49 = vrot.slane %v1002_v35, %v8642_v46  ;;  %v83_v53 = vld [vmem:[%s11811_s1 + $0x8c] sm:$0xf] }
 0x11d   :  { %v622_v63 = vmax.f32 %v467_v52, 0.0  ;;  %v470_v1 = vadd.f32 %v8797_v33, %v469_v62  ;;  %v8936_v4 = vsel %vm706_vm3, %v716_v25, %v718_v31  ;;  %v7781_v54 = vpop.f32.mrb[31].mxu0 }
 0x11e   :  { %v1525_v7 = vmul.bf16 %v7283_v5, %v8936_v4 }
 0x11f   :  { %v623_v56 = vmax.f32 %v470_v1, 0.0 }
 0x120   :  { %1157 = vperm.xlu0 %7994, %v79_v3   ;;  %1606 = vrot.lane.b32.xlu1 %v1525_v7, %s8394_s25  ;;  %v84_v3 = vld [vmem:[%s11811_s1 + $0x90] sm:$0xf] }
 0x121   :  { %v8940_v10 = vpack.c.bf16 %v623_v56, %v622_v63  ;;  %v7286_v63 = vcombine.low %v1010_v49, %v1022_v48 }
 0x122   :  { %v474_v12 = vpop.f32.mrb[32].mxu0 }
 0x123   :  { %v720_v17 = vrot.slane %v8940_v10, 4  ;;  %v475_v34 = vadd.f32 %v8797_v33, %v474_v12  ;;  %v7784_v59 = vpop.f32.mrb[33].mxu0  ;;  %v1553_v54 = vmul.bf16 %v7286_v63, %v8898_v19 }
 0x124   :  { %1683 = vrot.lane.b32.xlu0 %v1551_v13, %s8394_s25  ;;  %1169 = vperm.xlu1 %7995, %v80_v11   ;;  %v477_v22 = vpop.f32.mrb[34].mxu0  ;;  %v85_v13 = vld [vmem:[%s11811_s1 + $0x94] sm:$0xf] }
 0x125   :  { %v624_v24 = vmax.f32 %v475_v34, 0.0  ;;  %v478_v25 = vadd.f32 %v8797_v33, %v477_v22  ;;  %v8957_v28 = vsel %vm706_vm3, %v718_v31, %v720_v17  ;;  %v7785_v29 = vpop.f32.mrb[35].mxu0  ;;  %v86_v22 = vld [vmem:[%s11811_s1 + $0x98] sm:$0xf] }
 0x126   :  { %v1526_v30 = vmul.bf16 %v7284_v8, %v8957_v28 }
 0x127   :  { %v625_v6 = vmax.f32 %v478_v25, 0.0 }
 0x128   :  { %1181 = vperm.xlu0 %7994, %v81_v26   ;;  %1608 = vrot.lane.b32.xlu1 %v1526_v30, %s8394_s25 }
 0x129   :  { %v8961_v37 = vpack.c.bf16 %v625_v6, %v624_v24 }
 0x12a   :  { %v482_v40 = vpop.f32.mrb[36].mxu0 }
 0x12b   :  { %v722_v43 = vrot.slane %v8961_v37, 4  ;;  %v483_v5 = vadd.f32 %v8797_v33, %v482_v40  ;;  %v7788_v47 = vpop.f32.mrb[37].mxu0 }
 0x12c   :  { %1685 = vrot.lane.b32.xlu0 %v1552_v41, %s8394_s25  ;;  %1193 = vperm.xlu1 %7995, %v82_v38   ;;  %v485_v50 = vpop.f32.mrb[38].mxu0 }
 0x12d   :  { %v626_v31 = vmax.f32 %v483_v5, 0.0  ;;  %v486_v52 = vadd.f32 %v8797_v33, %v485_v50  ;;  %v8978_v57 = vsel %vm706_vm3, %v720_v17, %v722_v43  ;;  %v7789_v60 = vpop.f32.mrb[39].mxu0 }
 0x12e   :  { %v1527_v62 = vmul.bf16 %v7285_v32, %v8978_v57 }
 0x12f   :  { %v627_v18 = vmax.f32 %v486_v52, 0.0 }
 0x130   :  { %1205 = vperm.xlu0 %7994, %v83_v53   ;;  %1610 = vrot.lane.b32.xlu1 %v1527_v62, %s8394_s25 }
 0x131   :  { %v8982_v1 = vpack.c.bf16 %v627_v18, %v626_v31 }
 0x132   :  { %v490_v7 = vpop.f32.mrb[40].mxu0 }
 0x133   :  { %v724_v56 = vrot.slane %v8982_v1, 4  ;;  %v491_v8 = vadd.f32 %v8797_v33, %v490_v7  ;;  %v7792_v11 = vpop.f32.mrb[41].mxu0 }
 0x134   :  { %1687 = vrot.lane.b32.xlu0 %v1553_v54, %s8394_s25  ;;  %1217 = vperm.xlu1 %7995, %v84_v3   ;;  %v493_v12 = vpop.f32.mrb[42].mxu0 }
 0x135   :  { %v8997_v16 = vsel %vm706_vm3, %v722_v43, %v724_v56  ;;  %v628_v17 = vmax.f32 %v491_v8, 0.0  ;;  %v494_v34 = vadd.f32 %v8797_v33, %v493_v12  ;;  %v7793_v59 = vpop.f32.mrb[43].mxu0 }
 0x136   :  { %v1528_v20 = vmul.bf16 %v7286_v63, %v8997_v16 }
 0x137   :  { %v629_v21 = vmax.f32 %v494_v34, 0.0 }
 0x138   :  { %1229 = vperm.xlu0 %7994, %v85_v13   ;;  %1612 = vrot.lane.b32.xlu1 %v1528_v20, %s8394_s25 }
 0x139   :  { %v9005_v24 = vpack.c.bf16 %v629_v21, %v628_v17 }
 0x13a   :  { %v498_v25 = vpop.f32.mrb[44].mxu0 }
 0x13b   :  { %v499_v26 = vadd.f32 %v8797_v33, %v498_v25  ;;  %v7796_v29 = vpop.f32.mrb[45].mxu0 }
 0x13c   :  { %1241 = vperm.xlu1 %7995, %v86_v22   ;;  %v501_v30 = vpop.f32.mrb[46].mxu0 }
 0x13d   :  { %v630_v6 = vmax.f32 %v499_v26, 0.0  ;;  %v502_v32 = vadd.f32 %v8797_v33, %v501_v30  ;;  %v7797_v35 = vpop.f32.mrb[47].mxu0 }
 0x13f   :  { %v631_v38 = vmax.f32 %v502_v32, 0.0 }
 0x141   :  { %v9009_v40 = vpack.c.bf16 %v631_v38, %v630_v6  ;;  %v1038_v38 = vpop.permute.xlu1 %1037 }
 0x142   :  { %v506_v41 = vpop.f32.mrb[48].mxu0 }
 0x143   :  { %v507_v43 = vadd.f32 %v8797_v33, %v506_v41  ;;  %v7800_v5 = vpop.f32.mrb[49].mxu0 }
 0x144   :  { %v509_v47 = vpop.f32.mrb[50].mxu0 }
 0x145   :  { %v632_v48 = vmax.f32 %v507_v43, 0.0  ;;  %v510_v49 = vadd.f32 %v8797_v33, %v509_v47  ;;  %v7801_v50 = vpop.f32.mrb[51].mxu0 }
 0x147   :  { %v633_v31 = vmax.f32 %v510_v49, 0.0 }
 0x149   :  { %v9013_v52 = vpack.c.bf16 %v633_v31, %v632_v48  ;;  %v1672_v31 = vpop.permute.xlu1 %1671 }
 0x14a   :  { %v514_v53 = vpop.f32.mrb[52].mxu0 }
 0x14b   :  { %v515_v60 = vadd.f32 %v8797_v33, %v514_v53  ;;  %v7804_v62 = vpop.f32.mrb[53].mxu0 }
 0x14c   :  { %v517_v18 = vpop.f32.mrb[54].mxu0 }
 0x14d   :  { %v634_v63 = vmax.f32 %v515_v60, 0.0  ;;  %v518_v3 = vadd.f32 %v8797_v33, %v517_v18  ;;  %v7805_v54 = vpop.f32.mrb[55].mxu0 }
 0x14f   :  { %v635_v7 = vmax.f32 %v518_v3, 0.0 }
 0x151   :  { %v9017_v8 = vpack.c.bf16 %v635_v7, %v634_v63 }
 0x152   :  { %v522_v11 = vpop.f32.mrb[56].mxu0 }
 0x153   :  { %v523_v12 = vadd.f32 %v8797_v33, %v522_v11  ;;  %v7808_v13 = vpop.f32.mrb[57].mxu0 }
 0x154   :  { %v525_v17 = vpop.f32.mrb[58].mxu0 }
 0x155   :  { %v636_v34 = vmax.f32 %v523_v12, 0.0  ;;  %v526_v59 = vadd.f32 %v8797_v33, %v525_v17  ;;  %v7809_v20 = vpop.f32.mrb[59].mxu0 }
 0x157   :  { %v637_v21 = vmax.f32 %v526_v59, 0.0  ;;  %v726_v59 = vrot.slane %v9005_v24, 4 }
 0x159   :  { %v9021_v22 = vpack.c.bf16 %v637_v21, %v636_v34  ;;  %v1062_v21 = vpop.permute.xlu1 %1061 }
 0x15a   :  { %v530_v25 = vpop.f32.mrb[60].mxu0 }
 0x15b   :  { %v531_v26 = vadd.f32 %v8797_v33, %v530_v25  ;;  %v7812_v29 = vpop.f32.mrb[61].mxu0 }
 0x15c   :  { %v533_v30 = vpop.f32.mrb[62].mxu0 }
 0x15d   :  { %v638_v6 = vmax.f32 %v531_v26, 0.0  ;;  %v534_v32 = vadd.f32 %v8797_v33, %v533_v30  ;;  %v7813_v35 = vpop.f32.mrb[63].mxu0 }
 0x15f   :  { %v639_v41 = vmax.f32 %v534_v32, 0.0 }
 0x161   :  { %v9025_v43 = vpack.c.bf16 %v639_v41, %v638_v6  ;;  %v1046_v6 = vrot.slane %v1038_v38, %v8642_v46  ;;  %v9046_v41 = vsel %vm706_vm3, %v724_v56, %v726_v59 }
 0x162   :  { %v1595_v5 = vpop.permute.xlu0 %1594  ;;  %v538_v47 = vpop.f32.mrb[64].mxu0 }
 0x163   :  { %v1722_v48 = vsel %vm1719_vm4, %v8805_v44, %v1595_v5  ;;  %v539_v49 = vadd.f32 %v8797_v33, %v538_v47  ;;  %v7816_v50 = vpop.f32.mrb[65].mxu0 }
 0x164   :  { %2084 = vmatmul.mubr.bf16.vlgmr.msra.gmra.mrb[0].mxu1 %v1722_v48  ;;  %v541_v53 = vpop.f32.mrb[66].mxu0 }
 0x165   :  { %7322 = vmatprep.mubr.msk.bf16.mxu1 %vm8847_vm5, %v1672_v31  ;;  %v640_v60 = vmax.f32 %v539_v49, 0.0  ;;  %v542_v62 = vadd.f32 %v8797_v33, %v541_v53  ;;  %v7817_v18 = vpop.f32.mrb[67].mxu0 }
 0x166   :  { %v728_v18 = vrot.slane %v9009_v40, 4 }
 0x167   :  { %v641_v63 = vmax.f32 %v542_v62, 0.0  ;;  %v1674_v62 = vpop.permute.xlu1 %1673 }
 0x169   :  { %v9033_v3 = vpack.c.bf16 %v641_v63, %v640_v60 }
 0x16a   :  { %v546_v54 = vpop.f32.mrb[68].mxu0 }
 0x16b   :  { %v547_v7 = vadd.f32 %v8797_v33, %v546_v54  ;;  %v7820_v44 = vpop.f32.mrb[69].mxu0 }
 0x16c   :  { %v549_v11 = vpop.f32.mrb[70].mxu0 }
 0x16d   :  { %v642_v12 = vmax.f32 %v547_v7, 0.0  ;;  %v550_v13 = vadd.f32 %v8797_v33, %v549_v11  ;;  %v7821_v17 = vpop.f32.mrb[71].mxu0  ;;  %v1070_v11 = vrot.slane %v1062_v21, %v8642_v46 }
 0x16f   :  { %v643_v34 = vmax.f32 %v550_v13, 0.0  ;;  %v88_v13 = vld [vmem:[%s11811_s1 + $0xa0] sm:$0xf] }
 0x171   :  { %v9038_v20 = vpack.c.bf16 %v643_v34, %v642_v12  ;;  %v9070_v34 = vsel %vm706_vm3, %v726_v59, %v728_v18 }
 0x172   :  { %v554_v25 = vpop.f32.mrb[72].mxu0 }
 0x173   :  { %v1026_v26 = vpop.permute.xlu0 %1025  ;;  %v555_v29 = vadd.f32 %v8797_v33, %v554_v25  ;;  %v7824_v30 = vpop.f32.mrb[73].mxu0 }
 0x174   :  { %v1034_v32 = vrot.slane %v1026_v26, %v8642_v46  ;;  %v557_v35 = vpop.f32.mrb[74].mxu0 }
 0x175   :  { %v644_v5 = vmax.f32 %v555_v29, 0.0  ;;  %v558_v47 = vadd.f32 %v8797_v33, %v557_v35  ;;  %v7825_v48 = vpop.f32.mrb[75].mxu0 }
 0x176   :  { %v7287_v49 = vcombine.low %v1034_v32, %v1046_v6 }
 0x177   :  { %v1597_v50 = vpop.permute.xlu0 %1596  ;;  %v645_v31 = vmax.f32 %v558_v47, 0.0  ;;  %v1074_v47 = vpop.permute.xlu1 %1073 }
 0x178   :  { %v1726_v53 = vsel %vm1719_vm4, %v8818_v61, %v1597_v50  ;;  %v1554_v38 = vmul.bf16 %v7287_v49, %v8919_v42  ;;  %v1529_v60 = vmul.bf16 %v7287_v49, %v9046_v41  ;;  %v87_v61 = vld [vmem:[%s11811_s1 + $0x9c] sm:$0xf]  ;;  %v89_v50 = vld [vmem:[%s11811_s1 + $0xa4] sm:$0xf] }
 0x179   :  { %2092 = vmatmul.mubr.bf16.gmra.mrb[4].mxu1 %v1726_v53  ;;  %v9054_v56 = vpack.c.bf16 %v645_v31, %v644_v5 }
 0x17a   :  { %7324 = vmatprep.mubr.msk.bf16.mxu1 %vm8847_vm5, %v1674_v62  ;;  %1689 = vrot.lane.b32.xlu0 %v1554_v38, %s8394_s25  ;;  %v562_v63 = vpop.f32.mrb[76].mxu0  ;;  %v90_v38 = vld [vmem:[%s11811_s1 + $0xa8] sm:$0xf] }
 0x17b   :  { %1614 = vrot.lane.b32.xlu1 %v1529_v60, %s8394_s25  ;;  %v1050_v54 = vpop.permute.xlu0 %1049  ;;  %v563_v7 = vadd.f32 %v8797_v33, %v562_v63  ;;  %v7828_v44 = vpop.f32.mrb[77].mxu0 }
 0x17c   :  { %v1058_v12 = vrot.slane %v1050_v54, %v8642_v46  ;;  %v565_v17 = vpop.f32.mrb[78].mxu0  ;;  %v1601_v62 = vpop.permute.xlu1 %1600 }
 0x17d   :  { %v646_v25 = vmax.f32 %v563_v7, 0.0  ;;  %v566_v26 = vadd.f32 %v8797_v33, %v565_v17  ;;  %v7829_v29 = vpop.f32.mrb[79].mxu0  ;;  %v730_v7 = vrot.slane %v9013_v52, 4 }
 0x17e   :  { %v7288_v30 = vcombine.low %v1058_v12, %v1070_v11  ;;  %1253 = vperm.xlu0 %7994, %v87_v61   ;;  %v1082_v12 = vrot.slane %v1074_v47, %v8642_v46 }
 0x17f   :  { %1265 = vperm.xlu1 %7995, %v88_v13   ;;  %v1599_v6 = vpop.permute.xlu0 %1598  ;;  %v647_v32 = vmax.f32 %v566_v26, 0.0  ;;  %v1734_v13 = vsel %vm1719_vm4, %v8860_v36, %v1601_v62 }
 0x180   :  { %v1730_v21 = vsel %vm1719_vm4, %v8834_v14, %v1599_v6  ;;  %v1555_v35 = vmul.bf16 %v7288_v30, %v8940_v10  ;;  %v1530_v5 = vmul.bf16 %v7288_v30, %v9070_v34  ;;  %v9099_v6 = vsel %vm706_vm3, %v728_v18, %v730_v7 }
 0x181   :  { %2100 = vmatmul.mubr.bf16.gmra.mrb[8].mxu1 %v1730_v21  ;;  %v9077_v59 = vpack.c.bf16 %v647_v32, %v646_v25 }
 0x182   :  { %1691 = vrot.lane.b32.xlu0 %v1555_v35, %s8394_s25  ;;  %v570_v48 = vpop.f32.mrb[80].mxu0 }
 0x183   :  { %1616 = vrot.lane.b32.xlu1 %v1530_v5, %s8394_s25  ;;  %v1676_v49 = vpop.permute.xlu0 %1675  ;;  %v571_v14 = vadd.f32 %v8797_v33, %v570_v48  ;;  %v7832_v31 = vpop.f32.mrb[81].mxu0 }
 0x184   :  { %v1830_v53 = vsel %vm1719_vm4, %v8811_v55, %v1676_v49  ;;  %v573_v60 = vpop.f32.mrb[82].mxu0 }
 0x185   :  { %2107 = vmatprep.mubr.bf16.mxu1 %v1830_v53  ;;  %v648_v63 = vmax.f32 %v571_v14, 0.0  ;;  %v574_v54 = vadd.f32 %v8797_v33, %v573_v60  ;;  %v7833_v61 = vpop.f32.mrb[83].mxu0  ;;  %v92_v53 = vld [vmem:[%s11811_s1 + $0xb0] sm:$0xf] }
 0x186   :  { %1277 = vperm.xlu0 %7994, %v89_v50   ;;  %v732_v50 = vrot.slane %v9017_v8, 4 }
 0x187   :  { %1289 = vperm.xlu1 %7995, %v90_v38   ;;  %v1086_v44 = vpop.permute.xlu0 %1085  ;;  %v649_v11 = vmax.f32 %v574_v54, 0.0 }
 0x188   :  { %v1094_v55 = vrot.slane %v1086_v44, %v8642_v46 }
 0x189   :  { %2108 = vmatmul.mubr.bf16.gmra.mrb[12].mxu1 %v1734_v13  ;;  %v9096_v17 = vpack.c.bf16 %v649_v11, %v648_v63 }
 0x18a   :  { %v7289_v25 = vcombine.low %v1082_v12, %v1094_v55  ;;  %v578_v26 = vpop.f32.mrb[84].mxu0  ;;  %v9123_v55 = vsel %vm706_vm3, %v730_v7, %v732_v50 }
 0x18b   :  { %v1678_v29 = vpop.permute.xlu0 %1677  ;;  %v1098_v30 = vpop.permute.xlu1 %1097  ;;  %v579_v32 = vadd.f32 %v8797_v33, %v578_v26 }
 0x18c   :  { %v1834_v21 = vsel %vm1719_vm4, %v8829_v9, %v1678_v29  ;;  %v1556_v35 = vmul.bf16 %v7289_v25, %v8961_v37  ;;  %v1531_v5 = vmul.bf16 %v7289_v25, %v9099_v6  ;;  %v7836_v36 = vpop.f32.mrb[85].mxu0  ;;  %v91_v9 = vld [vmem:[%s11811_s1 + $0xac] sm:$0xf]  ;;  %v1106_v38 = vrot.slane %v1098_v30, %v8642_v46 }
 0x18d   :  { %2115 = vmatprep.mubr.bf16.mxu1 %v1834_v21  ;;  %v581_v47 = vpop.f32.mrb[86].mxu0  ;;  %v650_v48 = vmax.f32 %v579_v32, 0.0 }
 0x18e   :  { %1693 = vrot.lane.b32.xlu0 %v1556_v35, %s8394_s25  ;;  %1618 = vrot.lane.b32.xlu1 %v1531_v5, %s8394_s25  ;;  %v582_v18 = vadd.f32 %v8797_v33, %v581_v47  ;;  %v7837_v49 = vpop.f32.mrb[87].mxu0  ;;  %v734_v35 = vrot.slane %v9021_v22, 4  ;;  %v94_v47 = vld [vmem:[%s11811_s1 + $0xb8] sm:$0xf] }
 0x18f   :  { %v1110_v14 = vpop.permute.xlu0 %1109  ;;  %v1603_v31 = vpop.permute.xlu1 %1602 }
 0x190   :  { %v1118_v60 = vrot.slane %v1110_v14, %v8642_v46  ;;  %v1738_v62 = vsel %vm1719_vm4, %v8877_v58, %v1603_v31  ;;  %v651_v63 = vmax.f32 %v582_v18, 0.0 }
 0x191   :  { %2116 = vmatmul.mubr.bf16.gmra.mrb[16].mxu1 %v1738_v62  ;;  %v9147_v62 = vsel %vm706_vm3, %v732_v50, %v734_v35 }
 0x192   :  { %v7290_v54 = vcombine.low %v1106_v38, %v1118_v60  ;;  %1301 = vperm.xlu0 %7994, %v91_v9   ;;  %1313 = vperm.xlu1 %7995, %v92_v53   ;;  %v9120_v61 = vpack.c.bf16 %v651_v63, %v650_v48  ;;  %v586_v44 = vpop.f32.mrb[88].mxu0 }
 0x193   :  { %v1680_v11 = vpop.permute.xlu0 %1679  ;;  %v1122_v12 = vpop.permute.xlu1 %1121  ;;  %v587_v13 = vadd.f32 %v8797_v33, %v586_v44 }
 0x194   :  { %v1838_v25 = vsel %vm1719_vm4, %v8853_v27, %v1680_v11  ;;  %v1557_v58 = vmul.bf16 %v7290_v54, %v8982_v1  ;;  %v1532_v26 = vmul.bf16 %v7290_v54, %v9123_v55  ;;  %v7840_v29 = vpop.f32.mrb[89].mxu0  ;;  %v93_v27 = vld [vmem:[%s11811_s1 + $0xb4] sm:$0xf]  ;;  %v1130_v48 = vrot.slane %v1122_v12, %v8642_v46 }
 0x195   :  { %2123 = vmatprep.mubr.bf16.mxu1 %v1838_v25  ;;  %v589_v30 = vpop.f32.mrb[90].mxu0  ;;  %v652_v32 = vmax.f32 %v587_v13, 0.0  ;;  %v736_v12 = vrot.slane %v9025_v43, 4 }
 0x196   :  { %1695 = vrot.lane.b32.xlu0 %v1557_v58, %s8394_s25  ;;  %1620 = vrot.lane.b32.xlu1 %v1532_v26, %s8394_s25  ;;  %v590_v7 = vadd.f32 %v8797_v33, %v589_v30  ;;  %v7841_v21 = vpop.f32.mrb[91].mxu0 }
 0x197   :  { %v1134_v5 = vpop.permute.xlu0 %1133  ;;  %v1605_v36 = vpop.permute.xlu1 %1604 }
 0x198   :  { %v1142_v18 = vrot.slane %v1134_v5, %v8642_v46  ;;  %v1742_v49 = vsel %vm1719_vm4, %v8898_v19, %v1605_v36  ;;  %v653_v14 = vmax.f32 %v590_v7, 0.0  ;;  %v9166_v5 = vsel %vm706_vm3, %v734_v35, %v736_v12 }
 0x199   :  { %2124 = vmatmul.mubr.bf16.gmra.mrb[20].mxu1 %v1742_v49 }
 0x19a   :  { %v7291_v31 = vcombine.low %v1130_v48, %v1142_v18  ;;  %1325 = vperm.xlu0 %7994, %v93_v27   ;;  %1337 = vperm.xlu1 %7995, %v94_v47   ;;  %v9144_v9 = vpack.c.bf16 %v653_v14, %v652_v32  ;;  %v594_v53 = vpop.f32.mrb[92].mxu0 }
 0x19b   :  { %v1682_v38 = vpop.permute.xlu0 %1681  ;;  %v1146_v60 = vpop.permute.xlu1 %1145  ;;  %v595_v63 = vadd.f32 %v8797_v33, %v594_v53 }
 0x19c   :  { %v1842_v54 = vsel %vm1719_vm4, %v8873_v51, %v1682_v38  ;;  %v1558_v19 = vmul.bf16 %v7291_v31, %v9005_v24  ;;  %v1533_v44 = vmul.bf16 %v7291_v31, %v9147_v62  ;;  %v7844_v11 = vpop.f32.mrb[93].mxu0  ;;  %v95_v51 = vld [vmem:[%s11811_s1 + $0xbc] sm:$0xf]  ;;  %v1154_v30 = vrot.slane %v1146_v60, %v8642_v46 }
 0x19d   :  { %2131 = vmatprep.mubr.bf16.mxu1 %v1842_v54  ;;  %v597_v13 = vpop.f32.mrb[94].mxu0  ;;  %v654_v50 = vmax.f32 %v595_v63, 0.0 }
 0x19e   :  { %1697 = vrot.lane.b32.xlu0 %v1558_v19, %s8394_s25  ;;  %1622 = vrot.lane.b32.xlu1 %v1533_v44, %s8394_s25  ;;  %v598_v25 = vadd.f32 %v8797_v33, %v597_v13  ;;  %v7845_v58 = vpop.f32.mrb[95].mxu0  ;;  %v740_v13 = vrot.slane %v9038_v20, 4 }
 0x19f   :  { %v1158_v26 = vpop.permute.xlu0 %1157  ;;  %v1607_v29 = vpop.permute.xlu1 %1606 }
 0x1a0   :  { %v1166_v32 = vrot.slane %v1158_v26, %v8642_v46  ;;  %v1746_v7 = vsel %vm1719_vm4, %v8919_v42, %v1607_v29  ;;  %v655_v21 = vmax.f32 %v598_v25, 0.0  ;;  %v738_v42 = vrot.slane %v9033_v3, 4 }
 0x1a1   :  { %2132 = vmatmul.mubr.bf16.gmra.mrb[24].mxu1 %v1746_v7 }
 0x1a2   :  { %v7292_v33 = vcombine.low %v1154_v30, %v1166_v32  ;;  %1349 = vperm.xlu0 %7994, %v95_v51   ;;  %v9168_v36 = vpack.c.bf16 %v655_v21, %v654_v50  ;;  %v9182_v38 = vsel %vm706_vm3, %v736_v12, %v738_v42  ;;  %v9196_v58 = vsel %vm706_vm3, %v738_v42, %v740_v13 }
 0x1a3   :  { %v1684_v27 = vpop.permute.xlu0 %1683  ;;  %v1170_v47 = vpop.permute.xlu1 %1169  ;;  %v742_v21 = vrot.slane %v9054_v56, 4 }
 0x1a4   :  { %v1846_v48 = vsel %vm1719_vm4, %v8894_v15, %v1684_v27  ;;  %v1559_v18 = vmul.bf16 %v7292_v33, %v9009_v40  ;;  %v1534_v49 = vmul.bf16 %v7292_v33, %v9166_v5  ;;  %v1178_v31 = vrot.slane %v1170_v47, %v8642_v46 }
 0x1a5   :  { %2139 = vmatprep.mubr.bf16.mxu1 %v1846_v48  ;;  %v9210_v48 = vsel %vm706_vm3, %v740_v13, %v742_v21 }
 0x1a6   :  { %1699 = vrot.lane.b32.xlu0 %v1559_v18, %s8394_s25  ;;  %1624 = vrot.lane.b32.xlu1 %v1534_v49, %s8394_s25 }
 0x1a7   :  { %v1182_v35 = vpop.permute.xlu0 %1181  ;;  %v1609_v14 = vpop.permute.xlu1 %1608 }
 0x1a8   :  { %v1190_v53 = vrot.slane %v1182_v35, %v8642_v46  ;;  %v1750_v15 = vsel %vm1719_vm4, %v8940_v10, %v1609_v14  ;;  %v8041_v35 = vld [vmem:[%s11813_s0 + $0xc0] ss:$0 sps:$4 sm:$0xff]  }
 0x1a9   :  { %2140 = vmatmul.mubr.bf16.gmra.mrb[28].mxu1 %v1750_v15  ;;  %7847 = vmatmul.mubr.msk.bf16.gmra.mrb[96].mxu0 %vm296_vm2, %v8041_v35 }
 0x1aa   :  { %v7293_v60 = vcombine.low %v1178_v31, %v1190_v53 }
 0x1ab   :  { %v1686_v63 = vpop.permute.xlu0 %1685  ;;  %v1194_v54 = vpop.permute.xlu1 %1193 }
 0x1ac   :  { %v1850_v19 = vsel %vm1719_vm4, %v8915_v39, %v1686_v63  ;;  %v1560_v44 = vmul.bf16 %v7293_v60, %v9013_v52  ;;  %v1535_v11 = vmul.bf16 %v7293_v60, %v9182_v38  ;;  %v1202_v50 = vrot.slane %v1194_v54, %v8642_v46 }
 0x1ad   :  { %2147 = vmatprep.mubr.bf16.mxu1 %v1850_v19  ;;  %v744_v60 = vrot.slane %v9077_v59, 4 }
 0x1ae   :  { %1701 = vrot.lane.b32.xlu0 %v1560_v44, %s8394_s25  ;;  %1626 = vrot.lane.b32.xlu1 %v1535_v11, %s8394_s25 }
 0x1af   :  { %v1206_v10 = vpop.permute.xlu0 %1205  ;;  %v1611_v12 = vpop.permute.xlu1 %1610 }
 0x1b0   :  { %v1214_v25 = vrot.slane %v1206_v10, %v8642_v46  ;;  %v1754_v39 = vsel %vm1719_vm4, %v8961_v37, %v1611_v12  ;;  %v9228_v10 = vsel %vm706_vm3, %v742_v21, %v744_v60 }
 0x1b1   :  { %2148 = vmatmul.mubr.bf16.gmra.mrb[32].mxu1 %v1754_v39  ;;  %v9238_v39 = vrot.slane %v9096_v17, 4 }
 0x1b2   :  { %v7294_v26 = vcombine.low %v1202_v50, %v1214_v25 }
 0x1b3   :  { %v1688_v29 = vpop.permute.xlu0 %1687  ;;  %v1218_v51 = vpop.permute.xlu1 %1217 }
 0x1b4   :  { %v1854_v30 = vsel %vm1719_vm4, %v8936_v4, %v1688_v29  ;;  %v1561_v32 = vmul.bf16 %v7294_v26, %v9017_v8  ;;  %v1536_v7 = vmul.bf16 %v7294_v26, %v9196_v58  ;;  %v1226_v27 = vrot.slane %v1218_v51, %v8642_v46 }
 0x1b5   :  { %2155 = vmatprep.mubr.bf16.mxu1 %v1854_v30 }
 0x1b6   :  { %1703 = vrot.lane.b32.xlu0 %v1561_v32, %s8394_s25  ;;  %1628 = vrot.lane.b32.xlu1 %v1536_v7, %s8394_s25  ;;  %v9245_v7 = vsel %vm706_vm3, %v744_v60, %v9238_v39  ;;  %v750_v60 = vrot.slane %v9144_v9, 4 }
 0x1b7   :  { %v1230_v37 = vpop.permute.xlu0 %1229  ;;  %v1613_v33 = vpop.permute.xlu1 %1612 }
 0x1b8   :  { %v1238_v47 = vrot.slane %v1230_v37, %v8642_v46  ;;  %v1758_v4 = vsel %vm1719_vm4, %v8982_v1, %v1613_v33 }
 0x1b9   :  { %2156 = vmatmul.mubr.bf16.gmra.mrb[36].mxu1 %v1758_v4 }
 0x1ba   :  { %v7295_v18 = vcombine.low %v1226_v27, %v1238_v47  ;;  %v748_v47 = vrot.slane %v9120_v61, 4 }
 0x1bb   :  { %v1242_v1 = vpop.permute.xlu1 %1241 }
 0x1bc   :  { %v1562_v49 = vmul.bf16 %v7295_v18, %v9021_v22  ;;  %v1537_v42 = vmul.bf16 %v7295_v18, %v9210_v48  ;;  %v1250_v54 = vrot.slane %v1242_v1, %v8642_v46 }
 0x1be   :  { %1705 = vrot.lane.b32.xlu0 %v1562_v49, %s8394_s25  ;;  %1630 = vrot.lane.b32.xlu1 %v1537_v42, %s8394_s25 }
 0x1ec   :  { %v1690_v14 = vpop.permute.xlu0 %1689 }
 0x1ed   :  { %v1615_v31 = vpop.permute.xlu1 %1614  ;;  %v1858_v53 = vsel %vm1719_vm4, %v8957_v28, %v1690_v14  ;;  %v749_v14 = vsel %vm706_vm3, %v9238_v39, %v748_v47 }
 0x1ee   :  { %2163 = vmatprep.mubr.bf16.mxu1 %v1858_v53  ;;  %v1762_v15 = vsel %vm1719_vm4, %v9005_v24, %v1615_v31 }
 0x1ef   :  { %2164 = vmatmul.mubr.bf16.gmra.mrb[40].mxu1 %v1762_v15 }
 0x1fd   :  { %v1254_v63 = vpop.permute.xlu0 %1253 }
 0x1fe   :  { %v1262_v19 = vrot.slane %v1254_v63, %v8642_v46  ;;  %v1266_v44 = vpop.permute.xlu1 %1265 }
 0x1ff   :  { %v1274_v29 = vrot.slane %v1266_v44, %v8642_v46 }
 0x200   :  { %v7296_v11 = vcombine.low %v1250_v54, %v1262_v19 }
 0x201   :  { %v1692_v13 = vpop.permute.xlu0 %1691 }
 0x202   :  { %v1617_v12 = vpop.permute.xlu1 %1616  ;;  %v1862_v28 = vsel %vm1719_vm4, %v8978_v57, %v1692_v13  ;;  %v1563_v24 = vmul.bf16 %v7296_v11, %v9025_v43  ;;  %v1538_v50 = vmul.bf16 %v7296_v11, %v9228_v10  ;;  %v751_v13 = vsel %vm706_vm3, %v748_v47, %v750_v60 }
 0x203   :  { %2171 = vmatprep.mubr.bf16.mxu1 %v1862_v28  ;;  %v1766_v25 = vsel %vm1719_vm4, %v9009_v40, %v1617_v12 }
 0x204   :  { %2172 = vmatmul.mubr.bf16.gmra.mrb[44].mxu1 %v1766_v25  ;;  %1707 = vrot.lane.b32.xlu0 %v1563_v24, %s8394_s25 }
 0x205   :  { %1632 = vrot.lane.b32.xlu1 %v1538_v50, %s8394_s25  ;;  %v1278_v26 = vpop.permute.xlu0 %1277 }
 0x206   :  { %v1286_v57 = vrot.slane %v1278_v26, %v8642_v46  ;;  %v1290_v51 = vpop.permute.xlu1 %1289 }
 0x207   :  { %v1298_v49 = vrot.slane %v1290_v51, %v8642_v46  ;;  %v752_v51 = vrot.slane %v9168_v36, 4 }
 0x208   :  { %v7297_v30 = vcombine.low %v1274_v29, %v1286_v57 }
 0x209   :  { %v1694_v32 = vpop.permute.xlu0 %1693 }
 0x20a   :  { %v1619_v40 = vpop.permute.xlu1 %1618  ;;  %v1866_v21 = vsel %vm1719_vm4, %v8997_v16, %v1694_v32  ;;  %v1564_v37 = vmul.bf16 %v7297_v30, %v9033_v3  ;;  %v1539_v33 = vmul.bf16 %v7297_v30, %v9245_v7 }
 0x20b   :  { %2179 = vmatprep.mubr.bf16.mxu1 %v1866_v21  ;;  %v1770_v27 = vsel %vm1719_vm4, %v9013_v52, %v1619_v40 }
 0x20c   :  { %2180 = vmatmul.mubr.bf16.gmra.mrb[48].mxu1 %v1770_v27  ;;  %1709 = vrot.lane.b32.xlu0 %v1564_v37, %s8394_s25 }
 0x20d   :  { %1634 = vrot.lane.b32.xlu1 %v1539_v33, %s8394_s25  ;;  %v753_v33 = vsel %vm706_vm3, %v750_v60, %v752_v51 }
 0x211   :  { %v1302_v4 = vpop.permute.xlu0 %1301  ;;  %v1314_v18 = vpop.permute.xlu1 %1313 }
 0x212   :  { %v1310_v16 = vrot.slane %v1302_v4, %v8642_v46  ;;  %v1322_v19 = vrot.slane %v1314_v18, %v8642_v46 }
 0x214   :  { %v7298_v42 = vcombine.low %v1298_v49, %v1310_v16 }
 0x215   :  { %v1696_v35 = vpop.permute.xlu0 %1695  ;;  %v1621_v1 = vpop.permute.xlu1 %1620 }
 0x216   :  { %v1870_v52 = vsel %vm1719_vm4, %v9046_v41, %v1696_v35  ;;  %v1774_v31 = vsel %vm1719_vm4, %v9017_v8, %v1621_v1  ;;  %v1565_v53 = vmul.bf16 %v7298_v42, %v9038_v20  ;;  %v1540_v15 = vmul.bf16 %v7298_v42, %v749_v14 }
 0x217   :  { %2187 = vmatprep.mubr.bf16.mxu1 %v1870_v52 }
 0x218   :  { %2188 = vmatmul.mubr.bf16.gmra.mrb[52].mxu1 %v1774_v31  ;;  %1711 = vrot.lane.b32.xlu0 %v1565_v53, %s8394_s25 }
 0x219   :  { %1636 = vrot.lane.b32.xlu1 %v1540_v15, %s8394_s25  ;;  %v1326_v63 = vpop.permute.xlu0 %1325  ;;  %v1338_v54 = vpop.permute.xlu1 %1337 }
 0x21a   :  { %v1334_v41 = vrot.slane %v1326_v63, %v8642_v46  ;;  %v1346_v26 = vrot.slane %v1338_v54, %v8642_v46 }
 0x21c   :  { %v7299_v44 = vcombine.low %v1322_v19, %v1334_v41 }
 0x21d   :  { %v1698_v11 = vpop.permute.xlu0 %1697  ;;  %v1623_v8 = vpop.permute.xlu1 %1622 }
 0x21e   :  { %v1874_v12 = vsel %vm1719_vm4, %v9070_v34, %v1698_v11  ;;  %v1778_v28 = vsel %vm1719_vm4, %v9021_v22, %v1623_v8  ;;  %v1566_v24 = vmul.bf16 %v7299_v44, %v9054_v56  ;;  %v1541_v50 = vmul.bf16 %v7299_v44, %v751_v13  ;;  %v96_v34 = vld [vmem:[%s11811_s1 + $0xc0] sm:$0xf] }
 0x21f   :  { %2195 = vmatprep.mubr.bf16.mxu1 %v1874_v12  ;;  %v8043_v13 = vld [vmem:[%s11817_s6] sm:$0xff]  }
 0x220   :  { %2196 = vmatmul.mubr.bf16.gmra.mrb[56].mxu1 %v1778_v28  ;;  %1713 = vrot.lane.b32.xlu0 %v1566_v24, %s8394_s25 }
 0x221   :  { %1638 = vrot.lane.b32.xlu1 %v1541_v50, %s8394_s25  ;;  %v1350_v25 = vpop.permute.xlu0 %1349  ;;  %v1625_v22 = vpop.permute.xlu1 %1624 }
 0x222   :  { %v1358_v29 = vrot.slane %v1350_v25, %v8642_v46  ;;  %v1782_v21 = vsel %vm1719_vm4, %v9025_v43, %v1625_v22 }
 0x224   :  { %v7300_v57 = vcombine.low %v1346_v26, %v1358_v29 }
 0x225   :  { %1361 = vperm.xlu1 %7995, %v96_v34   ;;  %v1700_v30 = vpop.permute.xlu0 %1699 }
 0x226   :  { %v1878_v32 = vsel %vm1719_vm4, %v9099_v6, %v1700_v30  ;;  %v1567_v40 = vmul.bf16 %v7300_v57, %v9077_v59  ;;  %v1542_v47 = vmul.bf16 %v7300_v57, %v753_v33  ;;  %v1627_v6 = vpop.permute.xlu1 %1626 }
 0x227   :  { %2203 = vmatprep.mubr.bf16.mxu1 %v1878_v32  ;;  %v1786_v43 = vsel %vm1719_vm4, %v9033_v3, %v1627_v6 }
 0x228   :  { %2204 = vmatmul.mubr.bf16.gmra.mrb[60].mxu1 %v1782_v21  ;;  %1715 = vrot.lane.b32.xlu0 %v1567_v40, %s8394_s25 }
 0x229   :  { %v1702_v37 = vpop.permute.xlu0 %1701 }
 0x22a   :  { %v1882_v27 = vsel %vm1719_vm4, %v9123_v55, %v1702_v37  ;;  %v1629_v49 = vpop.permute.xlu1 %1628  ;;  %v9303_v55 = vld [vmem:[%s11816_s5] ss:$0 sm:$0xff] }
 0x22b   :  { %2211 = vmatprep.mubr.bf16.mxu1 %v1882_v27  ;;  %v1790_v35 = vsel %vm1719_vm4, %v9038_v20, %v1629_v49 }
 0x22c   :  { %1640 = vrot.lane.b32.xlu0 %v1542_v47, %s8394_s25 }
 0x22d   :  { %v1704_v4 = vpop.permute.xlu0 %1703 }
 0x22e   :  { %v1886_v18 = vsel %vm1719_vm4, %v9147_v62, %v1704_v4 }
 0x230   :  { %2212 = vmatmul.mubr.bf16.gmra.mrb[64].mxu1 %v1786_v43  ;;  %v1631_v53 = vpop.permute.xlu1 %1630 }
 0x231   :  { %2219 = vmatprep.mubr.bf16.mxu1 %v1886_v18  ;;  %v1706_v16 = vpop.permute.xlu0 %1705  ;;  %v1794_v20 = vsel %vm1719_vm4, %v9054_v56, %v1631_v53 }
 0x232   :  { %v1890_v3 = vsel %vm1719_vm4, %v9166_v5, %v1706_v16  ;;  %v8042_v5 = vld [vmem:[%s11817_s6 + $0x40] sm:$0xff]  }
 0x233   :  { %7571 = vmatprep.subr.bf16.mxu0 %v8042_v5 }
 0x234   :  { %7572 = vmatpush3.bf16.msra.mxu0 %v8043_v13 }
 0x237   :  { %v2085_v42 = vpop.f32.mrb[0].mxu1 }
 0x238   :  { %v2086_v1 = vadd.f32 %v9303_v55, %v2085_v42  ;;  %v2087_v14 = vpop.f32.mrb[1].mxu1  ;;  %2220 = vmatmul.mubr.bf16.gmra.mrb[68].mxu1 %v1790_v35 }
 0x239   :  { %v2088_v62 = vpop.f32.mrb[2].mxu1  ;;  %2227 = vmatprep.mubr.bf16.mxu1 %v1890_v3  ;;  %v8045_v14 = vld [vmem:[%s11817_s6 + $0x8] sm:$0xff]  }
 0x23a   :  { %v2089_v52 = vadd.f32 %v9303_v55, %v2088_v62  ;;  %v2090_v31 = vpop.f32.mrb[3].mxu1  ;;  %v2283_v15 = vmax.f32 %v2086_v1, 0.0  ;;  %v8044_v1 = vld [vmem:[%s11817_s6 + $0x48] sm:$0xff]  }
 0x23b   :  { %7573 = vmatprep.subr.bf16.mxu0 %v8044_v1 }
 0x23c   :  { %v2284_v60 = vmax.f32 %v2089_v52, 0.0  ;;  %7574 = vmatpush3.bf16.msra.mxu0 %v8045_v14 }
 0x23e   :  { %v9311_v63 = vpack.c.bf16 %v2284_v60, %v2283_v15 }
 0x240   :  { %2228 = vmatmul.mubr.bf16.gmra.mrb[72].mxu1 %v1794_v20 }
 0x24c   :  { %v2093_v54 = vpop.f32.mrb[4].mxu1 }
 0x24d   :  { %v2094_v19 = vadd.f32 %v9303_v55, %v2093_v54  ;;  %v2095_v41 = vpop.f32.mrb[5].mxu1 }
 0x24e   :  { %v2096_v44 = vpop.f32.mrb[6].mxu1 }
 0x24f   :  { %v2097_v11 = vadd.f32 %v9303_v55, %v2096_v44  ;;  %v2098_v8 = vpop.f32.mrb[7].mxu1  ;;  %v2285_v12 = vmax.f32 %v2094_v19, 0.0 }
 0x251   :  { %v2286_v56 = vmax.f32 %v2097_v11, 0.0 }
 0x253   :  { %v9323_v28 = vpack.c.bf16 %v2286_v56, %v2285_v12 }
 0x254   :  { %v2101_v24 = vpop.f32.mrb[8].mxu1 }
 0x255   :  { %v2102_v50 = vadd.f32 %v9303_v55, %v2101_v24  ;;  %v2103_v25 = vpop.f32.mrb[9].mxu1 }
 0x256   :  { %v2104_v26 = vpop.f32.mrb[10].mxu1 }
 0x257   :  { %v2105_v29 = vadd.f32 %v9303_v55, %v2104_v26  ;;  %v2106_v34 = vpop.f32.mrb[11].mxu1  ;;  %v2287_v57 = vmax.f32 %v2102_v50, 0.0 }
 0x259   :  { %v2288_v22 = vmax.f32 %v2105_v29, 0.0 }
 0x25b   :  { %v9327_v30 = vpack.c.bf16 %v2288_v22, %v2287_v57 }
 0x25c   :  { %v2109_v32 = vpop.f32.mrb[12].mxu1 }
 0x25d   :  { %v2110_v40 = vadd.f32 %v9303_v55, %v2109_v32  ;;  %v2111_v21 = vpop.f32.mrb[13].mxu1 }
 0x25e   :  { %v2112_v37 = vpop.f32.mrb[14].mxu1 }
 0x25f   :  { %v2113_v33 = vadd.f32 %v9303_v55, %v2112_v37  ;;  %v2114_v27 = vpop.f32.mrb[15].mxu1  ;;  %v2289_v47 = vmax.f32 %v2110_v40, 0.0 }
 0x261   :  { %v2290_v6 = vmax.f32 %v2113_v33, 0.0 }
 0x263   :  { %v9331_v4 = vpack.c.bf16 %v2290_v6, %v2289_v47 }
 0x264   :  { %v2117_v43 = vpop.f32.mrb[16].mxu1 }
 0x265   :  { %v2118_v18 = vadd.f32 %v9303_v55, %v2117_v43  ;;  %v2119_v49 = vpop.f32.mrb[17].mxu1 }
 0x266   :  { %v2120_v16 = vpop.f32.mrb[18].mxu1 }
 0x267   :  { %v2121_v42 = vadd.f32 %v9303_v55, %v2120_v16  ;;  %v2122_v35 = vpop.f32.mrb[19].mxu1  ;;  %v2291_v3 = vmax.f32 %v2118_v18, 0.0  ;;  %v8046_v16 = vld [vmem:[%s11817_s6 + $0x50] sm:$0xff]  }
 0x268   :  { %7575 = vmatprep.subr.bf16.mxu0 %v8046_v16 }
 0x269   :  { %v2292_v62 = vmax.f32 %v2121_v42, 0.0  ;;  %v8047_v42 = vld [vmem:[%s11817_s6 + $0x10] sm:$0xff]  }
 0x26a   :  { %7576 = vmatpush3.bf16.msra.mxu0 %v8047_v42  ;;  %v8058_v42 = vld [vmem:[%s11817_s6 + $0x78] sm:$0xff]  }
 0x26b   :  { %v9341_v52 = vpack.c.bf16 %v2292_v62, %v2291_v3 }
 0x26c   :  { %v2125_v31 = vpop.f32.mrb[20].mxu1 }
 0x26d   :  { %v2126_v53 = vadd.f32 %v9303_v55, %v2125_v31  ;;  %v2127_v15 = vpop.f32.mrb[21].mxu1 }
 0x26e   :  { %v2128_v60 = vpop.f32.mrb[22].mxu1 }
 0x26f   :  { %v2129_v20 = vadd.f32 %v9303_v55, %v2128_v60  ;;  %v2130_v54 = vpop.f32.mrb[23].mxu1  ;;  %v2293_v19 = vmax.f32 %v2126_v53, 0.0 }
 0x271   :  { %v2294_v41 = vmax.f32 %v2129_v20, 0.0 }
 0x273   :  { %v9345_v44 = vpack.c.bf16 %v2294_v41, %v2293_v19 }
 0x274   :  { %v2133_v5 = vpop.f32.mrb[24].mxu1 }
 0x275   :  { %v2134_v11 = vadd.f32 %v9303_v55, %v2133_v5  ;;  %v2135_v8 = vpop.f32.mrb[25].mxu1 }
 0x276   :  { %v2136_v13 = vpop.f32.mrb[26].mxu1  ;;  %v1708_v12 = vpop.permute.xlu0 %1707 }
 0x277   :  { %v2137_v56 = vadd.f32 %v9303_v55, %v2136_v13  ;;  %v1633_v24 = vpop.permute.xlu1 %1632  ;;  %v2138_v50 = vpop.f32.mrb[27].mxu1  ;;  %v1894_v25 = vsel %vm1719_vm4, %v9182_v38, %v1708_v12  ;;  %v2295_v29 = vmax.f32 %v2134_v11, 0.0 }
 0x278   :  { %2235 = vmatprep.mubr.bf16.mxu1 %v1894_v25  ;;  %v1798_v26 = vsel %vm1719_vm4, %v9077_v59, %v1633_v24 }
 0x279   :  { %v2296_v34 = vmax.f32 %v2137_v56, 0.0  ;;  %2236 = vmatmul.mubr.bf16.gmra.mrb[76].mxu1 %v1798_v26  ;;  %v8048_v26 = vld [vmem:[%s11817_s6 + $0x140] sm:$0xff]  }
 0x27a   :  { %7615 = vmatprep.subr.bf16.mxu1 %v8048_v26 }
 0x27b   :  { %v9353_v57 = vpack.c.bf16 %v2296_v34, %v2295_v29  ;;  %v8049_v29 = vld [vmem:[%s11817_s6 + $0x100] sm:$0xff]   ;;  %v8050_v34 = vld [vmem:[%s11817_s6 + $0x58] sm:$0xff]  }
 0x27c   :  { %v2141_v22 = vpop.f32.mrb[28].mxu1  ;;  %7616 = vmatpush3.bf16.msra.mxu1 %v8049_v29  ;;  %7577 = vmatprep.subr.bf16.mxu0 %v8050_v34 }
 0x27d   :  { %v2142_v32 = vadd.f32 %v9303_v55, %v2141_v22  ;;  %v2143_v40 = vpop.f32.mrb[29].mxu1 }
 0x27e   :  { %v2144_v21 = vpop.f32.mrb[30].mxu1  ;;  %v1710_v37 = vpop.permute.xlu0 %1709 }
 0x27f   :  { %v2145_v33 = vadd.f32 %v9303_v55, %v2144_v21  ;;  %v1635_v27 = vpop.permute.xlu1 %1634  ;;  %v2146_v47 = vpop.f32.mrb[31].mxu1  ;;  %v1898_v38 = vsel %vm1719_vm4, %v9196_v58, %v1710_v37  ;;  %v2297_v6 = vmax.f32 %v2142_v32, 0.0  ;;  %v8052_v32 = vld [vmem:[%s11817_s6 + $0x60] sm:$0xff]  }
 0x280   :  { %2243 = vmatprep.mubr.bf16.mxu1 %v1898_v38  ;;  %v1802_v59 = vsel %vm1719_vm4, %v9096_v17, %v1635_v27  ;;  %v8053_v37 = vld [vmem:[%s11817_s6 + $0x20] sm:$0xff]   ;;  %v8054_v47 = vld [vmem:[%s11817_s6 + $0x68] sm:$0xff]  }
 0x281   :  { %v2298_v43 = vmax.f32 %v2145_v33, 0.0  ;;  %2244 = vmatmul.mubr.bf16.gmra.mrb[80].mxu1 %v1802_v59  ;;  %v8055_v59 = vld [vmem:[%s11817_s6 + $0x28] sm:$0xff]  }
 0x283   :  { %v9361_v18 = vpack.c.bf16 %v2298_v43, %v2297_v6  ;;  %v8057_v43 = vld [vmem:[%s11817_s6 + $0x30] sm:$0xff]  }
 0x284   :  { %v2149_v49 = vpop.f32.mrb[32].mxu1 }
 0x285   :  { %v2150_v58 = vadd.f32 %v9303_v55, %v2149_v49  ;;  %v2151_v35 = vpop.f32.mrb[33].mxu1 }
 0x286   :  { %v2152_v1 = vpop.f32.mrb[34].mxu1 }
 0x287   :  { %v2153_v14 = vadd.f32 %v9303_v55, %v2152_v1  ;;  %v2154_v3 = vpop.f32.mrb[35].mxu1  ;;  %v2299_v62 = vmax.f32 %v2150_v58, 0.0  ;;  %v8059_v58 = vld [vmem:[%s11817_s6 + $0x38] sm:$0xff]  }
 0x288   :  { %v8061_v3 = vld [vmem:[%s11817_s6 + $0xc0] sm:$0xff]  }
 0x289   :  { %v2300_v31 = vmax.f32 %v2153_v14, 0.0 }
 0x28a   :  { %v1712_v53 = vpop.permute.xlu0 %1711 }
 0x28b   :  { %v9371_v15 = vpack.c.bf16 %v2300_v31, %v2299_v62  ;;  %v1637_v60 = vpop.permute.xlu1 %1636  ;;  %v1902_v20 = vsel %vm1719_vm4, %v9210_v48, %v1712_v53  ;;  %v8060_v62 = vld [vmem:[%s11817_s6 + $0x148] sm:$0xff]   ;;  %v2374_v53 = vrot.slane %v9331_v4, 4 }
 0x28c   :  { %v2157_v54 = vpop.f32.mrb[36].mxu1  ;;  %2251 = vmatprep.mubr.bf16.mxu1 %v1902_v20  ;;  %v1806_v19 = vsel %vm1719_vm4, %v9120_v61, %v1637_v60  ;;  %v8062_v31 = vld [vmem:[%s11817_s6 + $0x108] sm:$0xff]   ;;  %7617 = vmatprep.subr.bf16.mxu1 %v8060_v62  ;;  %v2378_v60 = vrot.slane %v9341_v52, 4  ;;  %v2388_v20 = vrot.slane %v9353_v57, 4 }
 0x28d   :  { %v2158_v41 = vadd.f32 %v9303_v55, %v2157_v54  ;;  %v2159_v5 = vpop.f32.mrb[37].mxu1  ;;  %2252 = vmatmul.mubr.bf16.gmra.mrb[84].mxu1 %v1806_v19  ;;  %v8075_v19 = vld [vmem:[%s11817_s6 + $0x150] sm:$0xff]  }
 0x28e   :  { %v2160_v11 = vpop.f32.mrb[38].mxu1  ;;  %7618 = vmatpush3.bf16.msra.mxu1 %v8062_v31 }
 0x28f   :  { %v2161_v8 = vadd.f32 %v9303_v55, %v2160_v11  ;;  %v2162_v13 = vpop.f32.mrb[39].mxu1  ;;  %v2301_v12 = vmax.f32 %v2158_v41, 0.0  ;;  %7619 = vmatprep.subr.bf16.mxu1 %v8075_v19  ;;  %v8097_v19 = vld [vmem:[%s11817_s6 + $0x128] sm:$0xff]  }
 0x291   :  { %v2302_v56 = vmax.f32 %v2161_v8, 0.0  ;;  %v2432_v8 = vrot.slane %v9371_v15, 4 }
 0x292   :  { %v1714_v24 = vpop.permute.xlu0 %1713 }
 0x293   :  { %v9379_v50 = vpack.c.bf16 %v2302_v56, %v2301_v12  ;;  %v1639_v25 = vpop.permute.xlu1 %1638  ;;  %v1906_v48 = vsel %vm1719_vm4, %v9228_v10, %v1714_v24  ;;  %v8051_v10 = vld [vmem:[%s11817_s6 + $0x18] sm:$0xff]  }
 0x294   :  { %2259 = vmatprep.mubr.bf16.mxu1 %v1906_v48  ;;  %v1810_v61 = vsel %vm1719_vm4, %v9144_v9, %v1639_v25  ;;  %v9397_v9 = vpop.f32.mrb[96].mxu0  ;;  %7578 = vmatpush3.bf16.msra.mxu0 %v8051_v10 }
 0x295   :  { %2260 = vmatmul.mubr.bf16.gmra.mrb[88].mxu1 %v1810_v61  ;;  %v7848_v22 = vpop.f32.mrb[97].mxu0  ;;  %7579 = vmatprep.subr.bf16.mxu0 %v8052_v32 }
 0x296   :  { %v605_v40 = vpop.f32.mrb[98].mxu0 }
 0x297   :  { %v7849_v33 = vpop.f32.mrb[99].mxu0  ;;  %v8080_v40 = vld [vmem:[%s11817_s6 + $0x158] sm:$0xff]  }
 0x298   :  { %7580 = vmatpush3.bf16.msra.mxu0 %v8053_v37 }
 0x299   :  { %7581 = vmatprep.subr.bf16.mxu0 %v8054_v47 }
 0x29a   :  { %v1716_v21 = vpop.permute.xlu0 %1715 }
 0x29b   :  { %v1910_v27 = vsel %vm1719_vm4, %v9245_v7, %v1716_v21  ;;  %v8056_v7 = vld [vmem:[%s11817_s6 + $0x70] sm:$0xff]   ;;  %v8081_v21 = vld [vmem:[%s11817_s6 + $0x118] sm:$0xff]  }
 0x29c   :  { %2267 = vmatprep.mubr.bf16.mxu1 %v1910_v27  ;;  %7582 = vmatpush3.bf16.msra.mxu0 %v8055_v59 }
 0x29d   :  { %7583 = vmatprep.subr.bf16.mxu0 %v8056_v7 }
 0x29e   :  { %v1641_v38 = vpop.permute.xlu0 %1640 }
 0x29f   :  { %v1814_v6 = vsel %vm1719_vm4, %v9168_v36, %v1641_v38  ;;  %v2368_v36 = vrot.slane %v9327_v30, 4 }
 0x2a0   :  { %2268 = vmatmul.mubr.bf16.gmra.mrb[92].mxu1 %v1814_v6  ;;  %7584 = vmatpush3.bf16.msra.mxu0 %v8057_v43 }
 0x2a1   :  { %7585 = vmatprep.subr.bf16.mxu0 %v8058_v42 }
 0x2a4   :  { %v1362_v49 = vpop.permute.xlu1 %1361  ;;  %7586 = vmatpush3.bf16.msra.mxu0 %v8059_v58 }
 0x2a5   :  { %v1370_v16 = vrot.slane %v1362_v49, %v8642_v46  ;;  %7593 = vmatprep.subr.bf16.mxu0 %v8061_v3 }
 0x2a7   :  { %v7301_v35 = vcombine.low %v1370_v16, %v1370_v16 }
 0x2a9   :  { %v1543_v1 = vmul.bf16 %v7301_v35, %v752_v51  ;;  %v1568_v14 = vmul.bf16 %v7301_v35, %v9096_v17  ;;  %v2358_v17 = vrot.slane %v9311_v63, 4  ;;  %v2364_v51 = vrot.slane %v9323_v28, 4 }
 0x2ab   :  { %1717 = vrot.lane.b32.xlu1 %v1568_v14, %s8394_s25  ;;  %1642 = vrot.lane.b32.xlu0 %v1543_v1, %s8394_s25 }
 0x2af   :  { %2369 = vrot.lane.b32.xlu1 %v2368_v36, %s8395_s24  ;;  %2359 = vrot.lane.b32.xlu0 %v2358_v17, %s8395_s24  ;;  %v8092_v36 = vld [vmem:[%s11817_s6 + $0x160] sm:$0xff]  }
 0x2b3   :  { %2372 = vrot.lane.b32.xlu1 %v9331_v4, %s8394_s25  ;;  %2362 = vrot.lane.b32.xlu0 %v9323_v28, %s8394_s25  ;;  %v2384_v28 = vrot.slane %v9345_v44, 4  ;;  %v2394_v4 = vrot.slane %v9361_v18, 4 }
 0x2b7   :  { %2375 = vrot.lane.b32.xlu1 %v2374_v53, %s8396_s26  ;;  %2365 = vrot.lane.b32.xlu0 %v2364_v51, %s8396_s26  ;;  %v8093_v51 = vld [vmem:[%s11817_s6 + $0x120] sm:$0xff]  }
 0x2bb   :  { %2389 = vrot.lane.b32.xlu1 %v2388_v20, %s8395_s24  ;;  %2379 = vrot.lane.b32.xlu0 %v2378_v60, %s8395_s24 }
 0x2bf   :  { %2392 = vrot.lane.b32.xlu1 %v9361_v18, %s8394_s25  ;;  %2382 = vrot.lane.b32.xlu0 %v9345_v44, %s8394_s25  ;;  %v8077_v18 = vld [vmem:[%s11817_s6 + $0x110] sm:$0xff]  }
 0x2c0   :  { %7620 = vmatpush3.bf16.msra.mxu1 %v8077_v18 }
 0x2c1   :  { %7621 = vmatprep.subr.bf16.mxu1 %v8080_v40 }
 0x2c2   :  { %v2165_v54 = vpop.f32.mrb[40].mxu1 }
 0x2c3   :  { %v2166_v41 = vadd.f32 %v9303_v55, %v2165_v54  ;;  %2395 = vrot.lane.b32.xlu1 %v2394_v4, %s8396_s26  ;;  %2385 = vrot.lane.b32.xlu0 %v2384_v28, %s8396_s26  ;;  %v2167_v5 = vpop.f32.mrb[41].mxu1  ;;  %v8096_v4 = vld [vmem:[%s11817_s6 + $0x168] sm:$0xff]  }
 0x2c4   :  { %v2168_v11 = vpop.f32.mrb[42].mxu1  ;;  %7622 = vmatpush3.bf16.msra.mxu1 %v8081_v21 }
 0x2c5   :  { %v2169_v44 = vadd.f32 %v9303_v55, %v2168_v11  ;;  %v2170_v13 = vpop.f32.mrb[43].mxu1  ;;  %v2303_v12 = vmax.f32 %v2166_v41, 0.0  ;;  %7623 = vmatprep.subr.bf16.mxu1 %v8092_v36 }
 0x2c6   :  { %v8101_v13 = vld [vmem:[%s11817_s6 + $0x130] sm:$0xff]  }
 0x2c7   :  { %v2304_v56 = vmax.f32 %v2169_v44, 0.0  ;;  %2433 = vrot.lane.b32.xlu1 %v2432_v8, %s8395_s24  ;;  %v8100_v44 = vld [vmem:[%s11817_s6 + $0x170] sm:$0xff]  }
 0x2c8   :  { %7624 = vmatpush3.bf16.msra.mxu1 %v8093_v51 }
 0x2c9   :  { %v9476_v24 = vpack.c.bf16 %v2304_v56, %v2303_v12  ;;  %7625 = vmatprep.subr.bf16.mxu1 %v8096_v4 }
 0x2cb   :  { %v2442_v25 = vrot.slane %v9476_v24, 4  ;;  %2436 = vrot.lane.b32.xlu1 %v9379_v50, %s8394_s25 }
 0x2cc   :  { %7626 = vmatpush3.bf16.msra.mxu1 %v8097_v19 }
 0x2cd   :  { %2443 = vrot.lane.b32.xlu0 %v2442_v25, %s8395_s24  ;;  %7627 = vmatprep.subr.bf16.mxu1 %v8100_v44 }
 0x2d0   :  { %7628 = vmatpush3.bf16.msra.mxu1 %v8101_v13 }
 0x2d7   :  { %v2173_v48 = vpop.f32.mrb[44].mxu1 }
 0x2d8   :  { %v2174_v61 = vadd.f32 %v9303_v55, %v2173_v48  ;;  %v2175_v26 = vpop.f32.mrb[45].mxu1 }
 0x2d9   :  { %v2176_v29 = vpop.f32.mrb[46].mxu1  ;;  %v8105_v26 = vld [vmem:[%s11817_s6 + $0x138] sm:$0xff]  }
 0x2da   :  { %v2177_v34 = vadd.f32 %v9303_v55, %v2176_v29  ;;  %v2178_v10 = vpop.f32.mrb[47].mxu1  ;;  %v2305_v22 = vmax.f32 %v2174_v61, 0.0  ;;  %v8104_v61 = vld [vmem:[%s11817_s6 + $0x178] sm:$0xff]  }
 0x2db   :  { %7629 = vmatprep.subr.bf16.mxu1 %v8104_v61 }
 0x2dc   :  { %v2306_v32 = vmax.f32 %v2177_v34, 0.0  ;;  %7630 = vmatpush3.bf16.msra.mxu1 %v8105_v26 }
 0x2de   :  { %v2343_v37 = vpack.c.bf16 %v2306_v32, %v2305_v22 }
 0x2df   :  { %v2181_v33 = vpop.f32.mrb[48].mxu1 }
 0x2e0   :  { %v2182_v27 = vadd.f32 %v9303_v55, %v2181_v33  ;;  %v2183_v47 = vpop.f32.mrb[49].mxu1  ;;  %2446 = vrot.lane.b32.xlu0 %v2343_v37, %s8394_s25  ;;  %v2448_v59 = vrot.slane %v2343_v37, 4 }
 0x2e1   :  { %v2184_v38 = vpop.f32.mrb[50].mxu1 }
 0x2e2   :  { %v2185_v6 = vadd.f32 %v9303_v55, %v2184_v38  ;;  %v2186_v7 = vpop.f32.mrb[51].mxu1  ;;  %v2307_v43 = vmax.f32 %v2182_v27, 0.0 }
 0x2e4   :  { %v2308_v49 = vmax.f32 %v2185_v6, 0.0  ;;  %2449 = vrot.lane.b32.xlu0 %v2448_v59, %s8396_s26 }
 0x2e6   :  { %v9494_v16 = vpack.c.bf16 %v2308_v49, %v2307_v43  ;;  %v2438_v49 = vrot.slane %v9379_v50, 4 }
 0x2e8   :  { %v2452_v42 = vrot.slane %v9494_v16, 4 }
 0x2ea   :  { %2453 = vrot.lane.b32.xlu1 %v2452_v42, %s8395_s24 }
 0x2eb   :  { %v2189_v58 = vpop.f32.mrb[52].mxu1 }
 0x2ec   :  { %v2190_v35 = vadd.f32 %v9303_v55, %v2189_v58  ;;  %v2191_v1 = vpop.f32.mrb[53].mxu1 }
 0x2ed   :  { %v2192_v14 = vpop.f32.mrb[54].mxu1 }
 0x2ee   :  { %v2193_v3 = vadd.f32 %v9303_v55, %v2192_v14  ;;  %v2194_v62 = vpop.f32.mrb[55].mxu1  ;;  %v2309_v31 = vmax.f32 %v2190_v35, 0.0 }
 0x2ef   :  { %v9547_v62 = vld [vmem:[%s11816_s5] ss:$0 sm:$0xff] }
 0x2f0   :  { %v2310_v17 = vmax.f32 %v2193_v3, 0.0 }
 0x2f2   :  { %v2345_v53 = vpack.c.bf16 %v2310_v17, %v2309_v31 }
 0x2f3   :  { %v2197_v60 = vpop.f32.mrb[56].mxu1 }
 0x2f4   :  { %v2198_v20 = vadd.f32 %v9303_v55, %v2197_v60  ;;  %v2199_v28 = vpop.f32.mrb[57].mxu1  ;;  %2456 = vrot.lane.b32.xlu1 %v2345_v53, %s8394_s25  ;;  %v2458_v22 = vrot.slane %v2345_v53, 4 }
 0x2f5   :  { %v2200_v54 = vpop.f32.mrb[58].mxu1 }
 0x2f6   :  { %v2201_v41 = vadd.f32 %v9303_v55, %v2200_v54  ;;  %v2202_v5 = vpop.f32.mrb[59].mxu1  ;;  %v2311_v11 = vmax.f32 %v2198_v20, 0.0 }
 0x2f8   :  { %v2312_v8 = vmax.f32 %v2201_v41, 0.0 }
 0x2fa   :  { %v9521_v18 = vpack.c.bf16 %v2312_v8, %v2311_v11 }
 0x2fb   :  { %v2205_v12 = vpop.f32.mrb[60].mxu1 }
 0x2fc   :  { %v2462_v56 = vrot.slane %v9521_v18, 4  ;;  %v2206_v25 = vadd.f32 %v9303_v55, %v2205_v12  ;;  %v2207_v48 = vpop.f32.mrb[61].mxu1 }
 0x2fd   :  { %v2208_v29 = vpop.f32.mrb[62].mxu1 }
 0x2fe   :  { %v2209_v34 = vadd.f32 %v9303_v55, %v2208_v29  ;;  %v2210_v10 = vpop.f32.mrb[63].mxu1  ;;  %2463 = vrot.lane.b32.xlu1 %v2462_v56, %s8395_s24  ;;  %v2313_v32 = vmax.f32 %v2206_v25, 0.0 }
 0x300   :  { %v2314_v40 = vmax.f32 %v2209_v34, 0.0 }
 0x302   :  { %v2347_v21 = vpack.c.bf16 %v2314_v40, %v2313_v32  ;;  %2459 = vrot.lane.b32.xlu1 %v2458_v22, %s8396_s26 }
 0x303   :  { %v2213_v37 = vpop.f32.mrb[64].mxu1 }
 0x304   :  { %v2214_v33 = vadd.f32 %v9303_v55, %v2213_v37  ;;  %v2215_v27 = vpop.f32.mrb[65].mxu1  ;;  %2466 = vrot.lane.b32.xlu0 %v2347_v21, %s8394_s25  ;;  %v2468_v38 = vrot.slane %v2347_v21, 4  ;;  %v8063_v21 = vld [vmem:[%s11817_s6 + $0x80] sm:$0xff]  }
 0x305   :  { %v2216_v47 = vpop.f32.mrb[66].mxu1  ;;  %v8065_v27 = vld [vmem:[%s11817_s6 + $0x88] sm:$0xff]  }
 0x306   :  { %v2217_v59 = vadd.f32 %v9303_v55, %v2216_v47  ;;  %v2218_v6 = vpop.f32.mrb[67].mxu1  ;;  %v2315_v7 = vmax.f32 %v2214_v33, 0.0  ;;  %v8066_v47 = vld [vmem:[%s11817_s6 + $0xd0] sm:$0xff]  }
 0x307   :  { %v8068_v6 = vld [vmem:[%s11817_s6 + $0xd8] sm:$0xff]  }
 0x308   :  { %v2316_v43 = vmax.f32 %v2217_v59, 0.0  ;;  %2469 = vrot.lane.b32.xlu0 %v2468_v38, %s8396_s26  ;;  %v8067_v59 = vld [vmem:[%s11817_s6 + $0x90] sm:$0xff]  }
 0x30a   :  { %v9539_v42 = vpack.c.bf16 %v2316_v43, %v2315_v7 }
 0x30b   :  { %v2221_v58 = vpop.f32.mrb[68].mxu1 }
 0x30c   :  { %v2504_v35 = vrot.slane %v9539_v42, 4  ;;  %v2222_v1 = vadd.f32 %v9303_v55, %v2221_v58  ;;  %v2223_v14 = vpop.f32.mrb[69].mxu1  ;;  %2439 = vrot.lane.b32.xlu0 %v2438_v49, %s8396_s26  ;;  %v8339_v55 = vld [vmem:[%s11815_s3] ss:$0 sm:$0xff]  ;;  %v8069_v58 = vld [vmem:[%s11817_s6 + $0x98] sm:$0xff]  }
 0x30d   :  { %v2224_v3 = vpop.f32.mrb[70].mxu1  ;;  %v603_v53 = vadd.f32 %v8339_v55, %v9397_v9  ;;  %v8072_v14 = vld [vmem:[%s11817_s6 + $0xe8] sm:$0xff]   ;;  %v8078_v55 = vld [vmem:[%s11817_s6 + $0xf8] sm:$0xff]  }
 0x30e   :  { %v2225_v31 = vadd.f32 %v9547_v62, %v2224_v3  ;;  %v2226_v17 = vpop.f32.mrb[71].mxu1  ;;  %2505 = vrot.lane.b32.xlu1 %v2504_v35, %s8395_s24  ;;  %v2317_v50 = vmax.f32 %v2222_v1, 0.0  ;;  %v8070_v1 = vld [vmem:[%s11817_s6 + $0xe0] sm:$0xff]  }
 0x30f   :  { %v656_v19 = vmax.f32 %v603_v53, 0.0  ;;  %v8074_v17 = vld [vmem:[%s11817_s6 + $0xf0] sm:$0xff]   ;;  %v8079_v53 = vld [vmem:[%s11817_s6 + $0xb8] sm:$0xff]  }
 0x310   :  { %v2318_v36 = vmax.f32 %v2225_v31, 0.0  ;;  %v8073_v31 = vld [vmem:[%s11817_s6 + $0xa8] sm:$0xff]  }
 0x311   :  { %v681_v44 = vpack.c.bf16 %v656_v19, %v656_v19  ;;  %v8084_v19 = vld [vmem:[%s11817_s6 + $0x1c8] sm:$0xff]  }
 0x312   :  { %v9551_v51 = vpack.c.bf16 %v2318_v36, %v2317_v50  ;;  %v8076_v50 = vld [vmem:[%s11817_s6 + $0xb0] sm:$0xff]  }
 0x313   :  { %v2229_v60 = vpop.f32.mrb[72].mxu1 }
 0x314   :  { %v2230_v20 = vadd.f32 %v9547_v62, %v2229_v60  ;;  %v2231_v28 = vpop.f32.mrb[73].mxu1  ;;  %2508 = vrot.lane.b32.xlu1 %v9551_v51, %s8394_s25  ;;  %v8082_v60 = vld [vmem:[%s11817_s6 + $0x1c0] sm:$0xff]  }
 0x315   :  { %v2232_v4 = vpop.f32.mrb[74].mxu1 }
 0x316   :  { %v2233_v54 = vadd.f32 %v9547_v62, %v2232_v4  ;;  %v2234_v41 = vpop.f32.mrb[75].mxu1  ;;  %v2319_v5 = vmax.f32 %v2230_v20, 0.0  ;;  %v8083_v4 = vld [vmem:[%s11817_s6 + $0x180] sm:$0xff]  }
 0x318   :  { %v2320_v11 = vmax.f32 %v2233_v54, 0.0 }
 0x31a   :  { %v9561_v8 = vpack.c.bf16 %v2320_v11, %v2319_v5 }
 0x31c   :  { %v2514_v13 = vrot.slane %v9561_v8, 4 }
 0x31d   :  { %v1718_v9 = vpop.permute.xlu1 %1717  ;;  %v1643_v12 = vpop.permute.xlu0 %1642 }
 0x31e   :  { %2515 = vrot.lane.b32.xlu0 %v2514_v13, %s8395_s24  ;;  %v1914_v56 = vsel %vm1719_vm4, %v9238_v39, %v1718_v9  ;;  %v1818_v25 = vsel %vm1719_vm4, %v681_v44, %v1643_v12  ;;  %v8086_v12 = vld [vmem:[%s11817_s6 + $0x1d0] sm:$0xff]  }
 0x31f   :  { %2275 = vmatprep.mubr.bf16.mxu1 %v1914_v56 }
 0x320   :  { %2276 = vmatmul.mubr.bf16.gmra.mrb[96].mxu1 %v1818_v25 }
 0x321   :  { %v2370_v48 = vpop.permute.xlu1 %2369  ;;  %v2360_v61 = vpop.permute.xlu0 %2359 }
 0x322   :  { %v2409_v34 = vsel %vm2397_vm6, %v9327_v30, %v2370_v48  ;;  %v2400_v10 = vsel %vm2397_vm6, %v9311_v63, %v2360_v61  ;;  %v8064_v30 = vld [vmem:[%s11817_s6 + $0xc8] sm:$0xff]  }
 0x325   :  { %v2373_v26 = vpop.permute.xlu1 %2372  ;;  %v2363_v29 = vpop.permute.xlu0 %2362 }
 0x326   :  { %v2411_v22 = vsel %vm1719_vm4, %v2409_v34, %v2373_v26  ;;  %v2402_v39 = vsel %vm1719_vm4, %v2400_v10, %v2363_v29  ;;  %v8087_v26 = vld [vmem:[%s11817_s6 + $0x190] sm:$0xff]   ;;  %v8088_v34 = vld [vmem:[%s11817_s6 + $0x1d8] sm:$0xff]   ;;  %v8108_v10 = vld [vmem:[%s11817_s6 + $0x240] sm:$0xff]  }
 0x327   :  { %7659 = vmatprep.subr.bf16.mxu1 %v8108_v10 }
 0x329   :  { %v2376_v32 = vpop.permute.xlu1 %2375  ;;  %v2366_v40 = vpop.permute.xlu0 %2365 }
 0x32a   :  { %v2405_v37 = vsel %vm2403_vm7, %v2402_v39, %v2366_v40  ;;  %v2413_v33 = vsel %vm2403_vm7, %v2411_v22, %v2376_v32 }
 0x32b   :  { %3401 = vmatprep.mubr.bf16.mxu0 %v2413_v33 }
 0x32c   :  { %3402 = vmatmul.mubr.bf16.vlgmr.msra.gmra.mrb[100].mxu0 %v2405_v37  ;;  %v8089_v37 = vld [vmem:[%s11817_s6 + $0x198] sm:$0xff]  }
 0x32d   :  { %7594 = vmatpush3.bf16.msra.mxu0 %v8063_v21  ;;  %v2390_v63 = vpop.permute.xlu1 %2389  ;;  %v2380_v3 = vpop.permute.xlu0 %2379 }
 0x32e   :  { %7595 = vmatprep.subr.bf16.mxu0 %v8064_v30  ;;  %v2425_v7 = vsel %vm2397_vm6, %v9353_v57, %v2390_v63  ;;  %v8071_v57 = vld [vmem:[%s11817_s6 + $0xa0] sm:$0xff]   ;;  %v2417_v28 = vsel %vm2397_vm6, %v9341_v52, %v2380_v3  ;;  %v8085_v52 = vld [vmem:[%s11817_s6 + $0x188] sm:$0xff]  }
 0x331   :  { %7596 = vmatpush3.bf16.msra.mxu0 %v8065_v27  ;;  %v2393_v38 = vpop.permute.xlu1 %2392  ;;  %v2383_v36 = vpop.permute.xlu0 %2382  ;;  %v8090_v27 = vld [vmem:[%s11817_s6 + $0x1e0] sm:$0xff]  }
 0x332   :  { %7597 = vmatprep.subr.bf16.mxu0 %v8066_v47  ;;  %v2427_v43 = vsel %vm1719_vm4, %v2425_v7, %v2393_v38  ;;  %v2419_v54 = vsel %vm1719_vm4, %v2417_v28, %v2383_v36 }
 0x335   :  { %7598 = vmatpush3.bf16.msra.mxu0 %v8067_v59  ;;  %v2396_v49 = vpop.permute.xlu1 %2395  ;;  %v2386_v20 = vpop.permute.xlu0 %2385 }
 0x336   :  { %7599 = vmatprep.subr.bf16.mxu0 %v8068_v6  ;;  %v2429_v35 = vsel %vm2403_vm7, %v2427_v43, %v2396_v49  ;;  %v2421_v41 = vsel %vm2403_vm7, %v2419_v54, %v2386_v20  ;;  %v8091_v43 = vld [vmem:[%s11817_s6 + $0x1a0] sm:$0xff]   ;;  %v8094_v49 = vld [vmem:[%s11817_s6 + $0x1e8] sm:$0xff]  }
 0x337   :  { %3441 = vmatprep.mubr.bf16.mxu0 %v2429_v35  ;;  %v8106_v54 = vld [vmem:[%s11817_s6 + $0x2c0] sm:$0xff]  }
 0x339   :  { %7600 = vmatpush3.bf16.msra.mxu0 %v8069_v58  ;;  %v2434_v3 = vpop.permute.xlu1 %2433 }
 0x33a   :  { %7601 = vmatprep.subr.bf16.mxu0 %v8070_v1  ;;  %v8095_v1 = vld [vmem:[%s11817_s6 + $0x1a8] sm:$0xff]  }
 0x33d   :  { %7602 = vmatpush3.bf16.msra.mxu0 %v8071_v57  ;;  %v8098_v57 = vld [vmem:[%s11817_s6 + $0x1f0] sm:$0xff]  }
 0x33e   :  { %7603 = vmatprep.subr.bf16.mxu0 %v8072_v14 }
 0x33f   :  { %v2444_v13 = vpop.permute.xlu0 %2443 }
 0x340   :  { %v2481_v32 = vsel %vm2397_vm6, %v9476_v24, %v2444_v13 }
 0x341   :  { %7604 = vmatpush3.bf16.msra.mxu0 %v8073_v31 }
 0x342   :  { %7605 = vmatprep.subr.bf16.mxu0 %v8074_v17 }
 0x345   :  { %7606 = vmatpush3.bf16.msra.mxu0 %v8076_v50  ;;  %v8099_v50 = vld [vmem:[%s11817_s6 + $0x1b0] sm:$0xff]  }
 0x346   :  { %7607 = vmatprep.subr.bf16.mxu0 %v8078_v55  ;;  %v8102_v55 = vld [vmem:[%s11817_s6 + $0x1f8] sm:$0xff]  }
 0x349   :  { %7608 = vmatpush3.bf16.msra.mxu0 %v8079_v53 }
 0x34a   :  { %7637 = vmatprep.subr.bf16.mxu0 %v8082_v60 }
 0x34c   :  { %3442 = vmatmul.mubr.bf16.vlgmr.msra.gmra.mrb[104].mxu0 %v2421_v41  ;;  %v2237_v5 = vpop.f32.mrb[76].mxu1 }
 0x34d   :  { %v2238_v11 = vadd.f32 %v9547_v62, %v2237_v5  ;;  %v2239_v44 = vpop.f32.mrb[77].mxu1  ;;  %7638 = vmatpush3.bf16.msra.mxu0 %v8083_v4  ;;  %v8103_v4 = vld [vmem:[%s11817_s6 + $0x1b8] sm:$0xff]  }
 0x34e   :  { %v2240_v9 = vpop.f32.mrb[78].mxu1  ;;  %7639 = vmatprep.subr.bf16.mxu0 %v8084_v19  ;;  %v2437_v19 = vpop.permute.xlu1 %2436 }
 0x34f   :  { %v2241_v56 = vadd.f32 %v9547_v62, %v2240_v9  ;;  %v2242_v25 = vpop.f32.mrb[79].mxu1  ;;  %v2321_v48 = vmax.f32 %v2238_v11, 0.0 }
 0x351   :  { %v2322_v61 = vmax.f32 %v2241_v56, 0.0  ;;  %7640 = vmatpush3.bf16.msra.mxu0 %v8085_v52 }
 0x352   :  { %v2447_v29 = vpop.permute.xlu0 %2446  ;;  %7641 = vmatprep.subr.bf16.mxu0 %v8086_v12 }
 0x353   :  { %v2351_v22 = vpack.c.bf16 %v2322_v61, %v2321_v48  ;;  %v2483_v33 = vsel %vm1719_vm4, %v2481_v32, %v2447_v29 }
 0x354   :  { %v2245_v39 = vpop.f32.mrb[80].mxu1 }
 0x355   :  { %v2246_v40 = vadd.f32 %v9547_v62, %v2245_v39  ;;  %v2247_v21 = vpop.f32.mrb[81].mxu1  ;;  %2518 = vrot.lane.b32.xlu0 %v2351_v22, %s8394_s25  ;;  %7642 = vmatpush3.bf16.msra.mxu0 %v8087_v26  ;;  %v2520_v24 = vrot.slane %v2351_v22, 4 }
 0x356   :  { %v2248_v30 = vpop.f32.mrb[82].mxu1  ;;  %v2450_v63 = vpop.permute.xlu0 %2449  ;;  %7643 = vmatprep.subr.bf16.mxu0 %v8088_v34 }
 0x357   :  { %v2249_v47 = vadd.f32 %v9547_v62, %v2248_v30  ;;  %v2250_v38 = vpop.f32.mrb[83].mxu1  ;;  %v2485_v59 = vsel %vm2403_vm7, %v2483_v33, %v2450_v63  ;;  %v2323_v6 = vmax.f32 %v2246_v40, 0.0 }
 0x358   :  { %3481 = vmatprep.mubr.bf16.mxu1 %v2485_v59 }
 0x359   :  { %v2324_v7 = vmax.f32 %v2249_v47, 0.0  ;;  %2521 = vrot.lane.b32.xlu0 %v2520_v24, %s8396_s26  ;;  %7644 = vmatpush3.bf16.msra.mxu0 %v8089_v37 }
 0x35a   :  { %7645 = vmatprep.subr.bf16.mxu0 %v8090_v27 }
 0x35b   :  { %v9675_v58 = vpack.c.bf16 %v2324_v7, %v2323_v6  ;;  %v8107_v6 = vld [vmem:[%s11817_s6 + $0x280] sm:$0xff]  }
 0x35c   :  { %v2454_v13 = vpop.permute.xlu1 %2453 }
 0x35d   :  { %v2524_v35 = vrot.slane %v9675_v58, 4  ;;  %7646 = vmatpush3.bf16.msra.mxu0 %v8091_v43  ;;  %v2489_v24 = vsel %vm2397_vm6, %v9494_v16, %v2454_v13  ;;  %v2473_v16 = vsel %vm2397_vm6, %v9371_v15, %v2434_v3  ;;  %v8114_v3 = vld [vmem:[%s11817_s6 + $0x2d0] sm:$0xff]  }
 0x35e   :  { %7647 = vmatprep.subr.bf16.mxu0 %v8094_v49  ;;  %v8130_v13 = vld [vmem:[%s11817_s6 + $0x2f0] sm:$0xff]  }
 0x35f   :  { %2525 = vrot.lane.b32.xlu1 %v2524_v35, %s8395_s24  ;;  %v8109_v35 = vld [vmem:[%s11817_s6 + $0x200] sm:$0xff]  }
 0x360   :  { %v2253_v14 = vpop.f32.mrb[84].mxu1 }
 0x361   :  { %v2254_v31 = vadd.f32 %v9547_v62, %v2253_v14  ;;  %v2255_v17 = vpop.f32.mrb[85].mxu1  ;;  %7648 = vmatpush3.bf16.msra.mxu0 %v8095_v1  ;;  %v2475_v1 = vsel %vm1719_vm4, %v2473_v16, %v2437_v19  ;;  %v8123_v19 = vld [vmem:[%s11817_s6 + $0x2a0] sm:$0xff]  }
 0x362   :  { %v2256_v36 = vpop.f32.mrb[86].mxu1  ;;  %7649 = vmatprep.subr.bf16.mxu0 %v8098_v57  ;;  %v8112_v17 = vld [vmem:[%s11817_s6 + $0x248] sm:$0xff]  }
 0x363   :  { %v2257_v53 = vadd.f32 %v9547_v62, %v2256_v36  ;;  %v2258_v60 = vpop.f32.mrb[87].mxu1  ;;  %v2325_v20 = vmax.f32 %v2254_v31, 0.0  ;;  %v8111_v31 = vld [vmem:[%s11817_s6 + $0x288] sm:$0xff]   ;;  %v2510_v36 = vrot.slane %v9551_v51, 4  ;;  %v8117_v51 = vld [vmem:[%s11817_s6 + $0x210] sm:$0xff]  }
 0x364   :  { %v8118_v60 = vld [vmem:[%s11817_s6 + $0x2d8] sm:$0xff]  }
 0x365   :  { %v2326_v28 = vmax.f32 %v2257_v53, 0.0  ;;  %7650 = vmatpush3.bf16.msra.mxu0 %v8099_v50  ;;  %v8113_v50 = vld [vmem:[%s11817_s6 + $0x208] sm:$0xff]   ;;  %v8116_v53 = vld [vmem:[%s11817_s6 + $0x250] sm:$0xff]  }
 0x366   :  { %7651 = vmatprep.subr.bf16.mxu0 %v8102_v55  ;;  %v2457_v48 = vpop.permute.xlu1 %2456  ;;  %v8115_v55 = vld [vmem:[%s11817_s6 + $0x290] sm:$0xff]  }
 0x367   :  { %v2353_v41 = vpack.c.bf16 %v2326_v28, %v2325_v20  ;;  %v2491_v7 = vsel %vm1719_vm4, %v2489_v24, %v2457_v48  ;;  %v8119_v20 = vld [vmem:[%s11817_s6 + $0x298] sm:$0xff]   ;;  %v8133_v48 = vld [vmem:[%s11817_s6 + $0x230] sm:$0xff]  }
 0x368   :  { %v2261_v5 = vpop.f32.mrb[88].mxu1  ;;  %v8120_v28 = vld [vmem:[%s11817_s6 + $0x258] sm:$0xff]  }
 0x369   :  { %v2262_v11 = vadd.f32 %v9547_v62, %v2261_v5  ;;  %v2263_v44 = vpop.f32.mrb[89].mxu1  ;;  %2528 = vrot.lane.b32.xlu1 %v2353_v41, %s8394_s25  ;;  %7652 = vmatpush3.bf16.msra.mxu0 %v8103_v4  ;;  %v2530_v39 = vrot.slane %v2353_v41, 4  ;;  %v8122_v4 = vld [vmem:[%s11817_s6 + $0x2e0] sm:$0xff]   ;;  %v8126_v5 = vld [vmem:[%s11817_s6 + $0x2e8] sm:$0xff]  }
 0x36a   :  { %v2264_v52 = vpop.f32.mrb[90].mxu1  ;;  %7681 = vmatprep.subr.bf16.mxu0 %v8106_v54  ;;  %v8121_v54 = vld [vmem:[%s11817_s6 + $0x218] sm:$0xff]   ;;  %v8124_v41 = vld [vmem:[%s11817_s6 + $0x260] sm:$0xff]   ;;  %v8127_v44 = vld [vmem:[%s11817_s6 + $0x2a8] sm:$0xff]  }
 0x36b   :  { %v2265_v9 = vadd.f32 %v9547_v62, %v2264_v52  ;;  %v2266_v12 = vpop.f32.mrb[91].mxu1  ;;  %v2327_v56 = vmax.f32 %v2262_v11, 0.0  ;;  %v8125_v11 = vld [vmem:[%s11817_s6 + $0x220] sm:$0xff]   ;;  %v8128_v52 = vld [vmem:[%s11817_s6 + $0x268] sm:$0xff]  }
 0x36c   :  { %v8131_v12 = vld [vmem:[%s11817_s6 + $0x2b0] sm:$0xff]  }
 0x36d   :  { %v2328_v25 = vmax.f32 %v2265_v9, 0.0  ;;  %v8129_v9 = vld [vmem:[%s11817_s6 + $0x228] sm:$0xff]  }
 0x36f   :  { %v9702_v61 = vpack.c.bf16 %v2328_v25, %v2327_v56  ;;  %v8132_v56 = vld [vmem:[%s11817_s6 + $0x270] sm:$0xff]   ;;  %v8134_v25 = vld [vmem:[%s11817_s6 + $0x2f8] sm:$0xff]  }
 0x370   :  { %v2464_v29 = vpop.permute.xlu1 %2463 }
 0x371   :  { %v2534_v26 = vrot.slane %v9702_v61, 4  ;;  %v2497_v63 = vsel %vm2397_vm6, %v9521_v18, %v2464_v29  ;;  %v8110_v18 = vld [vmem:[%s11817_s6 + $0x2c8] sm:$0xff]   ;;  %v8136_v29 = vld [vmem:[%s11817_s6 + $0x278] sm:$0xff]  }
 0x373   :  { %2535 = vrot.lane.b32.xlu1 %v2534_v26, %s8395_s24  ;;  %v2269_v34 = vpop.f32.mrb[92].mxu1  ;;  %v8135_v26 = vld [vmem:[%s11817_s6 + $0x2b8] sm:$0xff]  }
 0x374   :  { %v2270_v10 = vadd.f32 %v9547_v62, %v2269_v34  ;;  %v2271_v22 = vpop.f32.mrb[93].mxu1  ;;  %v2460_v27 = vpop.permute.xlu1 %2459  ;;  %v8137_v34 = vld [vmem:[%s11817_s6 + $0x238] sm:$0xff]  }
 0x375   :  { %v2272_v32 = vpop.f32.mrb[94].mxu1  ;;  %v2493_v49 = vsel %vm2403_vm7, %v2491_v7, %v2460_v27  ;;  %v8138_v7 = vld [vmem:[%s11817_s6 + $0x300] sm:$0xff]  }
 0x376   :  { %v2273_v40 = vadd.f32 %v9547_v62, %v2272_v32  ;;  %v2274_v21 = vpop.f32.mrb[95].mxu1  ;;  %v2467_v37 = vpop.permute.xlu0 %2466  ;;  %v2329_v33 = vmax.f32 %v2270_v10, 0.0 }
 0x377   :  { %2531 = vrot.lane.b32.xlu1 %v2530_v39, %s8396_s26  ;;  %v2499_v38 = vsel %vm1719_vm4, %v2497_v63, %v2467_v37 }
 0x378   :  { %v2330_v30 = vmax.f32 %v2273_v40, 0.0 }
 0x37a   :  { %v2355_v47 = vpack.c.bf16 %v2330_v30, %v2329_v33  ;;  %v2470_v59 = vpop.permute.xlu0 %2469 }
 0x37b   :  { %v2501_v43 = vsel %vm2403_vm7, %v2499_v38, %v2470_v59 }
 0x37c   :  { %2538 = vrot.lane.b32.xlu0 %v2355_v47, %s8394_s25  ;;  %3521 = vmatprep.mubr.bf16.mxu0 %v2501_v43  ;;  %v2540_v57 = vrot.slane %v2355_v47, 4 }
 0x37d   :  { %3522 = vmatmul.mubr.bf16.vlgmr.msra.gmra.mrb[108].mxu0 %v2493_v49 }
 0x37e   :  { %v2440_v14 = vpop.permute.xlu0 %2439  ;;  %7682 = vmatpush3.bf16.msra.mxu0 %v8107_v6 }
 0x37f   :  { %v2477_v15 = vsel %vm2403_vm7, %v2475_v1, %v2440_v14  ;;  %7683 = vmatprep.subr.bf16.mxu0 %v8110_v18 }
 0x380   :  { %2541 = vrot.lane.b32.xlu0 %v2540_v57, %s8396_s26  ;;  %3482 = vmatmul.mubr.bf16.vlgmr.msra.gmra.mrb[100].mxu1 %v2477_v15  ;;  %v2506_v37 = vpop.permute.xlu1 %2505 }
 0x381   :  { %7660 = vmatpush3.bf16.msra.mxu1 %v8109_v35 }
 0x382   :  { %7684 = vmatpush3.bf16.msra.mxu0 %v8111_v31  ;;  %7661 = vmatprep.subr.bf16.mxu1 %v8112_v17  ;;  %v8139_v17 = vld [vmem:[%s11817_s6 + $0x308] sm:$0xff]  }
 0x383   :  { %7685 = vmatprep.subr.bf16.mxu0 %v8114_v3 }
 0x384   :  { %2511 = vrot.lane.b32.xlu0 %v2510_v36, %s8396_s26 }
 0x385   :  { %7662 = vmatpush3.bf16.msra.mxu1 %v8113_v50 }
 0x386   :  { %7686 = vmatpush3.bf16.msra.mxu0 %v8115_v55  ;;  %7663 = vmatprep.subr.bf16.mxu1 %v8116_v53  ;;  %v2509_v33 = vpop.permute.xlu1 %2508 }
 0x387   :  { %7687 = vmatprep.subr.bf16.mxu0 %v8118_v60  ;;  %v7325_v60 = vld [vmem:[%s11818_s7] ss:$0 sm:$0xff] }
 0x389   :  { %7664 = vmatpush3.bf16.msra.mxu1 %v8117_v51 }
 0x38a   :  { %7688 = vmatpush3.bf16.msra.mxu0 %v8119_v20  ;;  %7665 = vmatprep.subr.bf16.mxu1 %v8120_v28 }
 0x38b   :  { %7689 = vmatprep.subr.bf16.mxu0 %v8122_v4 }
 0x38d   :  { %7666 = vmatpush3.bf16.msra.mxu1 %v8121_v54 }
 0x38e   :  { %7690 = vmatpush3.bf16.msra.mxu0 %v8123_v19  ;;  %7667 = vmatprep.subr.bf16.mxu1 %v8124_v41 }
 0x38f   :  { %7691 = vmatprep.subr.bf16.mxu0 %v8126_v5  ;;  %v8140_v5 = vld [vmem:[%s11819_s8] ss:$52 sps:$4 sm:$0xff]  }
 0x390   :  { %v2516_v10 = vpop.permute.xlu0 %2515 }
 0x391   :  { %7668 = vmatpush3.bf16.msra.mxu1 %v8125_v11  ;;  %v2553_v39 = vsel %vm2397_vm6, %v9561_v8, %v2516_v10  ;;  %v8142_v11 = vld [vmem:[%s11819_s8 + $0x4] ss:$52 sps:$4 sm:$0xff]   ;;  %v8155_v10 = vld [vmem:[%s11819_s8 + $0xe0] ss:$52 sps:$4 sm:$0xff]  }
 0x392   :  { %7692 = vmatpush3.bf16.msra.mxu0 %v8127_v44  ;;  %7669 = vmatprep.subr.bf16.mxu1 %v8128_v52  ;;  %v8143_v44 = vld [vmem:[%s11819_s8 + $0x10] ss:$52 sps:$4 sm:$0xff]   ;;  %v8145_v52 = vld [vmem:[%s11819_s8 + $0x14] ss:$52 sps:$4 sm:$0xff]  }
 0x393   :  { %7693 = vmatprep.subr.bf16.mxu0 %v8130_v13  ;;  %v8148_v13 = vld [vmem:[%s11819_s8 + $0x6c] ss:$52 sps:$4 sm:$0xff]  }
 0x395   :  { %7670 = vmatpush3.bf16.msra.mxu1 %v8129_v9  ;;  %v8151_v9 = vld [vmem:[%s11819_s8 + $0x7c] ss:$52 sps:$4 sm:$0xff]  }
 0x396   :  { %7694 = vmatpush3.bf16.msra.mxu0 %v8131_v12  ;;  %7671 = vmatprep.subr.bf16.mxu1 %v8132_v56  ;;  %v8146_v12 = vld [vmem:[%s11819_s8 + $0x68] ss:$52 sps:$4 sm:$0xff]   ;;  %v8149_v56 = vld [vmem:[%s11819_s8 + $0x78] ss:$52 sps:$4 sm:$0xff]  }
 0x397   :  { %7695 = vmatprep.subr.bf16.mxu0 %v8134_v25 }
 0x399   :  { %7672 = vmatpush3.bf16.msra.mxu1 %v8133_v48  ;;  %v8154_v48 = vld [vmem:[%s11819_s8 + $0xd4] ss:$52 sps:$4 sm:$0xff]  }
 0x39a   :  { %7696 = vmatpush3.bf16.msra.mxu0 %v8135_v26  ;;  %7673 = vmatprep.subr.bf16.mxu1 %v8136_v29  ;;  %v8157_v26 = vld [vmem:[%s11819_s8 + $0xe4] ss:$52 sps:$4 sm:$0xff]  }
 0x39b   :  { %7850 = vmatprep.subr.bf16.mxu0 %v11828_v2 }
 0x39d   :  { %7674 = vmatpush3.bf16.msra.mxu1 %v8137_v34  ;;  %v8152_v34 = vld [vmem:[%s11819_s8 + $0xd0] ss:$52 sps:$4 sm:$0xff]  }
 0x39e   :  { %4125 = vmatprep.subr.bf16.mxu1 %v8145_v52 }
 0x3c7   :  { %v2519_v22 = vpop.permute.xlu0 %2518 }
 0x3c8   :  { %v2555_v32 = vsel %vm1719_vm4, %v2553_v39, %v2519_v22 }
 0x3cb   :  { %v2522_v40 = vpop.permute.xlu0 %2521 }
 0x3cc   :  { %v2557_v21 = vsel %vm2403_vm7, %v2555_v32, %v2522_v40 }
 0x3cd   :  { %3561 = vmatprep.mubr.bf16.mxu1 %v2557_v21 }
 0x3d1   :  { %v2526_v30 = vpop.permute.xlu1 %2525 }
 0x3d2   :  { %v2561_v59 = vsel %vm2397_vm6, %v9675_v58, %v2526_v30  ;;  %v2545_v58 = vsel %vm2397_vm6, %v9539_v42, %v2506_v37  ;;  %v8160_v37 = vld [vmem:[%s11819_s8 + $0x13c] ss:$52 sps:$4 sm:$0xff]  }
 0x3d3   :  { %v2547_v57 = vsel %vm1719_vm4, %v2545_v58, %v2509_v33  ;;  %v8163_v33 = vld [vmem:[%s11819_s8 + $0x14c] ss:$52 sps:$4 sm:$0xff]   ;;  %v8346_v58 = vld [vmem:[%s11811_s1 + $0x18] sm:$0xf] }
 0x3db   :  { %v2529_v63 = vpop.permute.xlu1 %2528 }
 0x3dc   :  { %v2563_v43 = vsel %vm1719_vm4, %v2561_v59, %v2529_v63  ;;  %v8166_v59 = vld [vmem:[%s11819_s8 + $0xc] ss:$52 sps:$4 sm:$0xff]  }
 0x3e5   :  { %v2536_v27 = vpop.permute.xlu1 %2535 }
 0x3e6   :  { %v2569_v47 = vsel %vm2397_vm6, %v9702_v61, %v2536_v27  ;;  %v8158_v27 = vld [vmem:[%s11819_s8 + $0x138] ss:$52 sps:$4 sm:$0xff]  }
 0x3e9   :  { %v2532_v38 = vpop.permute.xlu1 %2531 }
 0x3ea   :  { %v2565_v16 = vsel %vm2403_vm7, %v2563_v43, %v2532_v38  ;;  %v8340_v43 = vld [vmem:[%s11811_s1] sm:$0xf] }
 0x3ee   :  { %v2539_v24 = vpop.permute.xlu0 %2538 }
 0x3ef   :  { %v2571_v8 = vsel %vm1719_vm4, %v2569_v47, %v2539_v24  ;;  %v8161_v24 = vld [vmem:[%s11819_s8 + $0x148] ss:$52 sps:$4 sm:$0xff]  }
 0x3f2   :  { %v2542_v6 = vpop.permute.xlu0 %2541 }
 0x3f3   :  { %v2277_v18 = vpop.f32.mrb[96].mxu1  ;;  %v2573_v49 = vsel %vm2403_vm7, %v2571_v8, %v2542_v6  ;;  %v8169_v8 = vld [vmem:[%s11819_s8 + $0x24] ss:$52 sps:$4 sm:$0xff]  }
 0x3f4   :  { %v2278_v61 = vadd.f32 %v9547_v62, %v2277_v18  ;;  %v2279_v35 = vpop.f32.mrb[97].mxu1  ;;  %3601 = vmatprep.mubr.bf16.mxu0 %v2573_v49  ;;  %v8341_v18 = vld [vmem:[%s11811_s1 + $0x4] sm:$0xf]  ;;  %v8342_v49 = vld [vmem:[%s11811_s1 + $0x8] sm:$0xf] }
 0x3f5   :  { %v2280_v1 = vpop.f32.mrb[98].mxu1  ;;  %3602 = vmatmul.mubr.bf16.vlgmr.msra.gmra.mrb[112].mxu0 %v2565_v16  ;;  %v8343_v16 = vld [vmem:[%s11811_s1 + $0xc] sm:$0xf]  ;;  %v8345_v35 = vld [vmem:[%s11811_s1 + $0x14] sm:$0xf] }
 0x3f6   :  { %v2281_v14 = vpop.f32.mrb[99].mxu1  ;;  %7851 = vmatpush3.bf16.msra.mxu0 %v8138_v7  ;;  %v2512_v31 = vpop.permute.xlu0 %2511  ;;  %7854 = vmatprep.mubr.msk.bf16.mxu0 %vm8392_vm1, %v11828_v2  ;;  %v2331_v62 = vmax.f32 %v2278_v61, 0.0  ;;  %v8397_v7 = vmov 1   ;;  %v8344_v61 = vld [vmem:[%s11811_s1 + $0x10] sm:$0xf] }
 0x3f7   :  { %v2549_v15 = vsel %vm2403_vm7, %v2547_v57, %v2512_v31  ;;  %7852 = vmatprep.subr.bf16.mxu0 %v11828_v2  ;;  %7997 = vset.pattern.permute.xlu0 %v8397_v7  ;;  %v8347_v1 = vld [vmem:[%s11811_s1 + $0x1c] sm:$0xf]  ;;  %v8348_v57 = vld [vmem:[%s11811_s1 + $0x24] sm:$0xf]  ;;  %v8349_v14 = vld [vmem:[%s11811_s1 + $0x20] sm:$0xf] }
 0x3f8   :  { %3562 = vmatmul.mubr.bf16.vlgmr.msra.gmra.mrb[104].mxu1 %v2549_v15  ;;  %v2356_v42 = vpack.c.bf16 %v2331_v62, %v2331_v62  ;;  %7996 = vset.pattern.permute.xlu1 %v8397_v7  ;;  %v8350_v31 = vld [vmem:[%s11811_s1 + $0x2c] sm:$0xf]  ;;  %v8352_v62 = vld [vmem:[%s11811_s1 + $0x30] sm:$0xf]  ;;  %v8353_v15 = vld [vmem:[%s11811_s1 + $0x34] sm:$0xf] }
 0x3f9   :  { %4157 = vmatprep.mubr.bf16.mxu1 %v11826_v0  ;;  %4126 = vmatpush1.bf16.msra.mxu1 %v8143_v44  ;;  %v8185_v7 = vld [vmem:[%s11819_s8 + $0x158] ss:$52 sps:$4 sm:$0xff]  }
 0x3fa   :  { %7853 = vmatpush3.bf16.msra.mxu0 %v8139_v17  ;;  %4127 = vmatprep.subr.bf16.mxu1 %v8151_v9  ;;  %v8351_v17 = vld [vmem:[%s11811_s1 + $0x28] sm:$0xf] }
 0x3fb   :  { %4043 = vmatprep.subr.bf16.mxu0 %v8142_v11  ;;  %4642 = vperm.xlu1 %7996, %v8340_v43   ;;  %v8190_v43 = vld [vmem:[%s11819_s8 + $0x1c] ss:$52 sps:$4 sm:$0xff]  }
 0x3fc   :  { %4653 = vperm.xlu0 %7997, %v8341_v18   ;;  %v8188_v18 = vld [vmem:[%s11819_s8 + $0x18] ss:$52 sps:$4 sm:$0xff]  }
 0x3fd   :  { %7855 = vmatmul.mubr.msk.bf16.vlgmr.msra.gmra.mrb[116].mxu0 %vm2397_vm6, %v2356_v42  ;;  %4128 = vmatpush1.bf16.msra.mxu1 %v8149_v56  ;;  %v8354_v42 = vld [vmem:[%s11811_s1 + $0x38] sm:$0xf] }
 0x3fe   :  { %4075 = vmatprep.mubr.bf16.mxu0 %v11826_v0  ;;  %4044 = vmatpush1.bf16.msra.mxu0 %v8140_v5 }
 0x3ff   :  { %v7587_v3 = vpop.f32.mrb[100].mxu0  ;;  %4045 = vmatprep.subr.bf16.mxu0 %v8148_v13  ;;  %4129 = vmatprep.subr.bf16.mxu1 %v8157_v26 }
 0x400   :  { %v7588_v50 = vpop.f32.mrb[101].mxu0  ;;  %4664 = vperm.xlu1 %7996, %v8342_v49   ;;  %4675 = vperm.xlu0 %7997, %v8343_v16   ;;  %v8191_v49 = vld [vmem:[%s11819_s8 + $0x30] ss:$52 sps:$4 sm:$0xff]  }
 0x401   :  { %v7589_v36 = vadd.f32 %v7588_v50, %v7587_v3  ;;  %v7590_v55 = vpop.f32.mrb[102].mxu0  ;;  %4130 = vmatpush1.bf16.msra.mxu1 %v8155_v10  ;;  %v8355_v3 = vld [vmem:[%s11811_s1 + $0x3c] sm:$0xf]  ;;  %v8356_v50 = vld [vmem:[%s11811_s1 + $0x44] sm:$0xf] }
 0x402   :  { %v7591_v53 = vpop.f32.mrb[103].mxu0  ;;  %4046 = vmatpush1.bf16.msra.mxu0 %v8146_v12  ;;  %4131 = vmatprep.subr.bf16.mxu1 %v8163_v33  ;;  %v8358_v55 = vld [vmem:[%s11811_s1 + $0x48] sm:$0xf]  ;;  %v8175_v33 = vld [vmem:[%s11819_s8 + $0x8c] ss:$52 sps:$4 sm:$0xff]  }
 0x403   :  { %v3404_v28 = vadd.f32 %v7589_v36, %v7325_v60  ;;  %4047 = vmatprep.subr.bf16.mxu0 %v8154_v48  ;;  %v8357_v36 = vld [vmem:[%s11811_s1 + $0x40] sm:$0xf]  ;;  %v8359_v53 = vld [vmem:[%s11811_s1 + $0x4c] sm:$0xf]  ;;  %v8360_v60 = vld [vmem:[%s11811_s1 + $0x50] sm:$0xf] }
 0x404   :  { %4686 = vperm.xlu1 %7996, %v8344_v61   ;;  %4697 = vperm.xlu0 %7997, %v8345_v35   ;;  %v8194_v16 = vld [vmem:[%s11819_s8 + $0x84] ss:$52 sps:$4 sm:$0xff]   ;;  %v8192_v61 = vld [vmem:[%s11819_s8 + $0x80] ss:$52 sps:$4 sm:$0xff]  }
 0x405   :  { %4132 = vmatpush1.bf16.msra.mxu1 %v8161_v24  ;;  %v8181_v24 = vld [vmem:[%s11819_s8 + $0xf4] ss:$52 sps:$4 sm:$0xff]   ;;  %v8195_v35 = vld [vmem:[%s11819_s8 + $0x98] ss:$52 sps:$4 sm:$0xff]  }
 0x406   :  { %4048 = vmatpush1.bf16.msra.mxu0 %v8152_v34  ;;  %4207 = vmatprep.subr.bf16.mxu1 %v8169_v8  ;;  %v8187_v8 = vld [vmem:[%s11819_s8 + $0x15c] ss:$52 sps:$4 sm:$0xff]  }
 0x407   :  { %4049 = vmatprep.subr.bf16.mxu0 %v8160_v37  ;;  %v8172_v37 = vld [vmem:[%s11819_s8 + $0x74] ss:$52 sps:$4 sm:$0xff]  }
 0x408   :  { %4708 = vperm.xlu1 %7996, %v8346_v58   ;;  %4719 = vperm.xlu0 %7997, %v8347_v1   ;;  %v8198_v58 = vld [vmem:[%s11819_s8 + $0xec] ss:$52 sps:$4 sm:$0xff]   ;;  %v8196_v1 = vld [vmem:[%s11819_s8 + $0xe8] ss:$52 sps:$4 sm:$0xff]  }
 0x40a   :  { %4050 = vmatpush1.bf16.msra.mxu0 %v8158_v27  ;;  %v8178_v27 = vld [vmem:[%s11819_s8 + $0xdc] ss:$52 sps:$4 sm:$0xff]  }
 0x40b   :  { %4084 = vmatprep.subr.bf16.mxu0 %v8166_v59  ;;  %v8184_v59 = vld [vmem:[%s11819_s8 + $0x144] ss:$52 sps:$4 sm:$0xff]  }
 0x40c   :  { %4741 = vperm.xlu1 %7996, %v8348_v57   ;;  %4730 = vperm.xlu0 %7997, %v8349_v14   ;;  %v8199_v57 = vld [vmem:[%s11819_s8 + $0x100] ss:$52 sps:$4 sm:$0xff]  }
 0x40d   :  { %v8202_v14 = vld [vmem:[%s11819_s8 + $0x154] ss:$52 sps:$4 sm:$0xff]  }
 0x410   :  { %4763 = vperm.xlu1 %7996, %v8350_v31   ;;  %4752 = vperm.xlu0 %7997, %v8351_v17   ;;  %v8200_v31 = vld [vmem:[%s11819_s8 + $0x150] ss:$52 sps:$4 sm:$0xff]   ;;  %v8203_v17 = vld [vmem:[%s11819_s8 + $0x168] ss:$52 sps:$4 sm:$0xff]  }
 0x414   :  { %4774 = vperm.xlu1 %7996, %v8352_v62   ;;  %4785 = vperm.xlu0 %7997, %v8353_v15   ;;  %v8206_v62 = vld [vmem:[%s11819_s8 + $0x2c] ss:$52 sps:$4 sm:$0xff]   ;;  %v8204_v15 = vld [vmem:[%s11819_s8 + $0x28] ss:$52 sps:$4 sm:$0xff]  }
 0x418   :  { %4796 = vperm.xlu1 %7996, %v8354_v42   ;;  %4807 = vperm.xlu0 %7997, %v8355_v3   ;;  %v8209_v42 = vld [vmem:[%s11819_s8 + $0x94] ss:$52 sps:$4 sm:$0xff]   ;;  %v8207_v3 = vld [vmem:[%s11819_s8 + $0x90] ss:$52 sps:$4 sm:$0xff]  }
 0x41c   :  { %4829 = vperm.xlu1 %7996, %v8356_v50   ;;  %4818 = vperm.xlu0 %7997, %v8357_v36   ;;  %v8212_v50 = vld [vmem:[%s11819_s8 + $0xfc] ss:$52 sps:$4 sm:$0xff]   ;;  %v8210_v36 = vld [vmem:[%s11819_s8 + $0xf8] ss:$52 sps:$4 sm:$0xff]  }
 0x41f   :  { %v7609_v51 = vpop.f32.mrb[104].mxu0 }
 0x420   :  { %v7610_v20 = vpop.f32.mrb[105].mxu0  ;;  %4840 = vperm.xlu1 %7996, %v8358_v55   ;;  %4851 = vperm.xlu0 %7997, %v8359_v53   ;;  %v8215_v55 = vld [vmem:[%s11819_s8 + $0x164] ss:$52 sps:$4 sm:$0xff]   ;;  %v8213_v53 = vld [vmem:[%s11819_s8 + $0x160] ss:$52 sps:$4 sm:$0xff]  }
 0x421   :  { %v7611_v4 = vadd.f32 %v7610_v20, %v7609_v51  ;;  %v7612_v54 = vpop.f32.mrb[106].mxu0  ;;  %v8361_v51 = vld [vmem:[%s11811_s1 + $0x54] sm:$0xf]  ;;  %v8362_v20 = vld [vmem:[%s11811_s1 + $0x5c] sm:$0xf] }
 0x422   :  { %v7613_v19 = vpop.f32.mrb[107].mxu0  ;;  %v8365_v54 = vld [vmem:[%s11811_s1 + $0x60] sm:$0xf] }
 0x423   :  { %v3444_v41 = vadd.f32 %v7611_v4, %v3404_v28  ;;  %v8363_v28 = vld [vmem:[%s11811_s1 + $0x58] sm:$0xf]  ;;  %v8364_v4 = vld [vmem:[%s11811_s1 + $0x64] sm:$0xf] }
 0x424   :  { %4862 = vperm.xlu1 %7996, %v8360_v60   ;;  %4873 = vperm.xlu0 %7997, %v8361_v51   ;;  %v3729_v60 = vsub.s32 4, %v8638_v45  ;;  %v10119_v51 = vld [vmem:[%s11820_s9 + $0x8] sm:$0x1f] }
 0x428   :  { %4895 = vperm.xlu1 %7996, %v8362_v20   ;;  %4884 = vperm.xlu0 %7997, %v8363_v28   ;;  %v10122_v20 = vrot.slane %v10119_v51, %v3729_v60  ;;  %v3721_v28 = vsub.s32 2, %v8638_v45 }
 0x42c   :  { %4917 = vperm.xlu1 %7996, %v8364_v4   ;;  %4906 = vperm.xlu0 %7997, %v8365_v54   ;;  %v10126_v4 = vrot.slane %v10119_v51, %v3721_v28  ;;  %v3725_v54 = vsub.s32 3, %v8638_v45 }
 0x450   :  { %v7653_v25 = vpop.f32.mrb[108].mxu0 }
 0x451   :  { %v7654_v29 = vpop.f32.mrb[109].mxu0 }
 0x452   :  { %v7655_v22 = vadd.f32 %v7654_v29, %v7653_v25  ;;  %v7656_v39 = vpop.f32.mrb[110].mxu0 }
 0x453   :  { %v7631_v32 = vpop.f32.mrb[100].mxu1  ;;  %v7657_v40 = vpop.f32.mrb[111].mxu0 }
 0x454   :  { %v7632_v21 = vpop.f32.mrb[101].mxu1  ;;  %v8167_v40 = vld [vmem:[%s11819_s8 + $0x20] ss:$52 sps:$4 sm:$0xff]  }
 0x455   :  { %v7633_v30 = vadd.f32 %v7632_v21, %v7631_v32  ;;  %v7634_v63 = vpop.f32.mrb[102].mxu1  ;;  %v8164_v32 = vld [vmem:[%s11819_s8 + $0x8] ss:$52 sps:$4 sm:$0xff]  }
 0x456   :  { %v7635_v47 = vpop.f32.mrb[103].mxu1  ;;  %v8173_v63 = vld [vmem:[%s11819_s8 + $0x88] ss:$52 sps:$4 sm:$0xff]  }
 0x457   :  { %v3484_v38 = vadd.f32 %v7633_v30, %v3444_v41  ;;  %v8170_v30 = vld [vmem:[%s11819_s8 + $0x70] ss:$52 sps:$4 sm:$0xff]   ;;  %v8176_v47 = vld [vmem:[%s11819_s8 + $0xd8] ss:$52 sps:$4 sm:$0xff]  }
 0x459   :  { %v9902_v6 = vadd.f32 %v7655_v22, %v3484_v38  ;;  %v8179_v38 = vld [vmem:[%s11819_s8 + $0xf0] ss:$52 sps:$4 sm:$0xff]  }
 0x4c8   :  { %v7697_v19 = vpop.f32.mrb[112].mxu0 }
 0x4c9   :  { %v7698_v41 = vpop.f32.mrb[113].mxu0 }
 0x4ca   :  { %v7699_v5 = vadd.f32 %v7698_v41, %v7697_v19  ;;  %v7700_v11 = vpop.f32.mrb[114].mxu0  ;;  %v10130_v19 = vrot.slane %v10119_v51, %v3725_v54  ;;  %v3713_v41 = vsub.s32 0, %v8638_v45 }
 0x4cb   :  { %v7675_v44 = vpop.f32.mrb[104].mxu1  ;;  %v7701_v52 = vpop.f32.mrb[115].mxu0  ;;  %v3733_v11 = vsub.s32 5, %v8638_v45 }
 0x4cc   :  { %v7676_v13 = vpop.f32.mrb[105].mxu1 }
 0x4cd   :  { %v7677_v9 = vadd.f32 %v7676_v13, %v7675_v44  ;;  %v7678_v12 = vpop.f32.mrb[106].mxu1  ;;  %v3717_v13 = vsub.s32 1, %v8638_v45 }
 0x4ce   :  { %v7679_v56 = vpop.f32.mrb[107].mxu1 }
 0x4cf   :  { %v3564_v25 = vadd.f32 %v7677_v9, %v9902_v6  ;;  %v8182_v6 = vld [vmem:[%s11819_s8 + $0x140] ss:$52 sps:$4 sm:$0xff]  }
 0x4d0   :  { %v3643_v48 = vpop.f32.mrb[116].mxu0 }
 0x4d1   :  { %v3604_v26 = vadd.f32 %v7699_v5, %v3564_v25  ;;  %v7856_v29 = vpop.f32.mrb[117].mxu0  ;;  %v10136_v5 = vld [vmem:[%s11820_s9] sm:$0xff] }
 0x4d2   :  { %v3646_v34 = vpop.f32.mrb[118].mxu0  ;;  %v3714_v44 = vrot.slane %v10136_v5, %v3713_v41  ;;  %v3730_v52 = vrot.slane %v10136_v5, %v3729_v60  ;;  %v3734_v9 = vrot.slane %v10136_v5, %v3733_v11 }
 0x4d3   :  { %v3644_v10 = vadd.f32 %v3643_v48, %v3604_v26  ;;  %v7857_v22 = vpop.f32.mrb[119].mxu0  ;;  %v3718_v26 = vrot.slane %v10136_v5, %v3717_v13 }
 0x4d5   :  { %v3649_v39 = vmax.f32 %v3644_v10, 0.0 }
 0x4d7   :  { %v9989_v21 = vpack.c.bf16 %v3649_v39, %v3649_v39 }
 0x4d9   :  { %7477 = vmatmul.mubr.msk.bf16.vlgmr.msra.gmra.mrb[120].mxu0 %vm1719_vm4, %v9989_v21  ;;  %7479 = vmatmul.mubr.msk.bf16.vlgmr.msra.gmra.mrb[108].mxu1 %vm1719_vm4, %v9989_v21 }
 0x4da   :  { %4085 = vmatpush1.bf16.msra.mxu0 %v8164_v32  ;;  %4208 = vmatpush1.bf16.msra.mxu1 %v8167_v40 }
 0x4db   :  { %4086 = vmatprep.subr.bf16.mxu0 %v8172_v37  ;;  %4209 = vmatprep.subr.bf16.mxu1 %v8175_v33 }
 0x4dc   :  { %4116 = vmatprep.mubr.bf16.mxu0 %v11826_v0  ;;  %4239 = vmatprep.mubr.bf16.mxu1 %v11826_v0 }
 0x4de   :  { %4087 = vmatpush1.bf16.msra.mxu0 %v8170_v30  ;;  %4210 = vmatpush1.bf16.msra.mxu1 %v8173_v63 }
 0x4df   :  { %4088 = vmatprep.subr.bf16.mxu0 %v8178_v27  ;;  %4211 = vmatprep.subr.bf16.mxu1 %v8181_v24 }
 0x4e2   :  { %4089 = vmatpush1.bf16.msra.mxu0 %v8176_v47  ;;  %4212 = vmatpush1.bf16.msra.mxu1 %v8179_v38 }
 0x4e3   :  { %4090 = vmatprep.subr.bf16.mxu0 %v8184_v59  ;;  %4213 = vmatprep.subr.bf16.mxu1 %v8187_v8 }
 0x4e6   :  { %4091 = vmatpush1.bf16.msra.mxu0 %v8182_v6  ;;  %4214 = vmatpush1.bf16.msra.mxu1 %v8185_v7 }
 0x4e7   :  { %4166 = vmatprep.subr.bf16.mxu0 %v8190_v43  ;;  %7858 = vmatprep.subr.bf16.mxu1 %v11828_v2  ;;  %v3722_v43 = vrot.slane %v10136_v5, %v3721_v28 }
 0x4e9   :  { %7478 = vmatmul.mubr.msk.bf16.vlgmr.msra.gmra.mrb[124].mxu0 %vm1719_vm4, %v9989_v21  ;;  %7481 = vmatmul.mubr.msk.bf16.vlgmr.msra.gmra.mrb[112].mxu1 %vm1719_vm4, %v9989_v21 }
 0x4ea   :  { %4167 = vmatpush1.bf16.msra.mxu0 %v8188_v18  ;;  %7859 = vmatpush3.bf16.msra.mxu1 %v8191_v49 }
 0x4eb   :  { %4168 = vmatprep.subr.bf16.mxu0 %v8194_v16  ;;  %7860 = vmatprep.subr.bf16.mxu1 %v11828_v2  ;;  %v3726_v16 = vrot.slane %v10136_v5, %v3725_v54 }
 0x4ec   :  { %4198 = vmatprep.mubr.bf16.mxu0 %v11826_v0  ;;  %7866 = vmatprep.mubr.msk.bf16.mxu1 %vm8392_vm1, %v11828_v2 }
 0x4ee   :  { %4169 = vmatpush1.bf16.msra.mxu0 %v8192_v61  ;;  %7861 = vmatpush3.bf16.msra.mxu1 %v8195_v35 }
 0x4ef   :  { %4170 = vmatprep.subr.bf16.mxu0 %v8198_v58  ;;  %7862 = vmatprep.subr.bf16.mxu1 %v11828_v2 }
 0x4f2   :  { %4171 = vmatpush1.bf16.msra.mxu0 %v8196_v1  ;;  %7863 = vmatpush3.bf16.msra.mxu1 %v8199_v57 }
 0x4f3   :  { %4172 = vmatprep.subr.bf16.mxu0 %v8202_v14  ;;  %7864 = vmatprep.subr.bf16.mxu1 %v11828_v2 }
 0x4f6   :  { %4173 = vmatpush1.bf16.msra.mxu0 %v8200_v31  ;;  %7865 = vmatpush3.bf16.msra.mxu1 %v8203_v17 }
 0x4f7   :  { %4248 = vmatprep.subr.bf16.mxu0 %v8206_v62  ;;  %6741 = vmatprep.subr.bf16.mxu1 %v11826_v0 }
 0x4f9   :  { %7480 = vmatmul.mubr.msk.bf16.vlgmr.msra.gmra.mrb[128].mxu0 %vm1719_vm4, %v9989_v21  ;;  %7867 = vmatmul.mubr.msk.bf16.vlgmr.msra.gmra.mrb[116].mxu1 %vm1719_vm4, %v9989_v21 }
 0x4fa   :  { %4249 = vmatpush1.bf16.msra.mxu0 %v8204_v15  ;;  %4280 = vmatprep.mubr.bf16.mxu0 %v11826_v0 }
 0x4fb   :  { %4250 = vmatprep.subr.bf16.mxu0 %v8209_v42 }
 0x4fe   :  { %4251 = vmatpush1.bf16.msra.mxu0 %v8207_v3  ;;  %v3746_v3 = vrot.slane %v10119_v51, %v3713_v41 }
 0x4ff   :  { %4252 = vmatprep.subr.bf16.mxu0 %v8212_v50 }
 0x502   :  { %4253 = vmatpush1.bf16.msra.mxu0 %v8210_v36 }
 0x503   :  { %4254 = vmatprep.subr.bf16.mxu0 %v8215_v55 }
 0x506   :  { %4255 = vmatpush1.bf16.msra.mxu0 %v8213_v53 }
 0x507   :  { %7870 = vmatprep.subr.bf16.mxu0 %v11828_v2 }
 0x509   :  { %7482 = vmatmul.mubr.msk.bf16.vlgmr.msra.gmra.mrb[132].mxu0 %vm1719_vm4, %v9989_v21 }
 0x50a   :  { %7886 = vmatprep.mubr.msk.bf16.mxu0 %vm8392_vm1, %v11828_v2 }
 0x5ac   :  { %v4077_v12 = vpop.f32.mrb[120].mxu0  ;;  %v4159_v56 = vpop.f32.mrb[108].mxu1 }
 0x5ad   :  { %v4078_v25 = vadd.f32 %v4077_v12, %v3714_v44  ;;  %v4160_v48 = vadd.f32 %v4159_v56, %v3730_v52  ;;  %v4079_v29 = vpop.f32.mrb[121].mxu0  ;;  %v4161_v34 = vpop.f32.mrb[109].mxu1  ;;  %v8366_v12 = vld [vmem:[%s11811_s1 + $0x6c] sm:$0xf] }
 0x5ae   :  { %v4162_v10 = vadd.f32 %v4161_v34, %v3734_v9  ;;  %v4081_v22 = vpop.f32.mrb[122].mxu0  ;;  %v4163_v39 = vpop.f32.mrb[110].mxu1  ;;  %v4080_v63 = vadd.f32 %v4079_v29, %v3718_v26  ;;  %v3750_v26 = vrot.slane %v10119_v51, %v3717_v13  ;;  %v8369_v29 = vld [vmem:[%s11811_s1 + $0x70] sm:$0xf] }
 0x5af   :  { %v4329_v32 = vmax.f32 %v4078_v25, 0.0  ;;  %v4082_v40 = vpop.f32.mrb[123].mxu0  ;;  %v4164_v21 = vpop.f32.mrb[111].mxu1  ;;  %v4333_v30 = vmax.f32 %v4160_v48, 0.0  ;;  %v8367_v25 = vld [vmem:[%s11811_s1 + $0x68] sm:$0xf] }
 0x5b0   :  { %v4334_v37 = vmax.f32 %v4162_v10, 0.0  ;;  %v4330_v47 = vmax.f32 %v4080_v63, 0.0  ;;  %v10209_v10 = vpop.permute.xlu1 %4642  ;;  %v3737_v39 = vsub.s32 6, %v8638_v45  ;;  %v10213_v40 = vpop.permute.xlu0 %4653 }
 0x5b1   :  { %v10146_v33 = vpack.c.bf16 %v4329_v32, %v4329_v32  ;;  %v10154_v24 = vpack.c.bf16 %v4333_v30, %v4333_v30  ;;  %v3741_v32 = vsub.s32 7, %v8638_v45 }
 0x5b2   :  { %v10148_v27 = vpack.c.bf16 %v4334_v37, %v4334_v37  ;;  %v10160_v59 = vpack.c.bf16 %v4330_v47, %v4330_v47  ;;  %v3738_v63 = vrot.slane %v10136_v5, %v3737_v39 }
 0x5b3   :  { %4359 = vrot.lane.b32.xlu1 %v10146_v33, %s8394_s25  ;;  %v4356_v38 = vrot.slane %v10146_v33, 4  ;;  %v4416_v8 = vrot.slane %v10154_v24, 4  ;;  %v3742_v47 = vrot.slane %v10136_v5, %v3741_v32  ;;  %v8217_v32 = vld [vmem:[%s11821_s10 + $0x8] sm:$0xff]  }
 0x5b4   :  { %4427 = vrot.lane.b32.xlu0 %v10148_v27, %s8394_s25  ;;  %v4424_v57 = vrot.slane %v10148_v27, 4  ;;  %v4364_v31 = vrot.slane %v10160_v59, 4 }
 0x5b7   :  { %4419 = vrot.lane.b32.xlu1 %v10154_v24, %s8394_s25 }
 0x5b8   :  { %4361 = vrot.lane.b32.xlu0 %v4356_v38, %s8395_s24 }
 0x5bb   :  { %4367 = vrot.lane.b32.xlu1 %v10160_v59, %s8394_s25 }
 0x5bc   :  { %v4118_v6 = vpop.f32.mrb[124].mxu0  ;;  %v4241_v7 = vpop.f32.mrb[112].mxu1  ;;  %4417 = vrot.lane.b32.xlu0 %v4416_v8, %s8396_s26 }
 0x5bd   :  { %v4120_v18 = vpop.f32.mrb[125].mxu0  ;;  %v4243_v49 = vpop.f32.mrb[113].mxu1  ;;  %v4119_v14 = vadd.f32 %v4118_v6, %v3722_v43  ;;  %v4242_v60 = vadd.f32 %v4241_v7, %v3746_v3 }
 0x5be   :  { %v4122_v61 = vpop.f32.mrb[126].mxu0  ;;  %v4245_v35 = vpop.f32.mrb[114].mxu1  ;;  %v4121_v17 = vadd.f32 %v4120_v18, %v3726_v16  ;;  %v4244_v22 = vadd.f32 %v4243_v49, %v3750_v26 }
 0x5bf   :  { %v4123_v58 = vpop.f32.mrb[127].mxu0  ;;  %v4246_v1 = vpop.f32.mrb[115].mxu1  ;;  %4357 = vrot.lane.b32.xlu1 %v4356_v38, %s8396_s26  ;;  %v4331_v62 = vmax.f32 %v4119_v14, 0.0  ;;  %v4337_v56 = vmax.f32 %v4242_v60, 0.0 }
 0x5c0   :  { %4421 = vrot.lane.b32.xlu0 %v4416_v8, %s8395_s24  ;;  %v4332_v15 = vmax.f32 %v4121_v17, 0.0  ;;  %v4338_v30 = vmax.f32 %v4244_v22, 0.0  ;;  %v10226_v8 = vpop.permute.xlu1 %4664  ;;  %v10229_v7 = vpop.permute.xlu0 %4675 }
 0x5c1   :  { %v10176_v42 = vpack.c.bf16 %v4331_v62, %v4331_v62  ;;  %v10199_v48 = vpack.c.bf16 %v4337_v56, %v4337_v56 }
 0x5c2   :  { %v10179_v50 = vpack.c.bf16 %v4332_v15, %v4332_v15  ;;  %v10234_v43 = vpack.c.bf16 %v4338_v30, %v4338_v30  ;;  %v8373_v15 = vld [vmem:[%s11811_s1 + $0x84] sm:$0xf] }
 0x5c3   :  { %4425 = vrot.lane.b32.xlu1 %v4424_v57, %s8396_s26  ;;  %v4372_v53 = vrot.slane %v10176_v42, 4  ;;  %v4480_v34 = vrot.slane %v10199_v48, 4 }
 0x5c4   :  { %4369 = vrot.lane.b32.xlu0 %v4364_v31, %s8395_s24  ;;  %v4380_v13 = vrot.slane %v10179_v50, 4  ;;  %v10241_v49 = vpop.permute.xlu1 %4686  ;;  %v4488_v16 = vrot.slane %v10234_v43, 4  ;;  %v10244_v58 = vpop.permute.xlu0 %4697 }
 0x5c7   :  { %4429 = vrot.lane.b32.xlu1 %v4424_v57, %s8395_s24 }
 0x5c8   :  { %4365 = vrot.lane.b32.xlu0 %v4364_v31, %s8396_s26  ;;  %v10254_v14 = vpop.permute.xlu1 %4708  ;;  %v8372_v31 = vld [vmem:[%s11811_s1 + $0x7c] sm:$0xf]  ;;  %v10259_v17 = vpop.permute.xlu0 %4719 }
 0x5cb   :  { %4375 = vrot.lane.b32.xlu1 %v10176_v42, %s8394_s25 }
 0x5cc   :  { %v4200_v36 = vpop.f32.mrb[128].mxu0  ;;  %v4323_v55 = vpop.f32.mrb[116].mxu1  ;;  %4383 = vrot.lane.b32.xlu0 %v10179_v50, %s8394_s25 }
 0x5cd   :  { %v10187_v28 = vadd.f32 %v4323_v55, %v10122_v20  ;;  %v4202_v54 = vpop.f32.mrb[129].mxu0  ;;  %v7868_v11 = vpop.f32.mrb[117].mxu1  ;;  %v8368_v20 = vld [vmem:[%s11811_s1 + $0x74] sm:$0xf]  ;;  %v4201_v18 = vadd.f32 %v4200_v36, %v3738_v63 }
 0x5ce   :  { %v4204_v44 = vpop.f32.mrb[130].mxu0  ;;  %v4326_v41 = vpop.f32.mrb[118].mxu1  ;;  %v4203_v5 = vadd.f32 %v4202_v54, %v3742_v47 }
 0x5cf   :  { %v4205_v52 = vpop.f32.mrb[131].mxu0  ;;  %v7869_v9 = vpop.f32.mrb[119].mxu1  ;;  %4373 = vrot.lane.b32.xlu1 %v4372_v53, %s8396_s26  ;;  %v4335_v61 = vmax.f32 %v4201_v18, 0.0 }
 0x5d0   :  { %4939 = vperm.xlu0 %7997, %v8366_v12   ;;  %v4336_v35 = vmax.f32 %v4203_v5, 0.0  ;;  %v4742_v3 = vpop.permute.xlu1 %4741  ;;  %v4731_v55 = vpop.permute.xlu0 %4730 }
 0x5d1   :  { %v10250_v1 = vpack.c.bf16 %v4335_v61, %v4335_v61  ;;  %v4750_v63 = vrot.slane %v4742_v3, %v8642_v46  ;;  %v4739_v47 = vrot.slane %v4731_v55, %v8642_v46  ;;  %v8221_v55 = vld [vmem:[%s11821_s10 + $0x28] sm:$0xff]  }
 0x5d2   :  { %v10252_v57 = vpack.c.bf16 %v4336_v35, %v4336_v35  ;;  %v8220_v35 = vld [vmem:[%s11821_s10 + $0x20] sm:$0xff]  }
 0x5d3   :  { %4928 = vperm.xlu1 %7996, %v8367_v25   ;;  %v4432_v62 = vrot.slane %v10250_v1, 4  ;;  %v10319_v18 = vcombine.low %v4739_v47, %v4750_v63 }
 0x5d4   :  { %4961 = vperm.xlu0 %7997, %v8368_v20   ;;  %v4440_v36 = vrot.slane %v10252_v57, 4  ;;  %v4753_v60 = vpop.permute.xlu0 %4752 }
 0x5d7   :  { %4950 = vperm.xlu1 %7996, %v8369_v29  }
 0x5d8   :  { %4377 = vrot.lane.b32.xlu0 %v4372_v53, %s8395_s24  ;;  %v4764_v53 = vpop.permute.xlu1 %4763  ;;  %v10276_v11 = vpop.permute.xlu0 %4785 }
 0x5d9   :  { %v4772_v5 = vrot.slane %v4764_v53, %v8642_v46  ;;  %v4794_v53 = vrot.slane %v10276_v11, %v8642_v46 }
 0x5db   :  { %4481 = vrot.lane.b32.xlu1 %v4480_v34, %s8396_s26 }
 0x5dc   :  { %v4282_v51 = vpop.f32.mrb[132].mxu0  ;;  %4485 = vrot.lane.b32.xlu0 %v4480_v34, %s8395_s24  ;;  %v10274_v54 = vpop.permute.xlu1 %4774  ;;  %v8216_v34 = vld [vmem:[%s11821_s10] sm:$0xff]  }
 0x5dd   :  { %v10219_v21 = vadd.f32 %v4282_v51, %v10126_v4  ;;  %v4284_v37 = vpop.f32.mrb[133].mxu0  ;;  %v8370_v4 = vld [vmem:[%s11811_s1 + $0x78] sm:$0xf]  ;;  %v10280_v41 = vpop.permute.xlu0 %4807  ;;  %7871 = vmatpush3.bf16.msra.mxu0 %v8216_v34 }
 0x5de   :  { %v10224_v45 = vadd.f32 %v4284_v37, %v10130_v19  ;;  %v4286_v38 = vpop.f32.mrb[134].mxu0  ;;  %v8371_v19 = vld [vmem:[%s11811_s1 + $0x80] sm:$0xf]  ;;  %7872 = vmatprep.subr.bf16.mxu0 %v11828_v2  ;;  %v8218_v37 = vld [vmem:[%s11821_s10 + $0x10] sm:$0xff]  }
 0x5df   :  { %v4287_v6 = vpop.f32.mrb[135].mxu0  ;;  %4381 = vrot.lane.b32.xlu1 %v4380_v13, %s8396_s26 }
 0x5e0   :  { %4972 = vperm.xlu0 %7997, %v8370_v4   ;;  %v10278_v44 = vpop.permute.xlu1 %4796  ;;  %v8219_v6 = vld [vmem:[%s11821_s10 + $0x18] sm:$0xff]  }
 0x5e1   :  { %v10284_v9 = vpop.permute.xlu0 %4818  ;;  %7873 = vmatpush3.bf16.msra.mxu0 %v8217_v32 }
 0x5e2   :  { %7874 = vmatprep.subr.bf16.mxu0 %v11828_v2 }
 0x5e3   :  { %4483 = vrot.lane.b32.xlu1 %v10199_v48, %s8394_s25 }
 0x5e4   :  { %4994 = vperm.xlu0 %7997, %v8371_v19   ;;  %v10282_v52 = vpop.permute.xlu1 %4829  ;;  %v4761_v19 = vrot.slane %v4753_v60, %v8642_v46 }
 0x5e5   :  { %v10288_v56 = vpop.permute.xlu0 %4851  ;;  %7875 = vmatpush3.bf16.msra.mxu0 %v8218_v37  ;;  %v4838_v0 = vrot.slane %v10282_v52, %v8642_v46 }
 0x5e6   :  { %7876 = vmatprep.subr.bf16.mxu0 %v11828_v2  ;;  %v10333_v3 = vcombine.low %v4761_v19, %v4772_v5  ;;  %v4816_v5 = vrot.slane %v10280_v41, %v8642_v46 }
 0x5e7   :  { %4385 = vrot.lane.b32.xlu1 %v4380_v13, %s8395_s24 }
 0x5e8   :  { %4489 = vrot.lane.b32.xlu0 %v4488_v16, %s8396_s26  ;;  %v10286_v12 = vpop.permute.xlu1 %4840 }
 0x5e9   :  { %v10292_v20 = vpop.permute.xlu0 %4873  ;;  %7877 = vmatpush3.bf16.msra.mxu0 %v8219_v6  ;;  %v8222_v6 = vld [vmem:[%s11821_s10 + $0x30] sm:$0xff]  }
 0x5ea   :  { %7878 = vmatprep.subr.bf16.mxu0 %v11828_v2 }
 0x5eb   :  { %4983 = vperm.xlu1 %7996, %v8372_v31  }
 0x5ec   :  { %4443 = vrot.lane.b32.xlu0 %v10252_v57, %s8394_s25  ;;  %v10290_v25 = vpop.permute.xlu1 %4862 }
 0x5ed   :  { %v10296_v29 = vpop.permute.xlu0 %4884  ;;  %7879 = vmatpush3.bf16.msra.mxu0 %v8220_v35  ;;  %v4662_v35 = vrot.slane %v10213_v40, %v8642_v46  ;;  %v4706_v40 = vrot.slane %v10244_v58, %v8642_v46 }
 0x5ee   :  { %7880 = vmatprep.subr.bf16.mxu0 %v11828_v2 }
 0x5ef   :  { %5005 = vperm.xlu1 %7996, %v8373_v15  }
 0x5f0   :  { %4437 = vrot.lane.b32.xlu0 %v4432_v62, %s8395_s24  ;;  %v10294_v26 = vpop.permute.xlu1 %4895 }
 0x5f1   :  { %v10303_v39 = vpop.permute.xlu0 %4906  ;;  %7881 = vmatpush3.bf16.msra.mxu0 %v8221_v55 }
 0x5f2   :  { %7882 = vmatprep.subr.bf16.mxu0 %v11828_v2 }
 0x5f3   :  { %4435 = vrot.lane.b32.xlu1 %v10250_v1, %s8394_s25 }
 0x5f4   :  { %4441 = vrot.lane.b32.xlu0 %v4440_v36, %s8396_s26  ;;  %v10301_v22 = vpop.permute.xlu1 %4917 }
 0x5f5   :  { %7883 = vmatpush3.bf16.msra.mxu0 %v8222_v6 }
 0x5f6   :  { %7884 = vmatprep.subr.bf16.mxu0 %v11828_v2 }
 0x5f7   :  { %4433 = vrot.lane.b32.xlu1 %v4432_v62, %s8396_s26 }
 0x5fb   :  { %4445 = vrot.lane.b32.xlu1 %v4440_v36, %s8395_s24 }
 0x625   :  { %v4360_v51 = vpop.permute.xlu1 %4359 }
 0x626   :  { %v4428_v13 = vpop.permute.xlu0 %4427 }
 0x629   :  { %v4420_v30 = vpop.permute.xlu1 %4419 }
 0x62a   :  { %v4362_v38 = vpop.permute.xlu0 %4361 }
 0x62d   :  { %v4368_v4 = vpop.permute.xlu1 %4367 }
 0x62e   :  { %v4418_v61 = vpop.permute.xlu0 %4417 }
 0x62f   :  { %v10329_v31 = vsel %vm706_vm3, %v10154_v24, %v4418_v61  ;;  %v4783_v24 = vrot.slane %v10274_v54, %v8642_v46  ;;  %v4651_v61 = vrot.slane %v10209_v10, %v8642_v46  ;;  %v4695_v10 = vrot.slane %v10241_v49, %v8642_v46 }
 0x630   :  { %v5360_v62 = vmul.bf16 %v10319_v18, %v10329_v31  ;;  %v4583_v34 = vrot.slane %v10329_v31, 4 }
 0x631   :  { %v4358_v15 = vpop.permute.xlu1 %4357 }
 0x632   :  { %5532 = vrot.lane.b32.xlu0 %v5360_v62, %s8396_s26  ;;  %v4422_v36 = vpop.permute.xlu0 %4421  ;;  %v10353_v47 = vsel %vm706_vm3, %v10146_v33, %v4358_v15  ;;  %v10369_v33 = vcombine.low %v4783_v24, %v4794_v53  ;;  %v10383_v62 = vsel %vm706_vm3, %v4360_v51, %v4362_v38 }
 0x633   :  { %v10345_v60 = vsel %vm706_vm3, %v4420_v30, %v4422_v36  ;;  %v4568_v15 = vrot.slane %v10353_v47, 4  ;;  %v4569_v49 = vrot.slane %v10383_v62, 4 }
 0x634   :  { %v4585_v32 = vrot.slane %v10345_v60, 4  ;;  %v5361_v37 = vmul.bf16 %v10333_v3, %v10345_v60 }
 0x635   :  { %v4426_v63 = vpop.permute.xlu1 %4425 }
 0x636   :  { %v10357_v54 = vsel %vm706_vm3, %v10148_v27, %v4426_v63  ;;  %5534 = vrot.lane.b32.xlu0 %v5361_v37, %s8396_s26  ;;  %v4370_v11 = vpop.permute.xlu0 %4369  ;;  %v10363_v30 = vsel %vm706_vm3, %v4583_v34, %v4585_v32  ;;  %v4805_v27 = vrot.slane %v10278_v44, %v8642_v46  ;;  %v4570_v37 = vsel %vm706_vm3, %v4568_v15, %v4569_v49 }
 0x637   :  { %v4587_v19 = vrot.slane %v10357_v54, 4  ;;  %5466 = vrot.lane.b32.xlu1 %v10363_v30, %s8394_s25  ;;  %v5362_v44 = vmul.bf16 %v10369_v33, %v10357_v54  ;;  %v10389_v41 = vsel %vm706_vm3, %v4368_v4, %v4370_v11  ;;  %v8223_v4 = vld [vmem:[%s11821_s10 + $0x38] sm:$0xff]  }
 0x638   :  { %v10407_v24 = vcombine.low %v4805_v27, %v4816_v5  ;;  %7885 = vmatpush3.bf16.msra.mxu0 %v8223_v4  ;;  %v4673_v27 = vrot.slane %v10226_v8, %v8642_v46  ;;  %v4684_v5 = vrot.slane %v10229_v7, %v8642_v46 }
 0x639   :  { %v4430_v36 = vpop.permute.xlu1 %4429  ;;  %v10392_v55 = vsel %vm706_vm3, %v4585_v32, %v4587_v19 }
 0x63a   :  { %v10399_v51 = vsel %vm706_vm3, %v4428_v13, %v4430_v36  ;;  %v4366_v38 = vpop.permute.xlu0 %4365  ;;  %5468 = vrot.lane.b32.xlu0 %v10392_v55, %s8394_s25  ;;  %v4573_v13 = vrot.slane %v10389_v41, 4  ;;  %v10441_v8 = vcombine.low %v4673_v27, %v4684_v5 }
 0x63b   :  { %v4589_v53 = vrot.slane %v10399_v51, 4  ;;  %v10413_v58 = vsel %vm706_vm3, %v10160_v59, %v4366_v38  ;;  %5536 = vrot.lane.b32.xlu1 %v5362_v44, %s8396_s26  ;;  %v5363_v63 = vmul.bf16 %v10407_v24, %v10399_v51  ;;  %v10426_v59 = vcombine.low %v4651_v61, %v4662_v35 }
 0x63c   :  { %v4571_v32 = vrot.slane %v10413_v58, 4  ;;  %v10435_v44 = vcombine.low %v4695_v10, %v4706_v40 }
 0x63d   :  { %v4376_v11 = vpop.permute.xlu1 %4375  ;;  %v10424_v6 = vsel %vm706_vm3, %v4587_v19, %v4589_v53  ;;  %v5328_v19 = vmul.bf16 %v10426_v59, %v4570_v37 }
 0x63e   :  { %v4574_v15 = vsel %vm706_vm3, %v4571_v32, %v4573_v13  ;;  %5470 = vrot.lane.b32.xlu0 %v10424_v6, %s8394_s25  ;;  %v4572_v61 = vsel %vm706_vm3, %v4569_v49, %v4571_v32 }
 0x63f   :  { %5538 = vrot.lane.b32.xlu1 %v5363_v63, %s8396_s26  ;;  %v5330_v36 = vmul.bf16 %v10435_v44, %v4574_v15  ;;  %v5329_v40 = vmul.bf16 %v10441_v8, %v4572_v61 }
 0x641   :  { %v4374_v35 = vpop.permute.xlu1 %4373 }
 0x642   :  { %v10445_v7 = vsel %vm706_vm3, %v10176_v42, %v4374_v35  ;;  %5405 = vrot.lane.b32.xlu0 %v5328_v19, %s8395_s24  ;;  %v4384_v42 = vpop.permute.xlu0 %4383 }
 0x643   :  { %v4575_v10 = vrot.slane %v10445_v7, 4  ;;  %5409 = vrot.lane.b32.xlu1 %v5330_v36, %s8395_s24  ;;  %v5356_v4 = vmul.bf16 %v10426_v59, %v10445_v7 }
 0x645   :  { %v4576_v38 = vsel %vm706_vm3, %v4573_v13, %v4575_v10 }
 0x646   :  { %5407 = vrot.lane.b32.xlu0 %v5329_v40, %s8395_s24 }
 0x647   :  { %5456 = vrot.lane.b32.xlu1 %v4576_v38, %s8394_s25 }
 0x64a   :  { %5524 = vrot.lane.b32.xlu0 %v5356_v4, %s8396_s26  ;;  %v4717_v4 = vrot.slane %v10254_v14, %v8642_v46  ;;  %v4827_v14 = vrot.slane %v10284_v9, %v8642_v46 }
 0x64e   :  { %4491 = vrot.lane.b32.xlu0 %v10234_v43, %s8394_s25 }
 0x64f   :  { %v10459_v49 = vpop.permute.xlu0 %4939 }
 0x652   :  { %v10461_v32 = vpop.permute.xlu1 %4928 }
 0x653   :  { %v10463_v37 = vpop.permute.xlu0 %4961 }
 0x656   :  { %v10465_v13 = vpop.permute.xlu1 %4950 }
 0x657   :  { %v4378_v63 = vpop.permute.xlu0 %4377 }
 0x658   :  { %v10468_v27 = vsel %vm706_vm3, %v4376_v11, %v4378_v63  ;;  %v4728_v63 = vrot.slane %v10259_v17, %v8642_v46 }
 0x659   :  { %v4577_v5 = vrot.slane %v10468_v27, 4  ;;  %v5357_v15 = vmul.bf16 %v10441_v8, %v10468_v27 }
 0x65a   :  { %v10473_v19 = vpop.permute.xlu1 %4481 }
 0x65b   :  { %5526 = vrot.lane.b32.xlu0 %v5357_v15, %s8396_s26  ;;  %v4578_v61 = vsel %vm706_vm3, %v4575_v10, %v4577_v5 }
 0x65c   :  { %5458 = vrot.lane.b32.xlu1 %v4578_v61, %s8394_s25 }
 0x65e   :  { %v4382_v35 = vpop.permute.xlu1 %4381 }
 0x65f   :  { %v10480_v36 = vsel %vm706_vm3, %v10179_v50, %v4382_v35  ;;  %v10494_v50 = vcombine.low %v4717_v4, %v4728_v63  ;;  %v10508_v4 = vcombine.low %v4827_v14, %v4838_v0  ;;  %v4849_v0 = vrot.slane %v10286_v12, %v8642_v46  ;;  %v10528_v63 = vpop.permute.xlu0 %4485 }
 0x660   :  { %v4579_v11 = vrot.slane %v10480_v36, 4  ;;  %v5358_v40 = vmul.bf16 %v10435_v44, %v10480_v36 }
 0x661   :  { %11845 = vst [vmem:[#allocation3_spill] sm:$0xff] %v10508_v4  ;;  %v5336_v52 = vmul.bf16 %v10508_v4, %v10363_v30  ;;  %v8374_v30 = vld [vmem:[%s11811_s1 + $0x8c] sm:$0xf] }
 0x662   :  { %5528 = vrot.lane.b32.xlu1 %v5358_v40, %s8396_s26  ;;  %v10490_v10 = vpop.permute.xlu1 %4483  ;;  %v4580_v15 = vsel %vm706_vm3, %v4577_v5, %v4579_v11 }
 0x663   :  { %5460 = vrot.lane.b32.xlu0 %v4580_v15, %s8394_s25  ;;  %v10541_v14 = vpop.permute.xlu0 %4972 }
 0x666   :  { %v4386_v35 = vpop.permute.xlu1 %4385 }
 0x667   :  { %v10501_v2 = vsel %vm706_vm3, %v4384_v42, %v4386_v35  ;;  %v5331_v42 = vmul.bf16 %v10494_v50, %v4576_v38  ;;  %v5332_v35 = vmul.bf16 %v10319_v18, %v4578_v61  ;;  %v5333_v61 = vmul.bf16 %v10333_v3, %v4580_v15 }
 0x668   :  { %v4581_v17 = vrot.slane %v10501_v2, 4  ;;  %v5359_v40 = vmul.bf16 %v10494_v50, %v10501_v2  ;;  %v4340_v15 = vmax.f32 %v10224_v45, 0.0 }
 0x66a   :  { %5530 = vrot.lane.b32.xlu1 %v5359_v40, %s8396_s26  ;;  %v4582_v5 = vsel %vm706_vm3, %v4579_v11, %v4581_v17  ;;  %v4584_v9 = vsel %vm706_vm3, %v4581_v17, %v4583_v34  ;;  %v4860_v11 = vrot.slane %v10288_v56, %v8642_v46  ;;  %v4339_v34 = vmax.f32 %v10219_v21, 0.0  ;;  %v8375_v21 = vld [vmem:[%s11811_s1 + $0x88] sm:$0xf]  ;;  %v10551_v17 = vpop.permute.xlu0 %4994  ;;  %v8376_v40 = vld [vmem:[%s11811_s1 + $0x90] sm:$0xf] }
 0x66b   :  { %5462 = vrot.lane.b32.xlu0 %v4582_v5, %s8394_s25 }
 0x66c   :  { %v10534_v38 = vcombine.low %v4849_v0, %v4860_v11  ;;  %v10537_v12 = vpack.c.bf16 %v4339_v34, %v4339_v34  ;;  %v4882_v0 = vrot.slane %v10292_v20, %v8642_v46  ;;  %v5334_v34 = vmul.bf16 %v10369_v33, %v4582_v5 }
 0x66d   :  { %v5335_v5 = vmul.bf16 %v10407_v24, %v4584_v9 }
 0x66e   :  { %5464 = vrot.lane.b32.xlu1 %v4584_v9, %s8394_s25  ;;  %11846 = vst [vmem:[#allocation4_spill] sm:$0xff] %v10534_v38  ;;  %v5337_v56 = vmul.bf16 %v10534_v38, %v10392_v55  ;;  %v10553_v55 = vpop.permute.xlu1 %4983  ;;  %v10566_v11 = vpop.permute.xlu0 %4489 }
 0x66f   :  { %5421 = vrot.lane.b32.xlu0 %v5336_v52, %s8395_s24  ;;  %v8377_v52 = vld [vmem:[%s11811_s1 + $0x94] sm:$0xf] }
 0x672   :  { %5411 = vrot.lane.b32.xlu1 %v5331_v42, %s8395_s24  ;;  %v4871_v42 = vrot.slane %v10290_v25, %v8642_v46  ;;  %v8378_v25 = vld [vmem:[%s11811_s1 + $0x98] sm:$0xf] }
 0x673   :  { %5027 = vperm.xlu0 %7997, %v8374_v30   ;;  %v10570_v30 = vpop.permute.xlu1 %5005 }
 0x674   :  { %v10576_v45 = vcombine.low %v4871_v42, %v4882_v0 }
 0x676   :  { %4493 = vrot.lane.b32.xlu1 %v4488_v16, %s8395_s24  ;;  %v4496_v16 = vrot.slane %v10537_v12, 4  ;;  %11847 = vst [vmem:[#allocation5_spill] sm:$0xff] %v10576_v45  ;;  %v5338_v20 = vmul.bf16 %v10576_v45, %v10424_v6 }
 0x677   :  { %5413 = vrot.lane.b32.xlu0 %v5332_v35, %s8395_s24  ;;  %v10574_v35 = vpack.c.bf16 %v4340_v15, %v4340_v15  ;;  %v8380_v15 = vld [vmem:[%s11811_s1 + $0x9c] sm:$0xf] }
 0x67a   :  { %5016 = vperm.xlu1 %7996, %v8375_v21   ;;  %v4504_v21 = vrot.slane %v10574_v35, 4 }
 0x67b   :  { %5423 = vrot.lane.b32.xlu0 %v5337_v56, %s8395_s24  ;;  %v4444_v56 = vpop.permute.xlu0 %4443 }
 0x67e   :  { %4497 = vrot.lane.b32.xlu1 %v4496_v16, %s8396_s26 }
 0x67f   :  { %5415 = vrot.lane.b32.xlu0 %v5333_v61, %s8395_s24  ;;  %v4438_v61 = vpop.permute.xlu0 %4437 }
 0x682   :  { %5038 = vperm.xlu1 %7996, %v8376_v40  }
 0x683   :  { %5049 = vperm.xlu0 %7997, %v8377_v52   ;;  %v8379_v52 = vld [vmem:[%s11811_s1 + $0xa0] sm:$0xf]  ;;  %v4442_v9 = vpop.permute.xlu0 %4441 }
 0x686   :  { %4499 = vrot.lane.b32.xlu1 %v10537_v12, %s8394_s25 }
 0x687   :  { %4501 = vrot.lane.b32.xlu0 %v4496_v16, %s8395_s24  ;;  %v4436_v16 = vpop.permute.xlu1 %4435 }
 0x68a   :  { %5417 = vrot.lane.b32.xlu1 %v5334_v34, %s8395_s24  ;;  %v10605_v34 = vsel %vm706_vm3, %v4436_v16, %v4438_v61 }
 0x68b   :  { %5060 = vperm.xlu0 %7997, %v8378_v25   ;;  %v4434_v40 = vpop.permute.xlu1 %4433  ;;  %v10612_v25 = vsel %vm706_vm3, %v10252_v57, %v4442_v9  ;;  %v4593_v61 = vrot.slane %v10605_v34, 4 }
 0x68c   :  { %v10594_v6 = vsel %vm706_vm3, %v10250_v1, %v4434_v40  ;;  %v8381_v1 = vld [vmem:[%s11811_s1 + $0xa4] sm:$0xf]  ;;  %v4595_v40 = vrot.slane %v10612_v25, 4 }
 0x68d   :  { %v4591_v42 = vrot.slane %v10594_v6, 4  ;;  %v5364_v0 = vmul.bf16 %v10508_v4, %v10594_v6 }
 0x68e   :  { %5425 = vrot.lane.b32.xlu1 %v5338_v20, %s8395_s24 }
 0x68f   :  { %4505 = vrot.lane.b32.xlu0 %v4504_v21, %s8396_s26  ;;  %v4446_v20 = vpop.permute.xlu1 %4445  ;;  %v4592_v16 = vsel %vm706_vm3, %v4589_v53, %v4591_v42  ;;  %v4594_v9 = vsel %vm706_vm3, %v4591_v42, %v4593_v61  ;;  %v5366_v42 = vmul.bf16 %v10576_v45, %v10612_v25 }
 0x692   :  { %5419 = vrot.lane.b32.xlu1 %v5335_v5, %s8395_s24  ;;  %v5365_v5 = vmul.bf16 %v10534_v38, %v10605_v34 }
 0x693   :  { %5082 = vperm.xlu0 %7997, %v8379_v52   ;;  %v10624_v52 = vsel %vm706_vm3, %v4444_v56, %v4446_v20  ;;  %v4904_v56 = vrot.slane %v10294_v26, %v8642_v46  ;;  %v4915_v20 = vrot.slane %v10303_v39, %v8642_v46  ;;  %v8382_v39 = vld [vmem:[%s11811_s1 + $0xac] sm:$0xf] }
 0x694   :  { %v4597_v57 = vrot.slane %v10624_v52, 4 }
 0x696   :  { %5071 = vperm.xlu1 %7996, %v8380_v15   ;;  %v10630_v15 = vsel %vm706_vm3, %v4593_v61, %v4595_v40  ;;  %v10659_v61 = vsel %vm706_vm3, %v10199_v48, %v10473_v19 }
 0x697   :  { %4507 = vrot.lane.b32.xlu0 %v10574_v35, %s8394_s25 }
 0x69a   :  { %5093 = vperm.xlu1 %7996, %v8381_v1   ;;  %v4926_v1 = vrot.slane %v10301_v22, %v8642_v46 }
 0x69b   :  { %5540 = vrot.lane.b32.xlu0 %v5364_v0, %s8396_s26  ;;  %v4893_v0 = vrot.slane %v10296_v29, %v8642_v46 }
 0x69c   :  { %v10662_v22 = vcombine.low %v4915_v20, %v4926_v1  ;;  %v10686_v20 = vsel %vm706_vm3, %v10490_v10, %v10528_v63 }
 0x69d   :  { %v10654_v29 = vcombine.low %v4893_v0, %v4904_v56 }
 0x69e   :  { %5472 = vrot.lane.b32.xlu1 %v4592_v16, %s8394_s25  ;;  %11849 = vst [vmem:[#allocation7_spill] sm:$0xff] %v10662_v22  ;;  %v5368_v56 = vmul.bf16 %v10662_v22, %v10659_v61 }
 0x69f   :  { %5542 = vrot.lane.b32.xlu0 %v5365_v5, %s8396_s26  ;;  %11848 = vst [vmem:[#allocation6_spill] sm:$0xff] %v10654_v29  ;;  %v5339_v48 = vmul.bf16 %v10654_v29, %v4592_v16 }
 0x6a2   :  { %4509 = vrot.lane.b32.xlu1 %v4504_v21, %s8395_s24  ;;  %v4598_v21 = vsel %vm706_vm3, %v4595_v40, %v4597_v57  ;;  %v5367_v40 = vmul.bf16 %v10654_v29, %v10624_v52  ;;  %v4599_v29 = vrot.slane %v10659_v61, 4 }
 0x6a3   :  { %5476 = vrot.lane.b32.xlu0 %v10630_v15, %s8394_s25 }
 0x6a4   :  { %v10634_v53 = vpop.permute.xlu0 %5532  ;;  %v4600_v45 = vsel %vm706_vm3, %v4597_v57, %v4599_v29 }
 0x6a6   :  { %5474 = vrot.lane.b32.xlu1 %v4594_v9, %s8394_s25 }
 0x6a7   :  { %5478 = vrot.lane.b32.xlu0 %v4598_v21, %s8394_s25 }
 0x6a8   :  { %v10650_v5 = vpop.permute.xlu0 %5534 }
 0x6a9   :  { %v10652_v26 = vpop.permute.xlu1 %5466 }
 0x6aa   :  { %5544 = vrot.lane.b32.xlu1 %v5366_v42, %s8396_s26  ;;  %v8383_v42 = vld [vmem:[%s11811_s1 + $0xb0] sm:$0xf] }
 0x6ab   :  { %5115 = vperm.xlu0 %7997, %v8382_v39  }
 0x6ac   :  { %v10669_v23 = vpop.permute.xlu0 %5468 }
 0x6ad   :  { %v10673_v0 = vpop.permute.xlu1 %5536 }
 0x6ae   :  { %5546 = vrot.lane.b32.xlu1 %v5367_v40, %s8396_s26  ;;  %v5340_v40 = vmul.bf16 %v10662_v22, %v4594_v9  ;;  %v4959_v22 = vrot.slane %v10465_v13, %v8642_v46  ;;  %v8385_v13 = vld [vmem:[%s11811_s1 + $0xb4] sm:$0xf] }
 0x6af   :  { %5548 = vrot.lane.b32.xlu0 %v5368_v56, %s8396_s26  ;;  %v4601_v56 = vrot.slane %v10686_v20, 4 }
 0x6b0   :  { %v10678_v19 = vpop.permute.xlu0 %5470 }
 0x6b1   :  { %v10680_v1 = vpop.permute.xlu1 %5538  ;;  %v4602_v9 = vsel %vm706_vm3, %v4599_v29, %v4601_v56 }
 0x6b2   :  { %5427 = vrot.lane.b32.xlu1 %v5339_v48, %s8395_s24  ;;  %v8384_v48 = vld [vmem:[%s11811_s1 + $0xa8] sm:$0xf] }
 0x6b3   :  { %5126 = vperm.xlu0 %7997, %v8383_v42   ;;  %v4937_v42 = vrot.slane %v10461_v32, %v8642_v46  ;;  %v4970_v32 = vrot.slane %v10463_v37, %v8642_v46 }
 0x6b4   :  { %v5406_v39 = vpop.permute.xlu0 %5405 }
 0x6b5   :  { %v5410_v16 = vpop.permute.xlu1 %5409 }
 0x6b6   :  { %5104 = vperm.xlu1 %7996, %v8384_v48   ;;  %v5575_v48 = vsel %vm2397_vm6, %v10353_v47, %v5406_v39  ;;  %v10719_v47 = vcombine.low %v4959_v22, %v4970_v32  ;;  %v11850_v39 = vmov 0.0  }
 0x6b7   :  { %5429 = vrot.lane.b32.xlu0 %v5340_v40, %s8395_s24  ;;  %v4948_v40 = vrot.slane %v10459_v49, %v8642_v46  ;;  %v8386_v49 = vld [vmem:[%s11811_s1 + $0xbc] sm:$0xf] }
 0x6b8   :  { %v5408_v10 = vpop.permute.xlu0 %5407 }
 0x6b9   :  { %v5457_v63 = vpop.permute.xlu1 %5456  ;;  %v10714_v29 = vcombine.low %v4937_v42, %v4948_v40  ;;  %v4981_v42 = vrot.slane %v10541_v14, %v8642_v46 }
 0x6ba   :  { %5480 = vrot.lane.b32.xlu1 %v4600_v45, %s8394_s25  ;;  %v5625_v57 = vsel %vm1719_vm4, %v5575_v48, %v5457_v63  ;;  %v10732_v63 = vsel %vm706_vm3, %v10234_v43, %v10566_v11  ;;  %v4992_v43 = vrot.slane %v10553_v55, %v8642_v46  ;;  %v8387_v11 = vld [vmem:[%s11811_s1 + $0xb8] sm:$0xf] }
 0x6bb   :  { %5482 = vrot.lane.b32.xlu0 %v4602_v9, %s8394_s25  ;;  %v5341_v37 = vmul.bf16 %v10714_v29, %v10630_v15  ;;  %v5370_v22 = vmul.bf16 %v10719_v47, %v10732_v63  ;;  %v4603_v15 = vrot.slane %v10732_v63, 4 }
 0x6bc   :  { %v5525_v38 = vpop.permute.xlu0 %5524  ;;  %v10753_v40 = vcombine.low %v4981_v42, %v4992_v43 }
 0x6bd   :  { %v5672_v4 = vsel %vm2403_vm7, %v5625_v57, %v5525_v38  ;;  %v5342_v38 = vmul.bf16 %v10719_v47, %v4598_v21  ;;  %v10751_v48 = vsel %vm706_vm3, %v4601_v56, %v4603_v15  ;;  %v5577_v57 = vsel %vm2397_vm6, %v10383_v62, %v5408_v10 }
 0x6be   :  { %5137 = vperm.xlu1 %7996, %v8385_v13   ;;  %7887 = vmatmul.mubr.bf16.vlgmr.msra.gmra.mrb[136].mxu0 %v5672_v4  ;;  %v5369_v4 = vmul.bf16 %v10714_v29, %v10686_v20  ;;  %v5343_v14 = vmul.bf16 %v10753_v40, %v4600_v45  ;;  %v5579_v10 = vsel %vm2397_vm6, %v10413_v58, %v5410_v16 }
 0x6bf   :  { %5159 = vperm.xlu0 %7997, %v8386_v49   ;;  %7890 = vmatprep.mubr.msk.bf16.mxu0 %vm8392_vm1, %v11850_v39  ;;  %v5014_v49 = vrot.slane %v10570_v30, %v8642_v46 }
 0x6c0   :  { %v4492_v21 = vpop.permute.xlu0 %4491 }
 0x6c2   :  { %5431 = vrot.lane.b32.xlu1 %v5341_v37, %s8395_s24  ;;  %v5003_v37 = vrot.slane %v10551_v17, %v8642_v46 }
 0x6c3   :  { %5433 = vrot.lane.b32.xlu0 %v5342_v38, %s8395_s24 }
 0x6c4   :  { %v10769_v62 = vcombine.low %v5003_v37, %v5014_v49 }
 0x6c6   :  { %5550 = vrot.lane.b32.xlu1 %v5369_v4, %s8396_s26  ;;  %v8388_v4 = vld [vmem:[%s11811_s1 + $0xc0] sm:$0xf] }
 0x6c7   :  { %5552 = vrot.lane.b32.xlu0 %v5370_v22, %s8396_s26  ;;  %v5344_v22 = vmul.bf16 %v10769_v62, %v4602_v9 }
 0x6ca   :  { %5148 = vperm.xlu1 %7996, %v8387_v11  }
 0x6cd   :  { %v5527_v32 = vpop.permute.xlu0 %5526 }
 0x6ce   :  { %5484 = vrot.lane.b32.xlu1 %v10751_v48, %s8394_s25  ;;  %v5459_v55 = vpop.permute.xlu1 %5458 }
 0x6cf   :  { %v5627_v13 = vsel %vm1719_vm4, %v5577_v57, %v5459_v55 }
 0x6d0   :  { %v5675_v56 = vsel %vm2403_vm7, %v5627_v13, %v5527_v32 }
 0x6d1   :  { %7891 = vmatmul.mubr.bf16.gmra.mrb[140].mxu0 %v5675_v56 }
 0x6d2   :  { %5435 = vrot.lane.b32.xlu1 %v5343_v14, %s8395_s24  ;;  %7894 = vmatprep.mubr.msk.bf16.mxu0 %vm8392_vm1, %v11850_v39 }
 0x6d4   :  { %v5529_v30 = vpop.permute.xlu1 %5528 }
 0x6d5   :  { %v5461_v38 = vpop.permute.xlu0 %5460 }
 0x6d6   :  { %v5629_v45 = vsel %vm1719_vm4, %v5579_v10, %v5461_v38  ;;  %5170 = vperm.xlu1 %7996, %v8388_v4  }
 0x6d7   :  { %v5678_v17 = vsel %vm2403_vm7, %v5629_v45, %v5529_v30 }
 0x6d9   :  { %7895 = vmatmul.mubr.bf16.gmra.mrb[144].mxu0 %v5678_v17 }
 0x6da   :  { %5437 = vrot.lane.b32.xlu1 %v5344_v22, %s8395_s24  ;;  %7898 = vmatprep.mubr.msk.bf16.mxu0 %vm8392_vm1, %v11850_v39 }
 0x6dc   :  { %v5531_v58 = vpop.permute.xlu1 %5530 }
 0x6dd   :  { %v5463_v11 = vpop.permute.xlu0 %5462 }
 0x6e0   :  { %v5465_v16 = vpop.permute.xlu1 %5464 }
 0x6e1   :  { %v10794_v14 = vpop.permute.xlu0 %5421 }
 0x6e4   :  { %v5412_v43 = vpop.permute.xlu1 %5411 }
 0x6e5   :  { %v5581_v42 = vsel %vm2397_vm6, %v10389_v41, %v5412_v43 }
 0x6e6   :  { %v5631_v57 = vsel %vm1719_vm4, %v5581_v42, %v5463_v11 }
 0x6e7   :  { %v5681_v55 = vsel %vm2403_vm7, %v5631_v57, %v5531_v58 }
 0x6e8   :  { %7899 = vmatmul.mubr.bf16.gmra.mrb[148].mxu0 %v5681_v55  ;;  %v4494_v32 = vpop.permute.xlu1 %4493 }
 0x6e9   :  { %v10787_v9 = vsel %vm706_vm3, %v4492_v21, %v4494_v32  ;;  %7902 = vmatprep.mubr.msk.bf16.mxu0 %vm8392_vm1, %v11850_v39 }
 0x6ea   :  { %v4605_v13 = vrot.slane %v10787_v9, 4  ;;  %v5371_v41 = vmul.bf16 %v10753_v40, %v10787_v9 }
 0x6ec   :  { %v4606_v49 = vsel %vm706_vm3, %v4603_v15, %v4605_v13 }
 0x6ed   :  { %5486 = vrot.lane.b32.xlu0 %v4606_v49, %s8394_s25 }
 0x6f1   :  { %5554 = vrot.lane.b32.xlu0 %v5371_v41, %s8396_s26 }
 0x6f2   :  { %v5028_v56 = vpop.permute.xlu0 %5027 }
 0x6f3   :  { %v5036_v17 = vrot.slane %v5028_v56, %v8642_v46 }
 0x6f6   :  { %v5414_v37 = vpop.permute.xlu0 %5413 }
 0x6f7   :  { %v5583_v21 = vsel %vm2397_vm6, %v10445_v7, %v5414_v37 }
 0x6f8   :  { %v5633_v10 = vsel %vm1719_vm4, %v5583_v21, %v5465_v16 }
 0x6f9   :  { %v5017_v38 = vpop.permute.xlu1 %5016  ;;  %v5684_v15 = vsel %vm2403_vm7, %v5633_v10, %v10634_v53 }
 0x6fa   :  { %v10804_v30 = vpop.permute.xlu0 %5423  ;;  %7903 = vmatmul.mubr.bf16.gmra.mrb[152].mxu0 %v5684_v15  ;;  %v5025_v45 = vrot.slane %v5017_v38, %v8642_v46 }
 0x6fb   :  { %7906 = vmatprep.mubr.msk.bf16.mxu0 %vm8392_vm1, %v11850_v39 }
 0x6fc   :  { %v10819_v43 = vcombine.low %v5025_v45, %v5036_v17 }
 0x6fd   :  { %v4498_v4 = vpop.permute.xlu1 %4497 }
 0x6fe   :  { %v10812_v7 = vsel %vm706_vm3, %v10537_v12, %v4498_v4  ;;  %v5416_v22 = vpop.permute.xlu0 %5415 }
 0x6ff   :  { %v4607_v58 = vrot.slane %v10812_v7, 4  ;;  %v5372_v53 = vmul.bf16 %v10769_v62, %v10812_v7  ;;  %v5585_v16 = vsel %vm2397_vm6, %v10468_v27, %v5416_v22  ;;  %v5345_v27 = vmul.bf16 %v10819_v43, %v10751_v48 }
 0x700   :  { %v5635_v11 = vsel %vm1719_vm4, %v5585_v16, %v10652_v26 }
 0x701   :  { %5556 = vrot.lane.b32.xlu1 %v5372_v53, %s8396_s26  ;;  %v5039_v42 = vpop.permute.xlu1 %5038  ;;  %v5687_v12 = vsel %vm2403_vm7, %v5635_v11, %v10650_v5  ;;  %v4608_v57 = vsel %vm706_vm3, %v4605_v13, %v4607_v58 }
 0x702   :  { %v5050_v55 = vpop.permute.xlu0 %5049  ;;  %7907 = vmatmul.mubr.bf16.gmra.mrb[156].mxu0 %v5687_v12  ;;  %5488 = vrot.lane.b32.xlu0 %v4608_v57, %s8394_s25  ;;  %v5047_v26 = vrot.slane %v5039_v42, %v8642_v46 }
 0x703   :  { %7910 = vmatprep.mubr.msk.bf16.mxu0 %vm8392_vm1, %v11850_v39  ;;  %v5058_v32 = vrot.slane %v5050_v55, %v8642_v46 }
 0x705   :  { %v4500_v41 = vpop.permute.xlu1 %4499  ;;  %v10841_v21 = vcombine.low %v5047_v26, %v5058_v32 }
 0x706   :  { %v4502_v56 = vpop.permute.xlu0 %4501  ;;  %5439 = vrot.lane.b32.xlu0 %v5345_v27, %s8395_s24 }
 0x707   :  { %v10836_v5 = vsel %vm706_vm3, %v4500_v41, %v4502_v56 }
 0x708   :  { %v4609_v13 = vrot.slane %v10836_v5, 4  ;;  %v5373_v37 = vmul.bf16 %v10819_v43, %v10836_v5 }
 0x709   :  { %v5418_v10 = vpop.permute.xlu1 %5417 }
 0x70a   :  { %v5587_v48 = vsel %vm2397_vm6, %v10480_v36, %v5418_v10  ;;  %v5061_v38 = vpop.permute.xlu0 %5060  ;;  %5558 = vrot.lane.b32.xlu0 %v5373_v37, %s8396_s26  ;;  %v10847_v15 = vsel %vm706_vm3, %v4607_v58, %v4609_v13  ;;  %v5346_v36 = vmul.bf16 %v10841_v21, %v4606_v49 }
 0x70b   :  { %5490 = vrot.lane.b32.xlu1 %v10847_v15, %s8394_s25  ;;  %v5637_v45 = vsel %vm1719_vm4, %v5587_v48, %v10669_v23  ;;  %v5069_v55 = vrot.slane %v5061_v38, %v8642_v46 }
 0x70c   :  { %v5690_v4 = vsel %vm2403_vm7, %v5637_v45, %v10673_v0 }
 0x70d   :  { %7911 = vmatmul.mubr.bf16.gmra.mrb[160].mxu0 %v5690_v4  ;;  %v10855_v17 = vpop.permute.xlu1 %5425 }
 0x70e   :  { %v4506_v22 = vpop.permute.xlu0 %4505  ;;  %7914 = vmatprep.mubr.msk.bf16.mxu0 %vm8392_vm1, %v11850_v39 }
 0x70f   :  { %v10862_v58 = vsel %vm706_vm3, %v10574_v35, %v4506_v22  ;;  %5441 = vrot.lane.b32.xlu1 %v5346_v36, %s8395_s24 }
 0x710   :  { %v4611_v23 = vrot.slane %v10862_v58, 4  ;;  %v5374_v0 = vmul.bf16 %v10841_v21, %v10862_v58 }
 0x711   :  { %v5420_v53 = vpop.permute.xlu1 %5419 }
 0x712   :  { %v5589_v16 = vsel %vm2397_vm6, %v10501_v2, %v5420_v53  ;;  %v5083_v49 = vpop.permute.xlu0 %5082  ;;  %v10871_v11 = vsel %vm706_vm3, %v4609_v13, %v4611_v23  ;;  %v4341_v13 = vmax.f32 %v10187_v28, 0.0 }
 0x713   :  { %5492 = vrot.lane.b32.xlu0 %v10871_v11, %s8394_s25  ;;  %5560 = vrot.lane.b32.xlu1 %v5374_v0, %s8396_s26  ;;  %v5639_v35 = vsel %vm1719_vm4, %v5589_v16, %v10678_v19  ;;  %v5591_v19 = vsel %vm2397_vm6, %v10329_v31, %v10794_v14  ;;  %v5091_v4 = vrot.slane %v5083_v49, %v8642_v46 }
 0x714   :  { %v5693_v42 = vsel %vm2403_vm7, %v5639_v35, %v10680_v1  ;;  %v5593_v0 = vsel %vm2397_vm6, %v10345_v60, %v10804_v30 }
 0x715   :  { %7915 = vmatmul.mubr.bf16.gmra.mrb[164].mxu0 %v5693_v42  ;;  %v5072_v12 = vpop.permute.xlu1 %5071 }
 0x716   :  { %v5080_v2 = vrot.slane %v5072_v12, %v8642_v46  ;;  %v4508_v27 = vpop.permute.xlu0 %4507  ;;  %7918 = vmatprep.mubr.msk.bf16.mxu0 %vm8392_vm1, %v11850_v39 }
 0x718   :  { %v10884_v26 = vcombine.low %v5069_v55, %v5080_v2 }
 0x719   :  { %v5094_v32 = vpop.permute.xlu1 %5093 }
 0x71a   :  { %v5541_v41 = vpop.permute.xlu0 %5540  ;;  %v5347_v56 = vmul.bf16 %v10884_v26, %v4608_v57  ;;  %v5102_v38 = vrot.slane %v5094_v32, %v8642_v46  ;;  %v10897_v57 = vpack.c.bf16 %v4341_v13, %v4341_v13  ;;  %v5595_v32 = vsel %vm2397_vm6, %v10357_v54, %v10855_v17 }
 0x71c   :  { %5443 = vrot.lane.b32.xlu0 %v5347_v56, %s8395_s24  ;;  %v10906_v22 = vcombine.low %v5091_v4, %v5102_v38  ;;  %v4615_v49 = vrot.slane %v10897_v57, 4  ;;  %v5354_v2 = vsel %vm706_vm3, %v10897_v57, 0 }
 0x71d   :  { %v5473_v1 = vpop.permute.xlu1 %5472 }
 0x71e   :  { %v5641_v37 = vsel %vm1719_vm4, %v5591_v19, %v5473_v1  ;;  %v5543_v10 = vpop.permute.xlu0 %5542  ;;  %v5348_v60 = vmul.bf16 %v10906_v22, %v10847_v15 }
 0x71f   :  { %v5696_v48 = vsel %vm2403_vm7, %v5641_v37, %v5541_v41 }
 0x720   :  { %7919 = vmatmul.mubr.bf16.gmra.mrb[168].mxu0 %v5696_v48 }
 0x721   :  { %v4510_v45 = vpop.permute.xlu1 %4509  ;;  %7922 = vmatprep.mubr.msk.bf16.mxu0 %vm8392_vm1, %v11850_v39 }
 0x722   :  { %v10901_v31 = vsel %vm706_vm3, %v4508_v27, %v4510_v45  ;;  %v5477_v28 = vpop.permute.xlu0 %5476  ;;  %v5376_v27 = vmul.bf16 %v10906_v22, %v5354_v2 }
 0x723   :  { %v4613_v14 = vrot.slane %v10901_v31, 4  ;;  %v5375_v36 = vmul.bf16 %v10884_v26, %v10901_v31  ;;  %v5645_v41 = vsel %vm1719_vm4, %v5595_v32, %v5477_v28 }
 0x725   :  { %5562 = vrot.lane.b32.xlu0 %v5375_v36, %s8396_s26  ;;  %v5475_v53 = vpop.permute.xlu1 %5474  ;;  %v4614_v16 = vsel %vm706_vm3, %v4611_v23, %v4613_v14  ;;  %v10918_v55 = vsel %vm706_vm3, %v4613_v14, %v4615_v49 }
 0x726   :  { %v5643_v35 = vsel %vm1719_vm4, %v5593_v0, %v5475_v53  ;;  %v5479_v42 = vpop.permute.xlu0 %5478  ;;  %5494 = vrot.lane.b32.xlu1 %v4614_v16, %s8394_s25 }
 0x727   :  { %v5699_v12 = vsel %vm2403_vm7, %v5643_v35, %v5543_v10  ;;  %v11851_v10 = vmov 0  }
 0x728   :  { %7923 = vmatmul.mubr.bf16.gmra.mrb[172].mxu0 %v5699_v12 }
 0x729   :  { %5496 = vrot.lane.b32.xlu0 %v10918_v55, %s8394_s25  ;;  %v5545_v30 = vpop.permute.xlu1 %5544  ;;  %7926 = vmatprep.mubr.msk.bf16.mxu0 %vm8392_vm1, %v11850_v39 }
 0x72a   :  { %v5116_v23 = vpop.permute.xlu0 %5115  ;;  %5445 = vrot.lane.b32.xlu1 %v5348_v60, %s8395_s24  ;;  %v5702_v19 = vsel %vm2403_vm7, %v5645_v41, %v5545_v30 }
 0x72b   :  { %v5124_v48 = vrot.slane %v5116_v23, %v8642_v46 }
 0x72d   :  { %v5547_v15 = vpop.permute.xlu1 %5546 }
 0x72e   :  { %v5549_v56 = vpop.permute.xlu0 %5548  ;;  %5564 = vrot.lane.b32.xlu1 %v5376_v27, %s8396_s26 }
 0x730   :  { %7927 = vmatmul.mubr.bf16.gmra.mrb[176].mxu0 %v5702_v19 }
 0x731   :  { %v5428_v1 = vpop.permute.xlu1 %5427  ;;  %7930 = vmatprep.mubr.msk.bf16.mxu0 %vm8392_vm1, %v11850_v39 }
 0x732   :  { %v5597_v13 = vsel %vm2397_vm6, %v10399_v51, %v5428_v1  ;;  %v5127_v37 = vpop.permute.xlu0 %5126  ;;  %5498 = vrot.lane.b32.xlu1 %v11851_v10, %s8394_s25 }
 0x733   :  { %v5647_v54 = vsel %vm1719_vm4, %v5597_v13, %v5479_v42  ;;  %v5135_v35 = vrot.slane %v5127_v37, %v8642_v46 }
 0x734   :  { %v5705_v4 = vsel %vm2403_vm7, %v5647_v54, %v5547_v15 }
 0x735   :  { %v5105_v17 = vpop.permute.xlu1 %5104 }
 0x736   :  { %v5113_v38 = vrot.slane %v5105_v17, %v8642_v46  ;;  %v5430_v45 = vpop.permute.xlu0 %5429 }
 0x737   :  { %v5599_v36 = vsel %vm2397_vm6, %v10594_v6, %v5430_v45 }
 0x738   :  { %v10946_v28 = vcombine.low %v5113_v38, %v5124_v48  ;;  %7931 = vmatmul.mubr.bf16.gmra.mrb[180].mxu0 %v5705_v4 }
 0x739   :  { %v5481_v14 = vpop.permute.xlu1 %5480  ;;  %7934 = vmatprep.mubr.msk.bf16.mxu0 %vm8392_vm1, %v11850_v39 }
 0x73a   :  { %v5349_v51 = vmul.bf16 %v10946_v28, %v10871_v11  ;;  %v5649_v0 = vsel %vm1719_vm4, %v5599_v36, %v5481_v14  ;;  %v5483_v53 = vpop.permute.xlu0 %5482  ;;  %v5377_v42 = vmul.bf16 0, %v10946_v28 }
 0x73b   :  { %v5708_v60 = vsel %vm2403_vm7, %v5649_v0, %v5549_v56 }
 0x73c   :  { %5447 = vrot.lane.b32.xlu0 %v5349_v51, %s8395_s24 }
 0x73d   :  { %v5138_v49 = vpop.permute.xlu1 %5137 }
 0x73e   :  { %v5146_v12 = vrot.slane %v5138_v49, %v8642_v46  ;;  %v5160_v2 = vpop.permute.xlu0 %5159 }
 0x73f   :  { %v5168_v19 = vrot.slane %v5160_v2, %v8642_v46 }
 0x740   :  { %v10960_v30 = vcombine.low %v5135_v35, %v5146_v12  ;;  %5566 = vrot.lane.b32.xlu0 %v5377_v42, %s8396_s26  ;;  %7935 = vmatmul.mubr.bf16.gmra.mrb[184].mxu0 %v5708_v60 }
 0x741   :  { %v5432_v6 = vpop.permute.xlu1 %5431  ;;  %7938 = vmatprep.mubr.msk.bf16.mxu0 %vm8392_vm1, %v11850_v39 }
 0x742   :  { %v5350_v11 = vmul.bf16 %v10960_v30, %v4614_v16  ;;  %v5378_v23 = vmul.bf16 0, %v10960_v30  ;;  %v5601_v27 = vsel %vm2397_vm6, %v10605_v34, %v5432_v6  ;;  %v5434_v56 = vpop.permute.xlu0 %5433 }
 0x743   :  { %v5651_v15 = vsel %vm1719_vm4, %v5601_v27, %v5483_v53  ;;  %v5603_v13 = vsel %vm2397_vm6, %v10612_v25, %v5434_v56 }
 0x744   :  { %5568 = vrot.lane.b32.xlu0 %v5378_v23, %s8396_s26  ;;  %5449 = vrot.lane.b32.xlu1 %v5350_v11, %s8395_s24 }
 0x745   :  { %v5551_v32 = vpop.permute.xlu1 %5550 }
 0x746   :  { %v5711_v41 = vsel %vm2403_vm7, %v5651_v15, %v5551_v32  ;;  %v5553_v54 = vpop.permute.xlu0 %5552 }
 0x748   :  { %7939 = vmatmul.mubr.bf16.gmra.mrb[188].mxu0 %v5711_v41 }
 0x749   :  { %v5149_v16 = vpop.permute.xlu1 %5148  ;;  %7942 = vmatprep.mubr.msk.bf16.mxu0 %vm8392_vm1, %v11850_v39 }
 0x74a   :  { %v5157_v34 = vrot.slane %v5149_v16, %v8642_v46 }
 0x74c   :  { %v10981_v1 = vcombine.low %v5157_v34, %v5168_v19 }
 0x74d   :  { %v5485_v37 = vpop.permute.xlu1 %5484 }
 0x74e   :  { %v5351_v17 = vmul.bf16 %v10981_v1, %v10918_v55  ;;  %v5379_v48 = vmul.bf16 0, %v10981_v1  ;;  %v5653_v38 = vsel %vm1719_vm4, %v5603_v13, %v5485_v37  ;;  %v11030_v37 = vld [vmem:[%s11822_s11] ss:$0 sm:$0xff] }
 0x74f   :  { %v5714_v45 = vsel %vm2403_vm7, %v5653_v38, %v5553_v54  ;;  %v8224_v54 = vld [vmem:[%s11823_s12] sm:$0xff]  }
 0x750   :  { %5570 = vrot.lane.b32.xlu0 %v5379_v48, %s8396_s26  ;;  %5451 = vrot.lane.b32.xlu1 %v5351_v17, %s8395_s24 }
 0x751   :  { %7943 = vmatmul.mubr.bf16.gmra.mrb[192].mxu0 %v5714_v45  ;;  %v5436_v4 = vpop.permute.xlu1 %5435  ;;  %6742 = vmatpush1.bf16.msra.mxu1 %v8224_v54  ;;  %v8225_v45 = vld [vmem:[%s11823_s12 + $0x8] sm:$0xff]  }
 0x752   :  { %7946 = vmatprep.mubr.msk.bf16.mxu0 %vm8392_vm1, %v11850_v39  ;;  %v5605_v0 = vsel %vm2397_vm6, %v10624_v52, %v5436_v4  ;;  %6743 = vmatprep.subr.bf16.mxu1 %v11851_v10 }
 0x755   :  { %v5171_v25 = vpop.permute.xlu1 %5170  ;;  %6744 = vmatpush1.bf16.msra.mxu1 %v8225_v45 }
 0x756   :  { %v5179_v55 = vrot.slane %v5171_v25, %v8642_v46  ;;  %6745 = vmatprep.subr.bf16.mxu1 %v11851_v10 }
 0x758   :  { %v7508_v14 = vcombine.low %v5179_v55, %v5179_v55 }
 0x759   :  { %v5438_v46 = vpop.permute.xlu1 %5437 }
 0x75a   :  { %v10997_v51 = vmul.bf16 0, %v7508_v14  ;;  %v5607_v12 = vsel %vm2397_vm6, %v10659_v61, %v5438_v46 }
 0x75c   :  { %5572 = vrot.lane.b32.xlu0 %v10997_v51, %s8396_s26  ;;  %5453 = vrot.lane.b32.xlu1 %v10997_v51, %s8395_s24 }
 0x75f   :  { %v5487_v36 = vpop.permute.xlu0 %5486 }
 0x760   :  { %v5655_v53 = vsel %vm1719_vm4, %v5605_v0, %v5487_v36 }
 0x763   :  { %v5555_v49 = vpop.permute.xlu0 %5554 }
 0x764   :  { %v5717_v35 = vsel %vm2403_vm7, %v5655_v53, %v5555_v49  ;;  %v8226_v53 = vld [vmem:[%s11823_s12 + $0x10] sm:$0xff]  }
 0x765   :  { %7947 = vmatmul.mubr.bf16.gmra.mrb[196].mxu0 %v5717_v35  ;;  %6746 = vmatpush1.bf16.msra.mxu1 %v8226_v53 }
 0x766   :  { %7950 = vmatprep.mubr.msk.bf16.mxu0 %vm8392_vm1, %v11850_v39  ;;  %6747 = vmatprep.subr.bf16.mxu1 %v11851_v10 }
 0x773   :  { %v5557_v6 = vpop.permute.xlu1 %5556 }
 0x774   :  { %v5489_v60 = vpop.permute.xlu0 %5488 }
 0x775   :  { %v5657_v11 = vsel %vm1719_vm4, %v5607_v12, %v5489_v60 }
 0x776   :  { %v5720_v2 = vsel %vm2403_vm7, %v5657_v11, %v5557_v6  ;;  %v8227_v11 = vld [vmem:[%s11823_s12 + $0x18] sm:$0xff]  }
 0x777   :  { %7951 = vmatmul.mubr.bf16.gmra.mrb[200].mxu0 %v5720_v2  ;;  %6748 = vmatpush1.bf16.msra.mxu1 %v8227_v11 }
 0x778   :  { %v5440_v52 = vpop.permute.xlu0 %5439  ;;  %7954 = vmatprep.mubr.msk.bf16.mxu0 %vm8392_vm1, %v11850_v39  ;;  %6749 = vmatprep.subr.bf16.mxu1 %v11851_v10 }
 0x779   :  { %v5609_v27 = vsel %vm2397_vm6, %v10686_v20, %v5440_v52  ;;  %v8228_v52 = vld [vmem:[%s11823_s12 + $0x20] sm:$0xff]  }
 0x77b   :  { %6750 = vmatpush1.bf16.msra.mxu1 %v8228_v52 }
 0x77c   :  { %v5559_v15 = vpop.permute.xlu0 %5558  ;;  %6751 = vmatprep.subr.bf16.mxu1 %v11851_v10 }
 0x77d   :  { %v5491_v32 = vpop.permute.xlu1 %5490 }
 0x77e   :  { %v5659_v41 = vsel %vm1719_vm4, %v5609_v27, %v5491_v32 }
 0x77f   :  { %v5723_v61 = vsel %vm2403_vm7, %v5659_v41, %v5559_v15 }
 0x780   :  { %7955 = vmatmul.mubr.bf16.gmra.mrb[204].mxu0 %v5723_v61  ;;  %v8229_v61 = vld [vmem:[%s11823_s12 + $0x28] sm:$0xff]  }
 0x781   :  { %v5442_v56 = vpop.permute.xlu1 %5441  ;;  %7958 = vmatprep.mubr.msk.bf16.mxu0 %vm8392_vm1, %v11850_v39  ;;  %6752 = vmatpush1.bf16.msra.mxu1 %v8229_v61 }
 0x782   :  { %v5611_v16 = vsel %vm2397_vm6, %v10732_v63, %v5442_v56  ;;  %6753 = vmatprep.subr.bf16.mxu1 %v11851_v10 }
 0x785   :  { %v5493_v19 = vpop.permute.xlu0 %5492  ;;  %v5561_v34 = vpop.permute.xlu1 %5560 }
 0x786   :  { %v5661_v13 = vsel %vm1719_vm4, %v5611_v16, %v5493_v19 }
 0x787   :  { %v5726_v20 = vsel %vm2403_vm7, %v5661_v13, %v5561_v34  ;;  %v8230_v34 = vld [vmem:[%s11823_s12 + $0x30] sm:$0xff]  }
 0x788   :  { %7959 = vmatmul.mubr.bf16.gmra.mrb[208].mxu0 %v5726_v20  ;;  %6754 = vmatpush1.bf16.msra.mxu1 %v8230_v34 }
 0x789   :  { %7962 = vmatprep.mubr.msk.bf16.mxu0 %vm8392_vm1, %v11850_v39  ;;  %6755 = vmatprep.subr.bf16.mxu1 %v11851_v10 }
 0x78e   :  { %v5444_v36 = vpop.permute.xlu0 %5443 }
 0x78f   :  { %v5613_v49 = vsel %vm2397_vm6, %v10787_v9, %v5444_v36  ;;  %v8232_v36 = vld [vmem:[%s11823_s12 + $0x40] sm:$0xff]  }
 0x791   :  { %v5851_v63 = vpop.f32.mrb[136].mxu0 }
 0x792   :  { %v5852_v17 = vadd.f32 %v11030_v37, %v5851_v63  ;;  %v7888_v38 = vpop.f32.mrb[137].mxu0 }
 0x793   :  { %v5854_v4 = vpop.f32.mrb[138].mxu0 }
 0x794   :  { %v6049_v25 = vmax.f32 %v5852_v17, 0.0  ;;  %v5855_v55 = vadd.f32 %v11030_v37, %v5854_v4  ;;  %v7889_v14 = vpop.f32.mrb[139].mxu0  ;;  %v8231_v17 = vld [vmem:[%s11823_s12 + $0x38] sm:$0xff]  }
 0x795   :  { %6756 = vmatpush1.bf16.msra.mxu1 %v8231_v17 }
 0x796   :  { %v6050_v0 = vmax.f32 %v5855_v55, 0.0  ;;  %6757 = vmatprep.subr.bf16.mxu1 %v11851_v10 }
 0x797   :  { %v5563_v12 = vpop.permute.xlu0 %5562 }
 0x798   :  { %v11047_v35 = vpack.c.bf16 %v6050_v0, %v6049_v25  ;;  %v5495_v46 = vpop.permute.xlu1 %5494 }
 0x799   :  { %v5663_v60 = vsel %vm1719_vm4, %v5613_v49, %v5495_v46  ;;  %6758 = vmatpush1.bf16.msra.mxu1 %v8232_v36 }
 0x79a   :  { %v5729_v6 = vsel %vm2403_vm7, %v5663_v60, %v5563_v12  ;;  %v6148_v4 = vrot.slane %v11047_v35, 4  ;;  %6759 = vmatprep.subr.bf16.mxu1 %v11851_v10 }
 0x79b   :  { %7963 = vmatmul.mubr.bf16.gmra.mrb[212].mxu0 %v5729_v6  ;;  %v5497_v27 = vpop.permute.xlu0 %5496 }
 0x79c   :  { %v5446_v2 = vpop.permute.xlu1 %5445  ;;  %7966 = vmatprep.mubr.msk.bf16.mxu0 %vm8392_vm1, %v11850_v39 }
 0x79d   :  { %v5615_v9 = vsel %vm2397_vm6, %v10812_v7, %v5446_v2 }
 0x79e   :  { %v5665_v15 = vsel %vm1719_vm4, %v5615_v9, %v5497_v27 }
 0x7a0   :  { %v5565_v32 = vpop.permute.xlu1 %5564 }
 0x7a1   :  { %v5732_v41 = vsel %vm2403_vm7, %v5665_v15, %v5565_v32 }
 0x7a3   :  { %7967 = vmatmul.mubr.bf16.gmra.mrb[216].mxu0 %v5732_v41  ;;  %v8234_v41 = vld [vmem:[%s11823_s12 + $0x50] sm:$0xff]  }
 0x7a4   :  { %v5859_v7 = vpop.f32.mrb[140].mxu0  ;;  %7970 = vmatprep.mubr.msk.bf16.mxu0 %vm8392_vm1, %v11850_v39  ;;  %v11093_v60 = vpop.permute.xlu1 %5498 }
 0x7a5   :  { %v5860_v56 = vadd.f32 %v11030_v37, %v5859_v7  ;;  %v7892_v16 = vpop.f32.mrb[141].mxu0 }
 0x7a6   :  { %v5862_v19 = vpop.f32.mrb[142].mxu0 }
 0x7a7   :  { %v5863_v13 = vadd.f32 %v11030_v37, %v5862_v19  ;;  %v7893_v20 = vpop.f32.mrb[143].mxu0  ;;  %v6051_v54 = vmax.f32 %v5860_v56, 0.0 }
 0x7a8   :  { %v8235_v20 = vld [vmem:[%s11823_s12 + $0x58] sm:$0xff]  }
 0x7a9   :  { %v6052_v63 = vmax.f32 %v5863_v13, 0.0 }
 0x7ab   :  { %v11081_v38 = vpack.c.bf16 %v6052_v63, %v6051_v54 }
 0x7ac   :  { %v5867_v45 = vpop.f32.mrb[144].mxu0 }
 0x7ad   :  { %v6149_v25 = vrot.slane %v11081_v38, 4  ;;  %v5868_v55 = vadd.f32 %v11030_v37, %v5867_v45  ;;  %v7896_v14 = vpop.f32.mrb[145].mxu0 }
 0x7ae   :  { %v5870_v0 = vpop.f32.mrb[146].mxu0  ;;  %v5448_v53 = vpop.permute.xlu0 %5447 }
 0x7af   :  { %v5871_v49 = vadd.f32 %v11030_v37, %v5870_v0  ;;  %v5617_v46 = vsel %vm2397_vm6, %v10836_v5, %v5448_v53  ;;  %v7897_v12 = vpop.f32.mrb[147].mxu0  ;;  %v6150_v6 = vsel %vm706_vm3, %v6148_v4, %v6149_v25  ;;  %v6053_v2 = vmax.f32 %v5868_v55, 0.0  ;;  %v8233_v5 = vld [vmem:[%s11823_s12 + $0x48] sm:$0xff]   ;;  %v8236_v55 = vld [vmem:[%s11823_s12 + $0x60] sm:$0xff]  }
 0x7b0   :  { %v6221_v11 = vmul.bf16 %v10426_v59, %v6150_v6  ;;  %v5667_v27 = vsel %vm1719_vm4, %v5617_v46, %v11093_v60  ;;  %6760 = vmatpush1.bf16.msra.mxu1 %v8233_v5  ;;  %v8237_v0 = vld [vmem:[%s11823_s12 + $0x68] sm:$0xff]  }
 0x7b1   :  { %v6054_v9 = vmax.f32 %v5871_v49, 0.0  ;;  %6761 = vmatprep.subr.bf16.mxu1 %v11851_v10 }
 0x7b2   :  { %v5567_v52 = vpop.permute.xlu0 %5566  ;;  %6293 = vrot.lane.b32.xlu0 %v6221_v11, %s8394_s25 }
 0x7b3   :  { %v11104_v32 = vpack.c.bf16 %v6054_v9, %v6053_v2  ;;  %v5735_v15 = vsel %vm2403_vm7, %v5667_v27, %v5567_v52  ;;  %v8238_v2 = vld [vmem:[%s11823_s12 + $0x70] sm:$0xff]   ;;  %v8239_v27 = vld [vmem:[%s11823_s12 + $0x78] sm:$0xff]  }
 0x7b4   :  { %7971 = vmatmul.mubr.bf16.gmra.mrb[220].mxu0 %v5735_v15  ;;  %6762 = vmatpush1.bf16.msra.mxu1 %v8234_v41 }
 0x7b5   :  { %v6151_v61 = vrot.slane %v11104_v32, 4  ;;  %7974 = vmatprep.mubr.msk.bf16.mxu0 %vm8392_vm1, %v11850_v39  ;;  %6763 = vmatprep.subr.bf16.mxu1 %v11851_v10 }
 0x7b6   :  { %v5450_v7 = vpop.permute.xlu1 %5449  ;;  %v5569_v13 = vpop.permute.xlu0 %5568 }
 0x7b7   :  { %v5619_v56 = vsel %vm2397_vm6, %v10862_v58, %v5450_v7  ;;  %v6152_v16 = vsel %vm706_vm3, %v6149_v25, %v6151_v61 }
 0x7b8   :  { %v6222_v19 = vmul.bf16 %v10441_v8, %v6152_v16  ;;  %v5668_v34 = vsel %vm1719_vm4, %v5619_v56, %v11093_v60  ;;  %6764 = vmatpush1.bf16.msra.mxu1 %v8235_v20 }
 0x7b9   :  { %v5738_v58 = vsel %vm2403_vm7, %v5668_v34, %v5569_v13  ;;  %6765 = vmatprep.subr.bf16.mxu1 %v11851_v10 }
 0x7ba   :  { %6295 = vrot.lane.b32.xlu0 %v6222_v19, %s8394_s25 }
 0x7bb   :  { %v5875_v54 = vpop.f32.mrb[148].mxu0 }
 0x7bc   :  { %v5876_v63 = vadd.f32 %v11030_v37, %v5875_v54  ;;  %v7900_v17 = vpop.f32.mrb[149].mxu0  ;;  %7975 = vmatmul.mubr.bf16.gmra.mrb[224].mxu0 %v5738_v58  ;;  %6766 = vmatpush1.bf16.msra.mxu1 %v8236_v55 }
 0x7bd   :  { %v5878_v45 = vpop.f32.mrb[150].mxu0  ;;  %7978 = vmatprep.mubr.msk.bf16.mxu0 %vm8392_vm1, %v11850_v39  ;;  %6767 = vmatprep.subr.bf16.mxu1 %v11851_v10 }
 0x7be   :  { %v5879_v4 = vadd.f32 %v11030_v37, %v5878_v45  ;;  %v7901_v25 = vpop.f32.mrb[151].mxu0  ;;  %v6055_v14 = vmax.f32 %v5876_v63, 0.0 }
 0x7c0   :  { %v6056_v36 = vmax.f32 %v5879_v4, 0.0  ;;  %6768 = vmatpush1.bf16.msra.mxu1 %v8237_v0 }
 0x7c1   :  { %6769 = vmatprep.subr.bf16.mxu1 %v11851_v10 }
 0x7c2   :  { %v11138_v53 = vpack.c.bf16 %v6056_v36, %v6055_v14  ;;  %v5452_v49 = vpop.permute.xlu1 %5451  ;;  %v5571_v6 = vpop.permute.xlu0 %5570 }
 0x7c3   :  { %v5621_v46 = vsel %vm2397_vm6, %v10901_v31, %v5452_v49 }
 0x7c4   :  { %v6153_v12 = vrot.slane %v11138_v53, 4  ;;  %v5669_v11 = vsel %vm1719_vm4, %v5621_v46, %v11093_v60  ;;  %6770 = vmatpush1.bf16.msra.mxu1 %v8238_v2 }
 0x7c5   :  { %v5741_v9 = vsel %vm2403_vm7, %v5669_v11, %v5571_v6  ;;  %6771 = vmatprep.subr.bf16.mxu1 %v11851_v10 }
 0x7c6   :  { %7979 = vmatmul.mubr.bf16.gmra.mrb[228].mxu0 %v5741_v9  ;;  %v6154_v52 = vsel %vm706_vm3, %v6151_v61, %v6153_v12 }
 0x7c7   :  { %v6223_v31 = vmul.bf16 %v10435_v44, %v6154_v52  ;;  %7982 = vmatprep.mubr.msk.bf16.mxu0 %vm8392_vm1, %v11850_v39 }
 0x7c8   :  { %6772 = vmatpush1.bf16.msra.mxu1 %v8239_v27 }
 0x7c9   :  { %6297 = vrot.lane.b32.xlu0 %v6223_v31, %s8394_s25 }
 0x7cd   :  { %v5883_v5 = vpop.f32.mrb[152].mxu0 }
 0x7ce   :  { %v5884_v15 = vadd.f32 %v11030_v37, %v5883_v5  ;;  %v7904_v41 = vpop.f32.mrb[153].mxu0  ;;  %v5454_v61 = vpop.permute.xlu1 %5453 }
 0x7cf   :  { %v5886_v7 = vpop.f32.mrb[154].mxu0  ;;  %v5623_v56 = vsel %vm2397_vm6, %v10897_v57, %v5454_v61  ;;  %v5573_v19 = vpop.permute.xlu0 %5572 }
 0x7d0   :  { %v5887_v39 = vadd.f32 %v11030_v37, %v5886_v7  ;;  %v7905_v16 = vpop.f32.mrb[155].mxu0  ;;  %v5670_v10 = vsel %vm1719_vm4, %v5623_v56, %v11093_v60  ;;  %v6057_v34 = vmax.f32 %v5884_v15, 0.0 }
 0x7d1   :  { %v5744_v20 = vsel %vm2403_vm7, %v5670_v10, %v5573_v19 }
 0x7d2   :  { %v6058_v13 = vmax.f32 %v5887_v39, 0.0  ;;  %7983 = vmatmul.mubr.bf16.gmra.mrb[232].mxu0 %v5744_v20 }
 0x7d4   :  { %v11166_v54 = vpack.c.bf16 %v6058_v13, %v6057_v34 }
 0x7d5   :  { %v5891_v58 = vpop.f32.mrb[156].mxu0 }
 0x7d6   :  { %v6155_v63 = vrot.slane %v11166_v54, 4  ;;  %v5892_v17 = vadd.f32 %v11030_v37, %v5891_v58  ;;  %v7908_v57 = vpop.f32.mrb[157].mxu0  ;;  %v6248_v45 = vmul.bf16 %v10426_v59, %v11166_v54 }
 0x7d7   :  { %v5894_v4 = vpop.f32.mrb[158].mxu0 }
 0x7d8   :  { %v5895_v25 = vadd.f32 %v11030_v37, %v5894_v4  ;;  %v7909_v60 = vpop.f32.mrb[159].mxu0  ;;  %6364 = vrot.lane.b32.xlu1 %v6248_v45, %s8394_s25  ;;  %v11175_v55 = vsel %vm706_vm3, %v6153_v12, %v6155_v63  ;;  %v6059_v36 = vmax.f32 %v5892_v17, 0.0 }
 0x7d9   :  { %v6224_v14 = vmul.bf16 %v10494_v50, %v11175_v55 }
 0x7da   :  { %v6060_v0 = vmax.f32 %v5895_v25, 0.0 }
 0x7db   :  { %6299 = vrot.lane.b32.xlu0 %v6224_v14, %s8394_s25 }
 0x7dc   :  { %v11180_v49 = vpack.c.bf16 %v6060_v0, %v6059_v36 }
 0x7de   :  { %v6157_v59 = vrot.slane %v11180_v49, 4  ;;  %v6249_v46 = vmul.bf16 %v10441_v8, %v11180_v49 }
 0x7e0   :  { %v5899_v6 = vpop.f32.mrb[160].mxu0  ;;  %6366 = vrot.lane.b32.xlu1 %v6249_v46, %s8394_s25  ;;  %v11187_v12 = vsel %vm706_vm3, %v6155_v63, %v6157_v59 }
 0x7e1   :  { %v5900_v11 = vadd.f32 %v11030_v37, %v5899_v6  ;;  %v7912_v2 = vpop.f32.mrb[161].mxu0  ;;  %v6225_v9 = vmul.bf16 %v10319_v18, %v11187_v12 }
 0x7e2   :  { %v5902_v52 = vpop.f32.mrb[162].mxu0 }
 0x7e3   :  { %v5903_v31 = vadd.f32 %v11030_v37, %v5902_v52  ;;  %v7913_v27 = vpop.f32.mrb[163].mxu0  ;;  %6301 = vrot.lane.b32.xlu0 %v6225_v9, %s8394_s25  ;;  %v6061_v5 = vmax.f32 %v5900_v11, 0.0 }
 0x7e5   :  { %v6062_v8 = vmax.f32 %v5903_v31, 0.0 }
 0x7e7   :  { %v11194_v15 = vpack.c.bf16 %v6062_v8, %v6061_v5 }
 0x7e8   :  { %v5907_v41 = vpop.f32.mrb[164].mxu0 }
 0x7e9   :  { %v6159_v61 = vrot.slane %v11194_v15, 4  ;;  %v5908_v7 = vadd.f32 %v11030_v37, %v5907_v41  ;;  %v7916_v56 = vpop.f32.mrb[165].mxu0  ;;  %v6250_v39 = vmul.bf16 %v10435_v44, %v11194_v15 }
 0x7ea   :  { %v5910_v16 = vpop.f32.mrb[166].mxu0 }
 0x7eb   :  { %v5911_v19 = vadd.f32 %v11030_v37, %v5910_v16  ;;  %v7917_v10 = vpop.f32.mrb[167].mxu0  ;;  %6368 = vrot.lane.b32.xlu1 %v6250_v39, %s8394_s25  ;;  %v11203_v34 = vsel %vm706_vm3, %v6157_v59, %v6159_v61  ;;  %v6063_v20 = vmax.f32 %v5908_v7, 0.0 }
 0x7ec   :  { %v6226_v13 = vmul.bf16 %v10333_v3, %v11203_v34 }
 0x7ed   :  { %v6064_v58 = vmax.f32 %v5911_v19, 0.0 }
 0x7ee   :  { %6303 = vrot.lane.b32.xlu0 %v6226_v13, %s8394_s25 }
 0x7ef   :  { %v11208_v63 = vpack.c.bf16 %v6064_v58, %v6063_v20 }
 0x7f1   :  { %v6161_v44 = vrot.slane %v11208_v63, 4  ;;  %v6251_v17 = vmul.bf16 %v10494_v50, %v11208_v63 }
 0x7f3   :  { %v5915_v57 = vpop.f32.mrb[168].mxu0  ;;  %6370 = vrot.lane.b32.xlu1 %v6251_v17, %s8394_s25  ;;  %v11215_v45 = vsel %vm706_vm3, %v6159_v61, %v6161_v44  ;;  %v11852_v17 = vld [vmem:[#allocation3_spill] sm:$0xff] }
 0x7f4   :  { %v5916_v4 = vadd.f32 %v11030_v37, %v5915_v57  ;;  %v7920_v25 = vpop.f32.mrb[169].mxu0  ;;  %v6227_v60 = vmul.bf16 %v10369_v33, %v11215_v45 }
 0x7f5   :  { %v5918_v14 = vpop.f32.mrb[170].mxu0 }
 0x7f6   :  { %v5919_v36 = vadd.f32 %v11030_v37, %v5918_v14  ;;  %v7921_v0 = vpop.f32.mrb[171].mxu0  ;;  %6305 = vrot.lane.b32.xlu0 %v6227_v60, %s8394_s25  ;;  %v6065_v59 = vmax.f32 %v5916_v4, 0.0 }
 0x7f8   :  { %v6066_v50 = vmax.f32 %v5919_v36, 0.0 }
 0x7fa   :  { %v11222_v46 = vpack.c.bf16 %v6066_v50, %v6065_v59 }
 0x7fb   :  { %v5923_v6 = vpop.f32.mrb[172].mxu0 }
 0x7fc   :  { %v6163_v11 = vrot.slane %v11222_v46, 4  ;;  %v5924_v2 = vadd.f32 %v11030_v37, %v5923_v6  ;;  %v7924_v9 = vpop.f32.mrb[173].mxu0  ;;  %v6252_v52 = vmul.bf16 %v10319_v18, %v11222_v46 }
 0x7fd   :  { %v5926_v31 = vpop.f32.mrb[174].mxu0  ;;  %v11853_v9 = vld [vmem:[#allocation4_spill] sm:$0xff] }
 0x7fe   :  { %v5927_v27 = vadd.f32 %v11030_v37, %v5926_v31  ;;  %v7925_v5 = vpop.f32.mrb[175].mxu0  ;;  %6372 = vrot.lane.b32.xlu1 %v6252_v52, %s8394_s25  ;;  %v11231_v8 = vsel %vm706_vm3, %v6161_v44, %v6163_v11  ;;  %v6067_v61 = vmax.f32 %v5924_v2, 0.0 }
 0x7ff   :  { %v6228_v41 = vmul.bf16 %v10407_v24, %v11231_v8 }
 0x800   :  { %v6068_v7 = vmax.f32 %v5927_v27, 0.0 }
 0x801   :  { %6307 = vrot.lane.b32.xlu0 %v6228_v41, %s8394_s25 }
 0x802   :  { %v11236_v56 = vpack.c.bf16 %v6068_v7, %v6067_v61 }
 0x803   :  { %v5931_v39 = vpop.f32.mrb[176].mxu0 }
 0x804   :  { %v6165_v18 = vrot.slane %v11236_v56, 4  ;;  %v5932_v16 = vadd.f32 %v11030_v37, %v5931_v39  ;;  %v7928_v19 = vpop.f32.mrb[177].mxu0  ;;  %v6253_v10 = vmul.bf16 %v10333_v3, %v11236_v56 }
 0x805   :  { %v5934_v13 = vpop.f32.mrb[178].mxu0 }
 0x806   :  { %v5935_v20 = vadd.f32 %v11030_v37, %v5934_v13  ;;  %v7929_v58 = vpop.f32.mrb[179].mxu0  ;;  %6374 = vrot.lane.b32.xlu1 %v6253_v10, %s8394_s25  ;;  %v11245_v44 = vsel %vm706_vm3, %v6163_v11, %v6165_v18  ;;  %v6069_v4 = vmax.f32 %v5932_v16, 0.0  ;;  %v11854_v13 = vld [vmem:[#allocation5_spill] sm:$0xff] }
 0x807   :  { %v6229_v57 = vmul.bf16 %v11852_v17, %v11245_v44 }
 0x808   :  { %v6070_v25 = vmax.f32 %v5935_v20, 0.0 }
 0x809   :  { %6309 = vrot.lane.b32.xlu0 %v6229_v57, %s8394_s25 }
 0x80a   :  { %v11250_v60 = vpack.c.bf16 %v6070_v25, %v6069_v4 }
 0x80b   :  { %v5939_v14 = vpop.f32.mrb[180].mxu0 }
 0x80c   :  { %v6167_v3 = vrot.slane %v11250_v60, 4  ;;  %v5940_v36 = vadd.f32 %v11030_v37, %v5939_v14  ;;  %v7932_v0 = vpop.f32.mrb[181].mxu0  ;;  %v6254_v59 = vmul.bf16 %v10369_v33, %v11250_v60 }
 0x80d   :  { %v5942_v50 = vpop.f32.mrb[182].mxu0 }
 0x80e   :  { %v5943_v6 = vadd.f32 %v11030_v37, %v5942_v50  ;;  %v7933_v11 = vpop.f32.mrb[183].mxu0  ;;  %6376 = vrot.lane.b32.xlu1 %v6254_v59, %s8394_s25  ;;  %v11259_v2 = vsel %vm706_vm3, %v6165_v18, %v6167_v3  ;;  %v6071_v31 = vmax.f32 %v5940_v36, 0.0 }
 0x80f   :  { %v6230_v52 = vmul.bf16 %v11853_v9, %v11259_v2  ;;  %v11855_v11 = vld [vmem:[#allocation6_spill] sm:$0xff] }
 0x810   :  { %v6072_v27 = vmax.f32 %v5943_v6, 0.0 }
 0x811   :  { %6311 = vrot.lane.b32.xlu0 %v6230_v52, %s8394_s25 }
 0x812   :  { %v11264_v5 = vpack.c.bf16 %v6072_v27, %v6071_v31 }
 0x813   :  { %v5947_v41 = vpop.f32.mrb[184].mxu0 }
 0x814   :  { %v6169_v33 = vrot.slane %v11264_v5, 4  ;;  %v5948_v61 = vadd.f32 %v11030_v37, %v5947_v41  ;;  %v7936_v7 = vpop.f32.mrb[185].mxu0  ;;  %v6255_v39 = vmul.bf16 %v10407_v24, %v11264_v5 }
 0x815   :  { %v5950_v18 = vpop.f32.mrb[186].mxu0 }
 0x816   :  { %v5951_v16 = vadd.f32 %v11030_v37, %v5950_v18  ;;  %v7937_v19 = vpop.f32.mrb[187].mxu0  ;;  %6378 = vrot.lane.b32.xlu1 %v6255_v39, %s8394_s25  ;;  %v11273_v10 = vsel %vm706_vm3, %v6167_v3, %v6169_v33  ;;  %v6073_v58 = vmax.f32 %v5948_v61, 0.0 }
 0x817   :  { %v6231_v20 = vmul.bf16 %v11854_v13, %v11273_v10 }
 0x818   :  { %v6074_v57 = vmax.f32 %v5951_v16, 0.0 }
 0x819   :  { %6313 = vrot.lane.b32.xlu0 %v6231_v20, %s8394_s25 }
 0x81a   :  { %v11278_v4 = vpack.c.bf16 %v6074_v57, %v6073_v58  ;;  %v11856_v58 = vld [vmem:[#allocation7_spill] sm:$0xff] }
 0x81b   :  { %v5955_v25 = vpop.f32.mrb[188].mxu0 }
 0x81c   :  { %v6171_v24 = vrot.slane %v11278_v4, 4  ;;  %v5956_v14 = vadd.f32 %v11030_v37, %v5955_v25  ;;  %v7940_v36 = vpop.f32.mrb[189].mxu0  ;;  %v6256_v0 = vmul.bf16 %v11852_v17, %v11278_v4 }
 0x81d   :  { %v5958_v3 = vpop.f32.mrb[190].mxu0 }
 0x81e   :  { %v5959_v59 = vadd.f32 %v11030_v37, %v5958_v3  ;;  %v7941_v50 = vpop.f32.mrb[191].mxu0  ;;  %6380 = vrot.lane.b32.xlu1 %v6256_v0, %s8394_s25  ;;  %v11287_v6 = vsel %vm706_vm3, %v6169_v33, %v6171_v24  ;;  %v6075_v31 = vmax.f32 %v5956_v14, 0.0 }
 0x81f   :  { %v6232_v52 = vmul.bf16 %v11855_v11, %v11287_v6 }
 0x820   :  { %v6076_v27 = vmax.f32 %v5959_v59, 0.0 }
 0x821   :  { %6315 = vrot.lane.b32.xlu0 %v6232_v52, %s8394_s25 }
 0x822   :  { %v11292_v41 = vpack.c.bf16 %v6076_v27, %v6075_v31 }
 0x824   :  { %v6173_v17 = vrot.slane %v11292_v41, 4  ;;  %v5963_v61 = vpop.f32.mrb[192].mxu0  ;;  %v6257_v7 = vmul.bf16 %v11853_v9, %v11292_v41 }
 0x825   :  { %v5964_v39 = vadd.f32 %v11030_v37, %v5963_v61  ;;  %v7944_v18 = vpop.f32.mrb[193].mxu0 }
 0x826   :  { %v5966_v33 = vpop.f32.mrb[194].mxu0  ;;  %6382 = vrot.lane.b32.xlu1 %v6257_v7, %s8394_s25  ;;  %v11300_v16 = vsel %vm706_vm3, %v6171_v24, %v6173_v17 }
 0x827   :  { %v5967_v19 = vadd.f32 %v11030_v37, %v5966_v33  ;;  %v7945_v20 = vpop.f32.mrb[195].mxu0  ;;  %v6233_v57 = vmul.bf16 %v11856_v58, %v11300_v16  ;;  %v6077_v25 = vmax.f32 %v5964_v39, 0.0 }
 0x828   :  { %v6294_v20 = vpop.permute.xlu0 %6293 }
 0x829   :  { %v6078_v14 = vmax.f32 %v5967_v19, 0.0  ;;  %6317 = vrot.lane.b32.xlu0 %v6233_v57, %s8394_s25 }
 0x82b   :  { %v11306_v9 = vpack.c.bf16 %v6078_v14, %v6077_v25 }
 0x82d   :  { %v6175_v36 = vrot.slane %v11306_v9, 4  ;;  %v6258_v0 = vmul.bf16 %v11854_v13, %v11306_v9 }
 0x82f   :  { %6384 = vrot.lane.b32.xlu1 %v6258_v0, %s8394_s25  ;;  %v11313_v24 = vsel %vm706_vm3, %v6173_v17, %v6175_v36 }
 0x830   :  { %v6234_v3 = vmul.bf16 %v10714_v29, %v11313_v24 }
 0x832   :  { %6319 = vrot.lane.b32.xlu0 %v6234_v3, %s8394_s25 }
 0x838   :  { %v5971_v59 = vpop.f32.mrb[196].mxu0 }
 0x839   :  { %v5972_v50 = vadd.f32 %v11030_v37, %v5971_v59  ;;  %v7948_v52 = vpop.f32.mrb[197].mxu0 }
 0x83a   :  { %v5974_v31 = vpop.f32.mrb[198].mxu0 }
 0x83b   :  { %v5975_v27 = vadd.f32 %v11030_v37, %v5974_v31  ;;  %v7949_v61 = vpop.f32.mrb[199].mxu0  ;;  %v6079_v7 = vmax.f32 %v5972_v50, 0.0 }
 0x83d   :  { %v6080_v13 = vmax.f32 %v5975_v27, 0.0  ;;  %v6296_v27 = vpop.permute.xlu0 %6295 }
 0x83f   :  { %v11320_v39 = vpack.c.bf16 %v6080_v13, %v6079_v7 }
 0x841   :  { %v6177_v17 = vrot.slane %v11320_v39, 4  ;;  %v6259_v18 = vmul.bf16 %v11855_v11, %v11320_v39  ;;  %v6414_v11 = vsel %vm1719_vm4, %v11047_v35, %v6294_v20 }
 0x843   :  { %6386 = vrot.lane.b32.xlu1 %v6259_v18, %s8394_s25  ;;  %v11327_v33 = vsel %vm706_vm3, %v6175_v36, %v6177_v17 }
 0x844   :  { %v6235_v19 = vmul.bf16 %v10719_v47, %v11327_v33 }
 0x846   :  { %6321 = vrot.lane.b32.xlu0 %v6235_v19, %s8394_s25 }
 0x84a   :  { %v5979_v57 = vpop.f32.mrb[200].mxu0  ;;  %v6365_v25 = vpop.permute.xlu1 %6364 }
 0x84b   :  { %v5980_v14 = vadd.f32 %v11030_v37, %v5979_v57  ;;  %v7952_v0 = vpop.f32.mrb[201].mxu0  ;;  %v6513_v3 = vsel %vm1719_vm4, %v11175_v55, %v6365_v25  ;;  %v6418_v57 = vsel %vm1719_vm4, %v11081_v38, %v6296_v27 }
 0x84c   :  { %v5982_v59 = vpop.f32.mrb[202].mxu0  ;;  %6773 = vmatprep.mubr.bf16.mxu1 %v6513_v3 }
 0x84d   :  { %v5983_v36 = vadd.f32 %v11030_v37, %v5982_v59  ;;  %v7953_v50 = vpop.f32.mrb[203].mxu0  ;;  %6774 = vmatmul.mubr.bf16.vlgmr.msra.gmra.mrb[120].mxu1 %v6414_v11  ;;  %v6081_v52 = vmax.f32 %v5980_v14, 0.0 }
 0x84f   :  { %v6082_v31 = vmax.f32 %v5983_v36, 0.0  ;;  %v6298_v36 = vpop.permute.xlu0 %6297 }
 0x851   :  { %v11338_v61 = vpack.c.bf16 %v6082_v31, %v6081_v52 }
 0x852   :  { %v6367_v7 = vpop.permute.xlu1 %6366 }
 0x853   :  { %v6179_v13 = vrot.slane %v11338_v61, 4  ;;  %v5987_v18 = vpop.f32.mrb[204].mxu0  ;;  %v6517_v55 = vsel %vm1719_vm4, %v11187_v12, %v6367_v7  ;;  %v6260_v35 = vmul.bf16 %v11856_v58, %v11338_v61 }
 0x854   :  { %v5988_v19 = vadd.f32 %v11030_v37, %v5987_v18  ;;  %v7956_v20 = vpop.f32.mrb[205].mxu0  ;;  %6781 = vmatprep.mubr.bf16.mxu1 %v6517_v55 }
 0x855   :  { %6388 = vrot.lane.b32.xlu1 %v6260_v35, %s8394_s25  ;;  %v5990_v25 = vpop.f32.mrb[206].mxu0  ;;  %6782 = vmatmul.mubr.bf16.gmra.mrb[124].mxu1 %v6418_v57  ;;  %v11350_v14 = vsel %vm706_vm3, %v6177_v17, %v6179_v13  ;;  %v6422_v20 = vsel %vm1719_vm4, %v11104_v32, %v6298_v36 }
 0x856   :  { %v5991_v0 = vadd.f32 %v11030_v37, %v5990_v25  ;;  %v7957_v12 = vpop.f32.mrb[207].mxu0  ;;  %v6236_v58 = vmul.bf16 %v10753_v40, %v11350_v14  ;;  %v6083_v3 = vmax.f32 %v5988_v19, 0.0 }
 0x857   :  { %v6300_v12 = vpop.permute.xlu0 %6299 }
 0x858   :  { %v6084_v11 = vmax.f32 %v5991_v0, 0.0  ;;  %6323 = vrot.lane.b32.xlu0 %v6236_v58, %s8394_s25 }
 0x85a   :  { %v11356_v59 = vpack.c.bf16 %v6084_v11, %v6083_v3  ;;  %v6426_v11 = vsel %vm1719_vm4, %v11138_v53, %v6300_v12 }
 0x85b   :  { %v5995_v38 = vpop.f32.mrb[208].mxu0  ;;  %v6302_v36 = vpop.permute.xlu0 %6301 }
 0x85c   :  { %v6181_v50 = vrot.slane %v11356_v59, 4  ;;  %v5996_v52 = vadd.f32 %v11030_v37, %v5995_v38  ;;  %v7960_v17 = vpop.f32.mrb[209].mxu0  ;;  %v6261_v31 = vmul.bf16 %v10714_v29, %v11356_v59  ;;  %v6430_v53 = vsel %vm1719_vm4, %v11166_v54, %v6302_v36 }
 0x85d   :  { %v5998_v27 = vpop.f32.mrb[210].mxu0  ;;  %v6369_v7 = vpop.permute.xlu1 %6368 }
 0x85e   :  { %v5999_v18 = vadd.f32 %v11030_v37, %v5998_v27  ;;  %6390 = vrot.lane.b32.xlu1 %v6261_v31, %s8394_s25  ;;  %v7961_v55 = vpop.f32.mrb[211].mxu0  ;;  %v6521_v35 = vsel %vm1719_vm4, %v11203_v34, %v6369_v7  ;;  %v11367_v19 = vsel %vm706_vm3, %v6179_v13, %v6181_v50  ;;  %v6085_v57 = vmax.f32 %v5996_v52, 0.0 }
 0x85f   :  { %6789 = vmatprep.mubr.bf16.mxu1 %v6521_v35  ;;  %v6237_v29 = vmul.bf16 %v10769_v62, %v11367_v19 }
 0x860   :  { %v6086_v25 = vmax.f32 %v5999_v18, 0.0  ;;  %6790 = vmatmul.mubr.bf16.gmra.mrb[128].mxu1 %v6422_v20 }
 0x861   :  { %6325 = vrot.lane.b32.xlu0 %v6237_v29, %s8394_s25  ;;  %v6304_v29 = vpop.permute.xlu0 %6303 }
 0x862   :  { %v11374_v0 = vpack.c.bf16 %v6086_v25, %v6085_v57 }
 0x864   :  { %v6183_v34 = vrot.slane %v11374_v0, 4  ;;  %v6262_v13 = vmul.bf16 %v10719_v47, %v11374_v0 }
 0x865   :  { %v6371_v58 = vpop.permute.xlu1 %6370 }
 0x866   :  { %6392 = vrot.lane.b32.xlu1 %v6262_v13, %s8394_s25  ;;  %v6525_v32 = vsel %vm1719_vm4, %v11215_v45, %v6371_v58  ;;  %v11383_v3 = vsel %vm706_vm3, %v6181_v50, %v6183_v34 }
 0x867   :  { %6797 = vmatprep.mubr.bf16.mxu1 %v6525_v32  ;;  %v6238_v38 = vmul.bf16 %v10819_v43, %v11383_v3 }
 0x868   :  { %6798 = vmatmul.mubr.bf16.gmra.mrb[132].mxu1 %v6426_v11 }
 0x869   :  { %6327 = vrot.lane.b32.xlu0 %v6238_v38, %s8394_s25 }
 0x86e   :  { %v6003_v47 = vpop.f32.mrb[212].mxu0 }
 0x86f   :  { %v6004_v52 = vadd.f32 %v11030_v37, %v6003_v47  ;;  %v7964_v17 = vpop.f32.mrb[213].mxu0  ;;  %v6434_v47 = vsel %vm1719_vm4, %v11180_v49, %v6304_v29 }
 0x870   :  { %v6006_v31 = vpop.f32.mrb[214].mxu0  ;;  %v6373_v45 = vpop.permute.xlu1 %6372 }
 0x871   :  { %v6007_v50 = vadd.f32 %v11030_v37, %v6006_v31  ;;  %v7965_v27 = vpop.f32.mrb[215].mxu0  ;;  %v6529_v7 = vsel %vm1719_vm4, %v11231_v8, %v6373_v45  ;;  %v6087_v18 = vmax.f32 %v6004_v52, 0.0  ;;  %v6306_v31 = vpop.permute.xlu0 %6305 }
 0x872   :  { %6805 = vmatprep.mubr.bf16.mxu1 %v6529_v7  ;;  %v6438_v27 = vsel %vm1719_vm4, %v11194_v15, %v6306_v31 }
 0x873   :  { %v6088_v55 = vmax.f32 %v6007_v50, 0.0  ;;  %6806 = vmatmul.mubr.bf16.gmra.mrb[136].mxu1 %v6430_v53 }
 0x875   :  { %v11396_v35 = vpack.c.bf16 %v6088_v55, %v6087_v18 }
 0x876   :  { %v6011_v20 = vpop.f32.mrb[216].mxu0 }
 0x877   :  { %v6185_v57 = vrot.slane %v11396_v35, 4  ;;  %v6012_v25 = vadd.f32 %v11030_v37, %v6011_v20  ;;  %v7968_v12 = vpop.f32.mrb[217].mxu0  ;;  %v6263_v13 = vmul.bf16 %v10753_v40, %v11396_v35 }
 0x878   :  { %v6014_v8 = vpop.f32.mrb[218].mxu0  ;;  %v6375_v58 = vpop.permute.xlu1 %6374 }
 0x879   :  { %v6015_v32 = vadd.f32 %v11030_v37, %v6014_v8  ;;  %6394 = vrot.lane.b32.xlu1 %v6263_v13, %s8394_s25  ;;  %v7969_v54 = vpop.f32.mrb[219].mxu0  ;;  %v6533_v11 = vsel %vm1719_vm4, %v11245_v44, %v6375_v58  ;;  %v11407_v38 = vsel %vm706_vm3, %v6183_v34, %v6185_v57  ;;  %v6089_v36 = vmax.f32 %v6012_v25, 0.0 }
 0x87a   :  { %6813 = vmatprep.mubr.bf16.mxu1 %v6533_v11  ;;  %v6239_v40 = vmul.bf16 %v10841_v21, %v11407_v38 }
 0x87b   :  { %v6090_v52 = vmax.f32 %v6015_v32, 0.0  ;;  %6814 = vmatmul.mubr.bf16.gmra.mrb[140].mxu1 %v6434_v47 }
 0x87c   :  { %6329 = vrot.lane.b32.xlu0 %v6239_v40, %s8394_s25 }
 0x87d   :  { %v11414_v17 = vpack.c.bf16 %v6090_v52, %v6089_v36 }
 0x87f   :  { %v6187_v44 = vrot.slane %v11414_v17, 4  ;;  %v6264_v34 = vmul.bf16 %v10769_v62, %v11414_v17  ;;  %v6308_v62 = vpop.permute.xlu0 %6307 }
 0x880   :  { %v6377_v45 = vpop.permute.xlu1 %6376  ;;  %v6442_v15 = vsel %vm1719_vm4, %v11208_v63, %v6308_v62 }
 0x881   :  { %6396 = vrot.lane.b32.xlu1 %v6264_v34, %s8394_s25  ;;  %v6537_v49 = vsel %vm1719_vm4, %v11259_v2, %v6377_v45  ;;  %v11423_v50 = vsel %vm706_vm3, %v6185_v57, %v6187_v44 }
 0x882   :  { %6821 = vmatprep.mubr.bf16.mxu1 %v6537_v49  ;;  %v6240_v7 = vmul.bf16 %v10884_v26, %v11423_v50 }
 0x883   :  { %6822 = vmatmul.mubr.bf16.gmra.mrb[144].mxu1 %v6438_v27  ;;  %v6310_v58 = vpop.permute.xlu0 %6309 }
 0x884   :  { %6331 = vrot.lane.b32.xlu0 %v6240_v7, %s8394_s25  ;;  %v6446_v34 = vsel %vm1719_vm4, %v11222_v46, %v6310_v58 }
 0x887   :  { %v6019_v53 = vpop.f32.mrb[220].mxu0 }
 0x888   :  { %v6020_v18 = vadd.f32 %v11030_v37, %v6019_v53  ;;  %v7972_v55 = vpop.f32.mrb[221].mxu0  ;;  %v6379_v20 = vpop.permute.xlu1 %6378  ;;  %v8389_v53 = vld [vmem:[%s11822_s11] ss:$0 sm:$0xff] }
 0x889   :  { %v6022_v2 = vpop.f32.mrb[222].mxu0  ;;  %v6541_v29 = vsel %vm1719_vm4, %v11273_v10, %v6379_v20 }
 0x88a   :  { %v6023_v57 = vadd.f32 %v11030_v37, %v6022_v2  ;;  %v7973_v25 = vpop.f32.mrb[223].mxu0  ;;  %6829 = vmatprep.mubr.bf16.mxu1 %v6541_v29  ;;  %v6091_v12 = vmax.f32 %v6020_v18, 0.0 }
 0x88b   :  { %6830 = vmatmul.mubr.bf16.gmra.mrb[148].mxu1 %v6442_v15 }
 0x88c   :  { %v6092_v13 = vmax.f32 %v6023_v57, 0.0 }
 0x88e   :  { %v11436_v8 = vpack.c.bf16 %v6092_v13, %v6091_v12 }
 0x88f   :  { %v6027_v32 = vpop.f32.mrb[224].mxu0 }
 0x890   :  { %v6189_v54 = vrot.slane %v11436_v8, 4  ;;  %v6028_v11 = vadd.f32 %v11030_v37, %v6027_v32  ;;  %v7976_v47 = vpop.f32.mrb[225].mxu0  ;;  %v6381_v10 = vpop.permute.xlu1 %6380  ;;  %v6265_v40 = vmul.bf16 %v10819_v43, %v11436_v8 }
 0x891   :  { %v6030_v36 = vpop.f32.mrb[226].mxu0  ;;  %v6545_v63 = vsel %vm1719_vm4, %v11287_v6, %v6381_v10 }
 0x892   :  { %v6031_v52 = vadd.f32 %v11030_v37, %v6030_v36  ;;  %6398 = vrot.lane.b32.xlu1 %v6265_v40, %s8394_s25  ;;  %v7977_v31 = vpop.f32.mrb[227].mxu0  ;;  %6837 = vmatprep.mubr.bf16.mxu1 %v6545_v63  ;;  %v11449_v45 = vsel %vm706_vm3, %v6187_v44, %v6189_v54  ;;  %v6093_v49 = vmax.f32 %v6028_v11, 0.0  ;;  %v6312_v37 = vpop.permute.xlu0 %6311 }
 0x893   :  { %6838 = vmatmul.mubr.bf16.gmra.mrb[152].mxu1 %v6446_v34  ;;  %v6241_v43 = vmul.bf16 %v10906_v22, %v11449_v45 }
 0x894   :  { %v6094_v27 = vmax.f32 %v6031_v52, 0.0 }
 0x895   :  { %6333 = vrot.lane.b32.xlu0 %v6241_v43, %s8394_s25 }
 0x896   :  { %v11454_v6 = vpack.c.bf16 %v6094_v27, %v6093_v49  ;;  %v6314_v57 = vpop.permute.xlu0 %6313 }
 0x898   :  { %v6383_v7 = vpop.permute.xlu1 %6382  ;;  %v6266_v62 = vmul.bf16 %v10841_v21, %v11454_v6  ;;  %v6450_v21 = vsel %vm1719_vm4, %v11236_v56, %v6312_v37 }
 0x899   :  { %6406 = vrot.lane.b32.xlu0 %v5377_v42, %s8394_s25  ;;  %v6035_v46 = vpop.f32.mrb[228].mxu0  ;;  %v6549_v44 = vsel %vm1719_vm4, %v11300_v16, %v6383_v7 }
 0x89a   :  { %v6036_v18 = vadd.f32 %v8389_v53, %v6035_v46  ;;  %6400 = vrot.lane.b32.xlu1 %v6266_v62, %s8394_s25  ;;  %v7980_v55 = vpop.f32.mrb[229].mxu0  ;;  %6845 = vmatprep.mubr.bf16.mxu1 %v6549_v44  ;;  %v6316_v34 = vpop.permute.xlu0 %6315 }
 0x89b   :  { %v6038_v20 = vpop.f32.mrb[230].mxu0  ;;  %6846 = vmatmul.mubr.bf16.gmra.mrb[156].mxu1 %v6450_v21 }
 0x89c   :  { %v6039_v2 = vadd.f32 %v8389_v53, %v6038_v20  ;;  %v7981_v42 = vpop.f32.mrb[231].mxu0  ;;  %v6095_v16 = vmax.f32 %v6036_v18, 0.0 }
 0x89d   :  { %6408 = vrot.lane.b32.xlu0 %v5378_v23, %s8394_s25  ;;  %v6454_v23 = vsel %vm1719_vm4, %v11250_v60, %v6314_v57 }
 0x89e   :  { %v6096_v29 = vmax.f32 %v6039_v2, 0.0 }
 0x8a0   :  { %v11472_v25 = vpack.c.bf16 %v6096_v29, %v6095_v16 }
 0x8a1   :  { %v6385_v15 = vpop.permute.xlu1 %6384  ;;  %6410 = vrot.lane.b32.xlu0 %v5379_v48, %s8394_s25  ;;  %v6191_v48 = vrot.slane %v11454_v6, 4 }
 0x8a2   :  { %v6553_v56 = vsel %vm1719_vm4, %v11313_v24, %v6385_v15  ;;  %v6267_v12 = vmul.bf16 %v10884_v26, %v11472_v25  ;;  %v6193_v60 = vrot.slane %v11472_v25, 4 }
 0x8a3   :  { %6853 = vmatprep.mubr.bf16.mxu1 %v6553_v56  ;;  %v6192_v36 = vsel %vm706_vm3, %v6189_v54, %v6191_v48  ;;  %v6458_v54 = vsel %vm1719_vm4, %v11264_v5, %v6316_v34 }
 0x8a4   :  { %6854 = vmatmul.mubr.bf16.gmra.mrb[160].mxu1 %v6454_v23  ;;  %6402 = vrot.lane.b32.xlu1 %v6267_v12, %s8394_s25  ;;  %v6242_v63 = vmul.bf16 %v10946_v28, %v6192_v36  ;;  %v6194_v31 = vsel %vm706_vm3, %v6191_v48, %v6193_v60 }
 0x8a5   :  { %v6043_v13 = vpop.f32.mrb[232].mxu0  ;;  %v6243_v49 = vmul.bf16 %v10960_v30, %v6194_v31  ;;  %v6318_v30 = vpop.permute.xlu0 %6317 }
 0x8a6   :  { %v6044_v58 = vadd.f32 %v8389_v53, %v6043_v13  ;;  %v7984_v32 = vpop.f32.mrb[233].mxu0  ;;  %v6462_v5 = vsel %vm1719_vm4, %v11278_v4, %v6318_v30 }
 0x8a7   :  { %v6046_v11 = vpop.f32.mrb[234].mxu0 }
 0x8a8   :  { %v6097_v47 = vmax.f32 %v6044_v58, 0.0  ;;  %v7985_v10 = vpop.f32.mrb[235].mxu0 }
 0x8a9   :  { %v6320_v7 = vpop.permute.xlu0 %6319 }
 0x8aa   :  { %v11485_v40 = vpack.c.bf16 %v6097_v47, %v6097_v47  ;;  %v6466_v46 = vsel %vm1719_vm4, %v11292_v41, %v6320_v7 }
 0x8ac   :  { %v6246_v26 = vsel %vm706_vm3, %v11485_v40, 0  ;;  %v6195_v52 = vrot.slane %v11485_v40, 4 }
 0x8ad   :  { %v6268_v24 = vmul.bf16 %v10906_v22, %v6246_v26 }
 0x8ae   :  { %v11503_v27 = vsel %vm706_vm3, %v6193_v60, %v6195_v52 }
 0x8af   :  { %6404 = vrot.lane.b32.xlu1 %v6268_v24, %s8394_s25  ;;  %v6244_v28 = vmul.bf16 %v10981_v1, %v11503_v27 }
 0x8b3   :  { %6335 = vrot.lane.b32.xlu1 %v6242_v63, %s8394_s25 }
 0x8b5   :  { %v6387_v43 = vpop.permute.xlu1 %6386 }
 0x8b6   :  { %v6557_v22 = vsel %vm1719_vm4, %v11327_v33, %v6387_v43 }
 0x8b7   :  { %6861 = vmatprep.mubr.bf16.mxu1 %v6557_v22  ;;  %6337 = vrot.lane.b32.xlu1 %v6243_v49, %s8394_s25 }
 0x8b8   :  { %6862 = vmatmul.mubr.bf16.gmra.mrb[164].mxu1 %v6458_v54 }
 0x8bb   :  { %6339 = vrot.lane.b32.xlu1 %v6244_v28, %s8394_s25 }
 0x8bf   :  { %6341 = vrot.lane.b32.xlu1 %v10997_v51, %s8394_s25  ;;  %v6322_v51 = vpop.permute.xlu0 %6321 }
 0x8c0   :  { %v6470_v4 = vsel %vm1719_vm4, %v11306_v9, %v6322_v51 }
 0x8c7   :  { %v6389_v33 = vpop.permute.xlu1 %6388 }
 0x8c8   :  { %v6561_v37 = vsel %vm1719_vm4, %v11350_v14, %v6389_v33 }
 0x8c9   :  { %6869 = vmatprep.mubr.bf16.mxu1 %v6561_v37 }
 0x8ca   :  { %6870 = vmatmul.mubr.bf16.gmra.mrb[168].mxu1 %v6462_v5  ;;  %v6324_v53 = vpop.permute.xlu0 %6323 }
 0x8cb   :  { %v6474_v41 = vsel %vm1719_vm4, %v11320_v39, %v6324_v53 }
 0x8d0   :  { %v6391_v62 = vpop.permute.xlu1 %6390 }
 0x8d1   :  { %v6565_v1 = vsel %vm1719_vm4, %v11367_v19, %v6391_v62 }
 0x8d2   :  { %6877 = vmatprep.mubr.bf16.mxu1 %v6565_v1 }
 0x8d3   :  { %6878 = vmatmul.mubr.bf16.gmra.mrb[172].mxu1 %v6466_v46  ;;  %v6326_v55 = vpop.permute.xlu0 %6325 }
 0x8d4   :  { %v6478_v9 = vsel %vm1719_vm4, %v11338_v61, %v6326_v55 }
 0x8d8   :  { %v6393_v44 = vpop.permute.xlu1 %6392 }
 0x8d9   :  { %v6569_v14 = vsel %vm1719_vm4, %v11383_v3, %v6393_v44 }
 0x8da   :  { %6885 = vmatprep.mubr.bf16.mxu1 %v6569_v14 }
 0x8db   :  { %6886 = vmatmul.mubr.bf16.gmra.mrb[176].mxu1 %v6470_v4  ;;  %v6328_v20 = vpop.permute.xlu0 %6327 }
 0x8dc   :  { %v6482_v39 = vsel %vm1719_vm4, %v11356_v59, %v6328_v20  ;;  %v11544_v59 = vld [vmem:[%s11824_s13] ss:$0 sm:$0xff] }
 0x8eb   :  { %v6395_v18 = vpop.permute.xlu1 %6394 }
 0x8ec   :  { %v6573_v19 = vsel %vm1719_vm4, %v11407_v38, %v6395_v18 }
 0x8ed   :  { %6893 = vmatprep.mubr.bf16.mxu1 %v6573_v19 }
 0x8ee   :  { %6894 = vmatmul.mubr.bf16.gmra.mrb[180].mxu1 %v6474_v41  ;;  %v6330_v42 = vpop.permute.xlu0 %6329 }
 0x8f3   :  { %v6397_v21 = vpop.permute.xlu1 %6396 }
 0x8f4   :  { %v6577_v3 = vsel %vm1719_vm4, %v11423_v50, %v6397_v21  ;;  %v6486_v50 = vsel %vm1719_vm4, %v11374_v0, %v6330_v42 }
 0x8f5   :  { %6901 = vmatprep.mubr.bf16.mxu1 %v6577_v3 }
 0x8f6   :  { %6902 = vmatmul.mubr.bf16.gmra.mrb[184].mxu1 %v6478_v9  ;;  %v6332_v61 = vpop.permute.xlu0 %6331 }
 0x904   :  { %v6399_v2 = vpop.permute.xlu1 %6398 }
 0x905   :  { %v6581_v38 = vsel %vm1719_vm4, %v11449_v45, %v6399_v2  ;;  %v6490_v45 = vsel %vm1719_vm4, %v11396_v35, %v6332_v61 }
 0x906   :  { %6909 = vmatprep.mubr.bf16.mxu1 %v6581_v38 }
 0x907   :  { %6910 = vmatmul.mubr.bf16.gmra.mrb[188].mxu1 %v6482_v39  ;;  %v6334_v56 = vpop.permute.xlu0 %6333 }
 0x908   :  { %v6494_v10 = vsel %vm1719_vm4, %v11414_v17, %v6334_v56 }
 0x90b   :  { %v6407_v48 = vpop.permute.xlu0 %6406 }
 0x90c   :  { %v6401_v16 = vpop.permute.xlu1 %6400 }
 0x90d   :  { %v6585_v29 = vsel %vm1719_vm4, %v6192_v36, %v6401_v16 }
 0x90e   :  { %6917 = vmatprep.mubr.bf16.mxu1 %v6585_v29 }
 0x90f   :  { %6918 = vmatmul.mubr.bf16.gmra.mrb[192].mxu1 %v6486_v50  ;;  %v6409_v22 = vpop.permute.xlu0 %6408 }
 0x913   :  { %v6411_v51 = vpop.permute.xlu0 %6410 }
 0x916   :  { %v6403_v57 = vpop.permute.xlu1 %6402 }
 0x917   :  { %v6589_v15 = vsel %vm1719_vm4, %v6194_v31, %v6403_v57 }
 0x918   :  { %6925 = vmatprep.mubr.bf16.mxu1 %v6589_v15 }
 0x919   :  { %6926 = vmatmul.mubr.bf16.gmra.mrb[196].mxu1 %v6490_v45 }
 0x920   :  { %v6775_v12 = vpop.f32.mrb[120].mxu1 }
 0x921   :  { %v6776_v23 = vadd.f32 %v11544_v59, %v6775_v12  ;;  %v6777_v0 = vpop.f32.mrb[121].mxu1  ;;  %v6405_v13 = vpop.permute.xlu1 %6404 }
 0x922   :  { %v6778_v58 = vpop.f32.mrb[122].mxu1  ;;  %v6593_v35 = vsel %vm1719_vm4, %v11503_v27, %v6405_v13 }
 0x923   :  { %v6973_v32 = vmul.f32 0.5, %v6776_v23  ;;  %v6779_v11 = vadd.f32 %v11544_v59, %v6778_v58  ;;  %v6780_v47 = vpop.f32.mrb[123].mxu1  ;;  %6933 = vmatprep.mubr.bf16.mxu1 %v6593_v35 }
 0x924   :  { %6934 = vmatmul.mubr.bf16.gmra.mrb[200].mxu1 %v6494_v10 }
 0x925   :  { %8240 = vtanh.f32 %v6973_v32  ;;  %v6974_v26 = vmul.f32 0.5, %v6779_v11  ;;  %7536 = vmatprep.mubr.msk.bf16.mxu1 %vm8847_vm5, %v6407_v48  ;;  %v6336_v36 = vpop.permute.xlu1 %6335 }
 0x926   :  { %v6498_v17 = vsel %vm1719_vm4, %v11436_v8, %v6336_v36 }
 0x927   :  { %8242 = vtanh.f32 %v6974_v26 }
 0x928   :  { %v6783_v60 = vpop.f32.mrb[124].mxu1 }
 0x929   :  { %v6784_v63 = vadd.f32 %v11544_v59, %v6783_v60  ;;  %v6785_v52 = vpop.f32.mrb[125].mxu1  ;;  %v6338_v33 = vpop.permute.xlu1 %6337 }
 0x92a   :  { %v6786_v31 = vpop.f32.mrb[126].mxu1  ;;  %v6502_v46 = vsel %vm1719_vm4, %v11454_v6, %v6338_v33 }
 0x92b   :  { %v6975_v34 = vmul.f32 0.5, %v6784_v63  ;;  %v6787_v43 = vadd.f32 %v11544_v59, %v6786_v31  ;;  %v6788_v49 = vpop.f32.mrb[127].mxu1 }
 0x92c   :  { %6942 = vmatmul.mubr.bf16.gmra.mrb[204].mxu1 %v6498_v17 }
 0x92d   :  { %8244 = vtanh.f32 %v6975_v34  ;;  %v6976_v54 = vmul.f32 0.5, %v6787_v43  ;;  %7538 = vmatprep.mubr.msk.bf16.mxu1 %vm8847_vm5, %v6409_v22  ;;  %v6340_v19 = vpop.permute.xlu1 %6339 }
 0x92e   :  { %v6506_v39 = vsel %vm1719_vm4, %v11472_v25, %v6340_v19 }
 0x92f   :  { %v8241_v27 = vpop.eup %8240  ;;  %8246 = vtanh.f32 %v6976_v54 }
 0x930   :  { %v7071_v28 = vmul.f32 0.5, %v8241_v27 }
 0x931   :  { %v8243_v30 = vpop.eup %8242  ;;  %v6342_v42 = vpop.permute.xlu1 %6341 }
 0x932   :  { %v7120_v37 = vadd.f32 0.5, %v7071_v28  ;;  %v7072_v5 = vmul.f32 0.5, %v8243_v30  ;;  %v6509_v56 = vsel %vm1719_vm4, %v11485_v40, %v6342_v42 }
 0x933   :  { %v6791_v7 = vpop.f32.mrb[128].mxu1 }
 0x934   :  { %7170 = vst.msk [vmem:[%s11825_s14] sm:$0xff] %vm7169_vm8, %v7120_v37  ;;  %v7121_v8 = vadd.f32 0.5, %v7072_v5  ;;  %v6792_v62 = vadd.f32 %v11544_v59, %v6791_v7  ;;  %v6793_v1 = vpop.f32.mrb[129].mxu1  ;;  %6950 = vmatmul.mubr.bf16.gmra.mrb[208].mxu1 %v6502_v46 }
 0x935   :  { %v6794_v44 = vpop.f32.mrb[130].mxu1  ;;  %7540 = vmatprep.mubr.msk.bf16.mxu1 %vm8847_vm5, %v6411_v51 }
 0x936   :  { %7171 = vst.msk [vmem:[%s11825_s14 + $0x8] sm:$0xff] %vm7169_vm8, %v7121_v8  ;;  %v6977_v14 = vmul.f32 0.5, %v6792_v62  ;;  %v6795_v4 = vadd.f32 %v11544_v59, %v6794_v44  ;;  %v6796_v53 = vpop.f32.mrb[131].mxu1 }
 0x937   :  { %v8245_v18 = vpop.eup %8244 }
 0x938   :  { %v7073_v41 = vmul.f32 0.5, %v8245_v18  ;;  %8248 = vtanh.f32 %v6977_v14  ;;  %v6978_v6 = vmul.f32 0.5, %v6795_v4 }
 0x939   :  { %v8247_v55 = vpop.eup %8246 }
 0x93a   :  { %v7122_v21 = vadd.f32 0.5, %v7073_v41  ;;  %v7074_v3 = vmul.f32 0.5, %v8247_v55  ;;  %8250 = vtanh.f32 %v6978_v6 }
 0x93b   :  { %v6799_v9 = vpop.f32.mrb[132].mxu1 }
 0x93c   :  { %7172 = vst.msk [vmem:[%s11825_s14 + $0x10] sm:$0xff] %vm7169_vm8, %v7122_v21  ;;  %v7123_v20 = vadd.f32 0.5, %v7074_v3  ;;  %v6800_v2 = vadd.f32 %v11544_v59, %v6799_v9  ;;  %v6801_v38 = vpop.f32.mrb[133].mxu1  ;;  %6958 = vmatmul.mubr.bf16.gmra.mrb[212].mxu1 %v6506_v39 }
 0x93d   :  { %v6802_v16 = vpop.f32.mrb[134].mxu1  ;;  %7542 = vmatprep.mubr.msk.bf16.mxu1 %vm8847_vm5, %v6342_v42 }
 0x93e   :  { %7173 = vst.msk [vmem:[%s11825_s14 + $0x18] sm:$0xff] %vm7169_vm8, %v7123_v20  ;;  %v6979_v29 = vmul.f32 0.5, %v6800_v2  ;;  %v6803_v50 = vadd.f32 %v11544_v59, %v6802_v16  ;;  %v6804_v61 = vpop.f32.mrb[135].mxu1 }
 0x940   :  { %8252 = vtanh.f32 %v6979_v29  ;;  %v6980_v57 = vmul.f32 0.5, %v6803_v50 }
 0x942   :  { %v8249_v15 = vpop.eup %8248  ;;  %8254 = vtanh.f32 %v6980_v57 }
 0x943   :  { %v7075_v25 = vmul.f32 0.5, %v8249_v15 }
 0x944   :  { %v8251_v45 = vpop.eup %8250  ;;  %6966 = vmatmul.mubr.bf16.gmra.mrb[216].mxu1 %v6509_v56 }
 0x945   :  { %v7124_v12 = vadd.f32 0.5, %v7075_v25  ;;  %v7076_v23 = vmul.f32 0.5, %v8251_v45 }
 0x946   :  { %v6807_v0 = vpop.f32.mrb[136].mxu1 }
 0x947   :  { %7174 = vst.msk [vmem:[%s11825_s14 + $0x20] sm:$0xff] %vm7169_vm8, %v7124_v12  ;;  %v7125_v13 = vadd.f32 0.5, %v7076_v23  ;;  %v6808_v58 = vadd.f32 %v11544_v59, %v6807_v0  ;;  %v6809_v32 = vpop.f32.mrb[137].mxu1 }
 0x948   :  { %v6810_v11 = vpop.f32.mrb[138].mxu1 }
 0x949   :  { %7175 = vst.msk [vmem:[%s11825_s14 + $0x28] sm:$0xff] %vm7169_vm8, %v7125_v13  ;;  %v6981_v40 = vmul.f32 0.5, %v6808_v58  ;;  %v6811_v47 = vadd.f32 %v11544_v59, %v6810_v11  ;;  %v6812_v35 = vpop.f32.mrb[139].mxu1 }
 0x94a   :  { %v8253_v10 = vpop.eup %8252 }
 0x94b   :  { %v7077_v48 = vmul.f32 0.5, %v8253_v10  ;;  %8256 = vtanh.f32 %v6981_v40  ;;  %v6982_v26 = vmul.f32 0.5, %v6811_v47 }
 0x94c   :  { %v8255_v24 = vpop.eup %8254 }
 0x94d   :  { %v7126_v60 = vadd.f32 0.5, %v7077_v48  ;;  %v7078_v36 = vmul.f32 0.5, %v8255_v24  ;;  %8258 = vtanh.f32 %v6982_v26 }
 0x94e   :  { %v6815_v63 = vpop.f32.mrb[140].mxu1 }
 0x94f   :  { %7176 = vst.msk [vmem:[%s11825_s14 + $0x30] sm:$0xff] %vm7169_vm8, %v7126_v60  ;;  %v7127_v52 = vadd.f32 0.5, %v7078_v36  ;;  %v6816_v31 = vadd.f32 %v11544_v59, %v6815_v63  ;;  %v6817_v34 = vpop.f32.mrb[141].mxu1 }
 0x950   :  { %v6818_v43 = vpop.f32.mrb[142].mxu1 }
 0x951   :  { %7177 = vst.msk [vmem:[%s11825_s14 + $0x38] sm:$0xff] %vm7169_vm8, %v7127_v52  ;;  %v6983_v49 = vmul.f32 0.5, %v6816_v31  ;;  %v6819_v17 = vadd.f32 %v11544_v59, %v6818_v43  ;;  %v6820_v22 = vpop.f32.mrb[143].mxu1 }
 0x953   :  { %8260 = vtanh.f32 %v6983_v49  ;;  %v6984_v54 = vmul.f32 0.5, %v6819_v17 }
 0x955   :  { %v8257_v27 = vpop.eup %8256  ;;  %8262 = vtanh.f32 %v6984_v54 }
 0x956   :  { %v7079_v28 = vmul.f32 0.5, %v8257_v27  ;;  %v6823_v30 = vpop.f32.mrb[144].mxu1 }
 0x957   :  { %v8259_v33 = vpop.eup %8258  ;;  %v6824_v37 = vadd.f32 %v11544_v59, %v6823_v30  ;;  %v6825_v5 = vpop.f32.mrb[145].mxu1 }
 0x958   :  { %v7128_v7 = vadd.f32 0.5, %v7079_v28  ;;  %v7080_v8 = vmul.f32 0.5, %v8259_v33  ;;  %v6826_v62 = vpop.f32.mrb[146].mxu1 }
 0x959   :  { %v6985_v1 = vmul.f32 0.5, %v6824_v37  ;;  %v6827_v46 = vadd.f32 %v11544_v59, %v6826_v62  ;;  %v6828_v51 = vpop.f32.mrb[147].mxu1 }
 0x95a   :  { %7178 = vst.msk [vmem:[%s11825_s14 + $0x40] sm:$0xff] %vm7169_vm8, %v7128_v7  ;;  %v7129_v44 = vadd.f32 0.5, %v7080_v8 }
 0x95b   :  { %8264 = vtanh.f32 %v6985_v1  ;;  %v6986_v14 = vmul.f32 0.5, %v6827_v46 }
 0x95c   :  { %7179 = vst.msk [vmem:[%s11825_s14 + $0x48] sm:$0xff] %vm7169_vm8, %v7129_v44 }
 0x95d   :  { %v8261_v4 = vpop.eup %8260  ;;  %8266 = vtanh.f32 %v6986_v14 }
 0x95e   :  { %v7081_v53 = vmul.f32 0.5, %v8261_v4  ;;  %v6831_v18 = vpop.f32.mrb[148].mxu1 }
 0x95f   :  { %v8263_v19 = vpop.eup %8262  ;;  %v6832_v41 = vadd.f32 %v11544_v59, %v6831_v18  ;;  %v6833_v6 = vpop.f32.mrb[149].mxu1 }
 0x960   :  { %v7130_v55 = vadd.f32 0.5, %v7081_v53  ;;  %v7082_v21 = vmul.f32 0.5, %v8263_v19  ;;  %v6834_v3 = vpop.f32.mrb[150].mxu1 }
 0x961   :  { %v6987_v9 = vmul.f32 0.5, %v6832_v41  ;;  %v6835_v20 = vadd.f32 %v11544_v59, %v6834_v3  ;;  %v6836_v2 = vpop.f32.mrb[151].mxu1 }
 0x962   :  { %7180 = vst.msk [vmem:[%s11825_s14 + $0x50] sm:$0xff] %vm7169_vm8, %v7130_v55  ;;  %v7131_v38 = vadd.f32 0.5, %v7082_v21 }
 0x963   :  { %8268 = vtanh.f32 %v6987_v9  ;;  %v6988_v39 = vmul.f32 0.5, %v6835_v20 }
 0x964   :  { %7181 = vst.msk [vmem:[%s11825_s14 + $0x58] sm:$0xff] %vm7169_vm8, %v7131_v38 }
 0x965   :  { %v8265_v42 = vpop.eup %8264  ;;  %8270 = vtanh.f32 %v6988_v39 }
 0x966   :  { %v7083_v16 = vmul.f32 0.5, %v8265_v42  ;;  %v6839_v29 = vpop.f32.mrb[152].mxu1 }
 0x967   :  { %v8267_v50 = vpop.eup %8266  ;;  %v6840_v61 = vadd.f32 %v11544_v59, %v6839_v29  ;;  %v6841_v57 = vpop.f32.mrb[153].mxu1 }
 0x968   :  { %v7132_v15 = vadd.f32 0.5, %v7083_v16  ;;  %v7084_v25 = vmul.f32 0.5, %v8267_v50  ;;  %v6842_v45 = vpop.f32.mrb[154].mxu1 }
 0x969   :  { %v6989_v56 = vmul.f32 0.5, %v6840_v61  ;;  %v6843_v12 = vadd.f32 %v11544_v59, %v6842_v45  ;;  %v6844_v23 = vpop.f32.mrb[155].mxu1 }
 0x96a   :  { %7182 = vst.msk [vmem:[%s11825_s14 + $0x60] sm:$0xff] %vm7169_vm8, %v7132_v15  ;;  %v7133_v0 = vadd.f32 0.5, %v7084_v25 }
 0x96b   :  { %8272 = vtanh.f32 %v6989_v56  ;;  %v6990_v13 = vmul.f32 0.5, %v6843_v12 }
 0x96c   :  { %7183 = vst.msk [vmem:[%s11825_s14 + $0x68] sm:$0xff] %vm7169_vm8, %v7133_v0 }
 0x96d   :  { %v8269_v58 = vpop.eup %8268  ;;  %8274 = vtanh.f32 %v6990_v13 }
 0x96e   :  { %v7085_v32 = vmul.f32 0.5, %v8269_v58  ;;  %v6847_v11 = vpop.f32.mrb[156].mxu1 }
 0x96f   :  { %v8271_v40 = vpop.eup %8270  ;;  %v6848_v47 = vadd.f32 %v11544_v59, %v6847_v11  ;;  %v6849_v35 = vpop.f32.mrb[157].mxu1 }
 0x970   :  { %v7134_v10 = vadd.f32 0.5, %v7085_v32  ;;  %v7086_v48 = vmul.f32 0.5, %v8271_v40  ;;  %v6850_v26 = vpop.f32.mrb[158].mxu1 }
 0x971   :  { %v6991_v24 = vmul.f32 0.5, %v6848_v47  ;;  %v6851_v60 = vadd.f32 %v11544_v59, %v6850_v26  ;;  %v6852_v36 = vpop.f32.mrb[159].mxu1 }
 0x972   :  { %7184 = vst.msk [vmem:[%s11825_s14 + $0x70] sm:$0xff] %vm7169_vm8, %v7134_v10  ;;  %v7135_v63 = vadd.f32 0.5, %v7086_v48 }
 0x973   :  { %8276 = vtanh.f32 %v6991_v24  ;;  %v6992_v52 = vmul.f32 0.5, %v6851_v60 }
 0x974   :  { %7185 = vst.msk [vmem:[%s11825_s14 + $0x78] sm:$0xff] %vm7169_vm8, %v7135_v63 }
 0x975   :  { %v8273_v31 = vpop.eup %8272  ;;  %8278 = vtanh.f32 %v6992_v52 }
 0x976   :  { %v7087_v34 = vmul.f32 0.5, %v8273_v31 }
 0x977   :  { %v8275_v43 = vpop.eup %8274  ;;  %v6855_v49 = vpop.f32.mrb[160].mxu1 }
 0x978   :  { %v7136_v17 = vadd.f32 0.5, %v7087_v34  ;;  %v7088_v22 = vmul.f32 0.5, %v8275_v43  ;;  %v6856_v54 = vadd.f32 %v11544_v59, %v6855_v49  ;;  %v6857_v27 = vpop.f32.mrb[161].mxu1 }
 0x979   :  { %v6858_v28 = vpop.f32.mrb[162].mxu1 }
 0x97a   :  { %7186 = vst.msk [vmem:[%s11825_s14 + $0x80] sm:$0xff] %vm7169_vm8, %v7136_v17  ;;  %v7137_v30 = vadd.f32 0.5, %v7088_v22  ;;  %v6993_v33 = vmul.f32 0.5, %v6856_v54  ;;  %v6859_v37 = vadd.f32 %v11544_v59, %v6858_v28  ;;  %v6860_v5 = vpop.f32.mrb[163].mxu1 }
 0x97c   :  { %7187 = vst.msk [vmem:[%s11825_s14 + $0x88] sm:$0xff] %vm7169_vm8, %v7137_v30  ;;  %8280 = vtanh.f32 %v6993_v33  ;;  %v6994_v7 = vmul.f32 0.5, %v6859_v37 }
 0x97d   :  { %v8277_v8 = vpop.eup %8276 }
 0x97e   :  { %v7089_v62 = vmul.f32 0.5, %v8277_v8  ;;  %8282 = vtanh.f32 %v6994_v7 }
 0x97f   :  { %v8279_v1 = vpop.eup %8278 }
 0x980   :  { %v7138_v46 = vadd.f32 0.5, %v7089_v62  ;;  %v7090_v51 = vmul.f32 0.5, %v8279_v1 }
 0x982   :  { %7188 = vst.msk [vmem:[%s11825_s14 + $0x90] sm:$0xff] %vm7169_vm8, %v7138_v46  ;;  %v7139_v44 = vadd.f32 0.5, %v7090_v51 }
 0x984   :  { %7189 = vst.msk [vmem:[%s11825_s14 + $0x98] sm:$0xff] %vm7169_vm8, %v7139_v44 }
 0x986   :  { %v8281_v14 = vpop.eup %8280 }
 0x987   :  { %v7091_v4 = vmul.f32 0.5, %v8281_v14 }
 0x988   :  { %v8283_v53 = vpop.eup %8282 }
 0x989   :  { %v7140_v18 = vadd.f32 0.5, %v7091_v4  ;;  %v7092_v19 = vmul.f32 0.5, %v8283_v53 }
 0x98b   :  { %7190 = vst.msk [vmem:[%s11825_s14 + $0xa0] sm:$0xff] %vm7169_vm8, %v7140_v18  ;;  %v7141_v41 = vadd.f32 0.5, %v7092_v19  ;;  %v6863_v6 = vpop.f32.mrb[164].mxu1 }
 0x98c   :  { %v6864_v55 = vadd.f32 %v11544_v59, %v6863_v6  ;;  %v6865_v21 = vpop.f32.mrb[165].mxu1 }
 0x98d   :  { %7191 = vst.msk [vmem:[%s11825_s14 + $0xa8] sm:$0xff] %vm7169_vm8, %v7141_v41  ;;  %v6866_v3 = vpop.f32.mrb[166].mxu1 }
 0x98e   :  { %v6995_v9 = vmul.f32 0.5, %v6864_v55  ;;  %v6867_v20 = vadd.f32 %v11544_v59, %v6866_v3  ;;  %v6868_v2 = vpop.f32.mrb[167].mxu1 }
 0x990   :  { %8284 = vtanh.f32 %v6995_v9  ;;  %v6996_v38 = vmul.f32 0.5, %v6867_v20 }
 0x992   :  { %8286 = vtanh.f32 %v6996_v38 }
 0x99a   :  { %v8285_v39 = vpop.eup %8284 }
 0x99b   :  { %v7093_v42 = vmul.f32 0.5, %v8285_v39 }
 0x99c   :  { %v8287_v16 = vpop.eup %8286 }
 0x99d   :  { %v7142_v29 = vadd.f32 0.5, %v7093_v42  ;;  %v7094_v50 = vmul.f32 0.5, %v8287_v16  ;;  %v6871_v61 = vpop.f32.mrb[168].mxu1 }
 0x99e   :  { %v6872_v57 = vadd.f32 %v11544_v59, %v6871_v61  ;;  %v6873_v15 = vpop.f32.mrb[169].mxu1 }
 0x99f   :  { %7192 = vst.msk [vmem:[%s11825_s14 + $0xb0] sm:$0xff] %vm7169_vm8, %v7142_v29  ;;  %v7143_v25 = vadd.f32 0.5, %v7094_v50  ;;  %v6874_v45 = vpop.f32.mrb[170].mxu1 }
 0x9a0   :  { %v6997_v56 = vmul.f32 0.5, %v6872_v57  ;;  %v6875_v12 = vadd.f32 %v11544_v59, %v6874_v45  ;;  %v6876_v23 = vpop.f32.mrb[171].mxu1 }
 0x9a1   :  { %7193 = vst.msk [vmem:[%s11825_s14 + $0xb8] sm:$0xff] %vm7169_vm8, %v7143_v25 }
 0x9a2   :  { %8288 = vtanh.f32 %v6997_v56  ;;  %v6998_v0 = vmul.f32 0.5, %v6875_v12 }
 0x9a4   :  { %8290 = vtanh.f32 %v6998_v0 }
 0x9a6   :  { %v6879_v13 = vpop.f32.mrb[172].mxu1 }
 0x9a7   :  { %v6880_v58 = vadd.f32 %v11544_v59, %v6879_v13  ;;  %v6881_v32 = vpop.f32.mrb[173].mxu1 }
 0x9a8   :  { %v6882_v11 = vpop.f32.mrb[174].mxu1 }
 0x9a9   :  { %v6999_v40 = vmul.f32 0.5, %v6880_v58  ;;  %v6883_v47 = vadd.f32 %v11544_v59, %v6882_v11  ;;  %v6884_v35 = vpop.f32.mrb[175].mxu1 }
 0x9ab   :  { %8292 = vtanh.f32 %v6999_v40  ;;  %v7000_v10 = vmul.f32 0.5, %v6883_v47 }
 0x9ac   :  { %v8289_v48 = vpop.eup %8288 }
 0x9ad   :  { %v7095_v26 = vmul.f32 0.5, %v8289_v48  ;;  %8294 = vtanh.f32 %v7000_v10 }
 0x9ae   :  { %v8291_v24 = vpop.eup %8290  ;;  %v6887_v60 = vpop.f32.mrb[176].mxu1 }
 0x9af   :  { %v7144_v36 = vadd.f32 0.5, %v7095_v26  ;;  %v7096_v63 = vmul.f32 0.5, %v8291_v24  ;;  %v6888_v52 = vadd.f32 %v11544_v59, %v6887_v60  ;;  %v6889_v31 = vpop.f32.mrb[177].mxu1 }
 0x9b0   :  { %v6890_v34 = vpop.f32.mrb[178].mxu1 }
 0x9b1   :  { %7194 = vst.msk [vmem:[%s11825_s14 + $0xc0] sm:$0xff] %vm7169_vm8, %v7144_v36  ;;  %v7145_v43 = vadd.f32 0.5, %v7096_v63  ;;  %v7001_v49 = vmul.f32 0.5, %v6888_v52  ;;  %v6891_v17 = vadd.f32 %v11544_v59, %v6890_v34  ;;  %v6892_v22 = vpop.f32.mrb[179].mxu1 }
 0x9b3   :  { %7195 = vst.msk [vmem:[%s11825_s14 + $0xc8] sm:$0xff] %vm7169_vm8, %v7145_v43  ;;  %8296 = vtanh.f32 %v7001_v49  ;;  %v7002_v54 = vmul.f32 0.5, %v6891_v17 }
 0x9b5   :  { %v8293_v27 = vpop.eup %8292  ;;  %8298 = vtanh.f32 %v7002_v54 }
 0x9b6   :  { %v7097_v28 = vmul.f32 0.5, %v8293_v27 }
 0x9b7   :  { %v8295_v30 = vpop.eup %8294 }
 0x9b8   :  { %v7146_v33 = vadd.f32 0.5, %v7097_v28  ;;  %v7098_v37 = vmul.f32 0.5, %v8295_v30 }
 0x9ba   :  { %7196 = vst.msk [vmem:[%s11825_s14 + $0xd0] sm:$0xff] %vm7169_vm8, %v7146_v33  ;;  %v7147_v5 = vadd.f32 0.5, %v7098_v37 }
 0x9bc   :  { %7197 = vst.msk [vmem:[%s11825_s14 + $0xd8] sm:$0xff] %vm7169_vm8, %v7147_v5 }
 0x9bd   :  { %v8297_v7 = vpop.eup %8296 }
 0x9be   :  { %v7099_v8 = vmul.f32 0.5, %v8297_v7 }
 0x9bf   :  { %v8299_v62 = vpop.eup %8298 }
 0x9c0   :  { %v7148_v1 = vadd.f32 0.5, %v7099_v8  ;;  %v7100_v46 = vmul.f32 0.5, %v8299_v62 }
 0x9c1   :  { %v6895_v51 = vpop.f32.mrb[180].mxu1 }
 0x9c2   :  { %7198 = vst.msk [vmem:[%s11825_s14 + $0xe0] sm:$0xff] %vm7169_vm8, %v7148_v1  ;;  %v7149_v44 = vadd.f32 0.5, %v7100_v46  ;;  %v6896_v14 = vadd.f32 %v11544_v59, %v6895_v51  ;;  %v6897_v4 = vpop.f32.mrb[181].mxu1 }
 0x9c3   :  { %v6898_v53 = vpop.f32.mrb[182].mxu1 }
 0x9c4   :  { %7199 = vst.msk [vmem:[%s11825_s14 + $0xe8] sm:$0xff] %vm7169_vm8, %v7149_v44  ;;  %v7003_v18 = vmul.f32 0.5, %v6896_v14  ;;  %v6899_v19 = vadd.f32 %v11544_v59, %v6898_v53  ;;  %v6900_v41 = vpop.f32.mrb[183].mxu1 }
 0x9c6   :  { %8300 = vtanh.f32 %v7003_v18  ;;  %v7004_v6 = vmul.f32 0.5, %v6899_v19 }
 0x9c8   :  { %8302 = vtanh.f32 %v7004_v6 }
 0x9c9   :  { %v6903_v55 = vpop.f32.mrb[184].mxu1 }
 0x9ca   :  { %v6904_v21 = vadd.f32 %v11544_v59, %v6903_v55  ;;  %v6905_v3 = vpop.f32.mrb[185].mxu1 }
 0x9cb   :  { %v6906_v9 = vpop.f32.mrb[186].mxu1 }
 0x9cc   :  { %v7005_v20 = vmul.f32 0.5, %v6904_v21  ;;  %v6907_v2 = vadd.f32 %v11544_v59, %v6906_v9  ;;  %v6908_v38 = vpop.f32.mrb[187].mxu1 }
 0x9ce   :  { %8304 = vtanh.f32 %v7005_v20  ;;  %v7006_v39 = vmul.f32 0.5, %v6907_v2 }
 0x9d0   :  { %v8301_v42 = vpop.eup %8300  ;;  %8306 = vtanh.f32 %v7006_v39 }
 0x9d1   :  { %v7101_v16 = vmul.f32 0.5, %v8301_v42 }
 0x9d2   :  { %v8303_v29 = vpop.eup %8302 }
 0x9d3   :  { %v7150_v50 = vadd.f32 0.5, %v7101_v16  ;;  %v7102_v61 = vmul.f32 0.5, %v8303_v29 }
 0x9d5   :  { %7200 = vst.msk [vmem:[%s11825_s14 + $0xf0] sm:$0xff] %vm7169_vm8, %v7150_v50  ;;  %v7151_v57 = vadd.f32 0.5, %v7102_v61 }
 0x9d7   :  { %7201 = vst.msk [vmem:[%s11825_s14 + $0xf8] sm:$0xff] %vm7169_vm8, %v7151_v57 }
 0x9d8   :  { %v8305_v15 = vpop.eup %8304 }
 0x9d9   :  { %v7103_v25 = vmul.f32 0.5, %v8305_v15 }
 0x9da   :  { %v8307_v45 = vpop.eup %8306  ;;  %v6911_v56 = vpop.f32.mrb[188].mxu1 }
 0x9db   :  { %v7152_v12 = vadd.f32 0.5, %v7103_v25  ;;  %v7104_v23 = vmul.f32 0.5, %v8307_v45  ;;  %v6912_v0 = vadd.f32 %v11544_v59, %v6911_v56  ;;  %v6913_v13 = vpop.f32.mrb[189].mxu1 }
 0x9dc   :  { %v6914_v58 = vpop.f32.mrb[190].mxu1 }
 0x9dd   :  { %7202 = vst.msk [vmem:[%s11825_s14 + $0x100] sm:$0xff] %vm7169_vm8, %v7152_v12  ;;  %v7153_v32 = vadd.f32 0.5, %v7104_v23  ;;  %v7007_v11 = vmul.f32 0.5, %v6912_v0  ;;  %v6915_v40 = vadd.f32 %v11544_v59, %v6914_v58  ;;  %v6916_v47 = vpop.f32.mrb[191].mxu1 }
 0x9df   :  { %7203 = vst.msk [vmem:[%s11825_s14 + $0x108] sm:$0xff] %vm7169_vm8, %v7153_v32  ;;  %8308 = vtanh.f32 %v7007_v11  ;;  %v7008_v35 = vmul.f32 0.5, %v6915_v40 }
 0x9e1   :  { %8310 = vtanh.f32 %v7008_v35 }
 0x9e2   :  { %v6919_v10 = vpop.f32.mrb[192].mxu1 }
 0x9e3   :  { %v6920_v48 = vadd.f32 %v11544_v59, %v6919_v10  ;;  %v6921_v26 = vpop.f32.mrb[193].mxu1 }
 0x9e4   :  { %v6922_v24 = vpop.f32.mrb[194].mxu1 }
 0x9e5   :  { %v7009_v60 = vmul.f32 0.5, %v6920_v48  ;;  %v6923_v36 = vadd.f32 %v11544_v59, %v6922_v24  ;;  %v6924_v63 = vpop.f32.mrb[195].mxu1 }
 0x9e7   :  { %8312 = vtanh.f32 %v7009_v60  ;;  %v7010_v52 = vmul.f32 0.5, %v6923_v36 }
 0x9e9   :  { %v8309_v31 = vpop.eup %8308  ;;  %8314 = vtanh.f32 %v7010_v52 }
 0x9ea   :  { %v7105_v34 = vmul.f32 0.5, %v8309_v31 }
 0x9eb   :  { %v8311_v43 = vpop.eup %8310 }
 0x9ec   :  { %v7154_v49 = vadd.f32 0.5, %v7105_v34  ;;  %v7106_v17 = vmul.f32 0.5, %v8311_v43  ;;  %v6927_v22 = vpop.f32.mrb[196].mxu1 }
 0x9ed   :  { %v6928_v54 = vadd.f32 %v11544_v59, %v6927_v22  ;;  %v6929_v27 = vpop.f32.mrb[197].mxu1 }
 0x9ee   :  { %7204 = vst.msk [vmem:[%s11825_s14 + $0x110] sm:$0xff] %vm7169_vm8, %v7154_v49  ;;  %v7155_v28 = vadd.f32 0.5, %v7106_v17  ;;  %v6930_v30 = vpop.f32.mrb[198].mxu1 }
 0x9ef   :  { %v7011_v33 = vmul.f32 0.5, %v6928_v54  ;;  %v6931_v37 = vadd.f32 %v11544_v59, %v6930_v30  ;;  %v6932_v5 = vpop.f32.mrb[199].mxu1 }
 0x9f0   :  { %7205 = vst.msk [vmem:[%s11825_s14 + $0x118] sm:$0xff] %vm7169_vm8, %v7155_v28 }
 0x9f1   :  { %v8313_v7 = vpop.eup %8312  ;;  %8316 = vtanh.f32 %v7011_v33  ;;  %v7012_v8 = vmul.f32 0.5, %v6931_v37 }
 0x9f2   :  { %v7107_v62 = vmul.f32 0.5, %v8313_v7 }
 0x9f3   :  { %v8315_v1 = vpop.eup %8314  ;;  %8318 = vtanh.f32 %v7012_v8 }
 0x9f4   :  { %v7156_v46 = vadd.f32 0.5, %v7107_v62  ;;  %v7108_v51 = vmul.f32 0.5, %v8315_v1 }
 0x9f6   :  { %7206 = vst.msk [vmem:[%s11825_s14 + $0x120] sm:$0xff] %vm7169_vm8, %v7156_v46  ;;  %v7157_v44 = vadd.f32 0.5, %v7108_v51 }
 0x9f7   :  { %v6935_v14 = vpop.f32.mrb[200].mxu1 }
 0x9f8   :  { %7207 = vst.msk [vmem:[%s11825_s14 + $0x128] sm:$0xff] %vm7169_vm8, %v7157_v44  ;;  %v6936_v4 = vadd.f32 %v11544_v59, %v6935_v14  ;;  %v6937_v53 = vpop.f32.mrb[201].mxu1 }
 0x9f9   :  { %v6938_v18 = vpop.f32.mrb[202].mxu1 }
 0x9fa   :  { %v7013_v41 = vmul.f32 0.5, %v6936_v4  ;;  %v6939_v6 = vadd.f32 %v11544_v59, %v6938_v18  ;;  %v6940_v55 = vpop.f32.mrb[203].mxu1 }
 0x9fb   :  { %v8317_v19 = vpop.eup %8316 }
 0x9fc   :  { %v7109_v21 = vmul.f32 0.5, %v8317_v19  ;;  %8320 = vtanh.f32 %v7013_v41  ;;  %v7014_v9 = vmul.f32 0.5, %v6939_v6 }
 0x9fd   :  { %v8319_v3 = vpop.eup %8318 }
 0x9fe   :  { %v7158_v20 = vadd.f32 0.5, %v7109_v21  ;;  %v7110_v2 = vmul.f32 0.5, %v8319_v3  ;;  %8322 = vtanh.f32 %v7014_v9 }
 0x9ff   :  { %v6943_v39 = vpop.f32.mrb[204].mxu1 }
 0xa00   :  { %7208 = vst.msk [vmem:[%s11825_s14 + $0x130] sm:$0xff] %vm7169_vm8, %v7158_v20  ;;  %v7159_v38 = vadd.f32 0.5, %v7110_v2  ;;  %v6944_v42 = vadd.f32 %v11544_v59, %v6943_v39  ;;  %v6945_v16 = vpop.f32.mrb[205].mxu1 }
 0xa01   :  { %v6946_v29 = vpop.f32.mrb[206].mxu1 }
 0xa02   :  { %7209 = vst.msk [vmem:[%s11825_s14 + $0x138] sm:$0xff] %vm7169_vm8, %v7159_v38  ;;  %v7015_v50 = vmul.f32 0.5, %v6944_v42  ;;  %v6947_v61 = vadd.f32 %v11544_v59, %v6946_v29  ;;  %v6948_v57 = vpop.f32.mrb[207].mxu1 }
 0xa04   :  { %8324 = vtanh.f32 %v7015_v50  ;;  %v7016_v15 = vmul.f32 0.5, %v6947_v61 }
 0xa06   :  { %v8321_v25 = vpop.eup %8320  ;;  %8326 = vtanh.f32 %v7016_v15 }
 0xa07   :  { %v7111_v45 = vmul.f32 0.5, %v8321_v25  ;;  %v6951_v56 = vpop.f32.mrb[208].mxu1 }
 0xa08   :  { %v8323_v12 = vpop.eup %8322  ;;  %v6952_v23 = vadd.f32 %v11544_v59, %v6951_v56  ;;  %v6953_v0 = vpop.f32.mrb[209].mxu1 }
 0xa09   :  { %v7160_v13 = vadd.f32 0.5, %v7111_v45  ;;  %v7112_v58 = vmul.f32 0.5, %v8323_v12  ;;  %v6954_v32 = vpop.f32.mrb[210].mxu1 }
 0xa0a   :  { %v7017_v11 = vmul.f32 0.5, %v6952_v23  ;;  %v6955_v40 = vadd.f32 %v11544_v59, %v6954_v32  ;;  %v6956_v47 = vpop.f32.mrb[211].mxu1 }
 0xa0b   :  { %7210 = vst.msk [vmem:[%s11825_s14 + $0x140] sm:$0xff] %vm7169_vm8, %v7160_v13  ;;  %v7161_v35 = vadd.f32 0.5, %v7112_v58 }
 0xa0c   :  { %8328 = vtanh.f32 %v7017_v11  ;;  %v7018_v10 = vmul.f32 0.5, %v6955_v40 }
 0xa0d   :  { %7211 = vst.msk [vmem:[%s11825_s14 + $0x148] sm:$0xff] %vm7169_vm8, %v7161_v35 }
 0xa0e   :  { %v8325_v48 = vpop.eup %8324  ;;  %8330 = vtanh.f32 %v7018_v10 }
 0xa0f   :  { %v7113_v26 = vmul.f32 0.5, %v8325_v48  ;;  %v6959_v24 = vpop.f32.mrb[212].mxu1 }
 0xa10   :  { %v8327_v60 = vpop.eup %8326  ;;  %v6960_v36 = vadd.f32 %v11544_v59, %v6959_v24  ;;  %v6961_v63 = vpop.f32.mrb[213].mxu1 }
 0xa11   :  { %v7162_v52 = vadd.f32 0.5, %v7113_v26  ;;  %v7114_v31 = vmul.f32 0.5, %v8327_v60  ;;  %v6962_v34 = vpop.f32.mrb[214].mxu1 }
 0xa12   :  { %v7019_v43 = vmul.f32 0.5, %v6960_v36  ;;  %v6963_v49 = vadd.f32 %v11544_v59, %v6962_v34  ;;  %v6964_v17 = vpop.f32.mrb[215].mxu1 }
 0xa13   :  { %7212 = vst.msk [vmem:[%s11825_s14 + $0x150] sm:$0xff] %vm7169_vm8, %v7162_v52  ;;  %v7163_v22 = vadd.f32 0.5, %v7114_v31 }
 0xa14   :  { %8332 = vtanh.f32 %v7019_v43  ;;  %v7020_v54 = vmul.f32 0.5, %v6963_v49 }
 0xa15   :  { %7213 = vst.msk [vmem:[%s11825_s14 + $0x158] sm:$0xff] %vm7169_vm8, %v7163_v22 }
 0xa16   :  { %v8329_v27 = vpop.eup %8328  ;;  %8334 = vtanh.f32 %v7020_v54 }
 0xa17   :  { %v7115_v28 = vmul.f32 0.5, %v8329_v27  ;;  %v6967_v30 = vpop.f32.mrb[216].mxu1 }
 0xa18   :  { %v8331_v33 = vpop.eup %8330  ;;  %v6968_v37 = vadd.f32 %v11544_v59, %v6967_v30  ;;  %v6969_v5 = vpop.f32.mrb[217].mxu1 }
 0xa19   :  { %v7164_v7 = vadd.f32 0.5, %v7115_v28  ;;  %v7116_v8 = vmul.f32 0.5, %v8331_v33  ;;  %v6970_v62 = vpop.f32.mrb[218].mxu1 }
 0xa1a   :  { %v7021_v1 = vmul.f32 0.5, %v6968_v37  ;;  %v6971_v46 = vpop.f32.mrb[219].mxu1 }
 0xa1b   :  { %7214 = vst.msk [vmem:[%s11825_s14 + $0x160] sm:$0xff] %vm7169_vm8, %v7164_v7  ;;  %v7165_v51 = vadd.f32 0.5, %v7116_v8 }
 0xa1c   :  { %8336 = vtanh.f32 %v7021_v1 }
 0xa1d   :  { %7215 = vst.msk [vmem:[%s11825_s14 + $0x168] sm:$0xff] %vm7169_vm8, %v7165_v51 }
 0xa1e   :  { %v8333_v44 = vpop.eup %8332 }
 0xa1f   :  { %v7117_v59 = vmul.f32 0.5, %v8333_v44 }
 0xa20   :  { %v8335_v14 = vpop.eup %8334 }
 0xa21   :  { %v7166_v4 = vadd.f32 0.5, %v7117_v59  ;;  %v7118_v53 = vmul.f32 0.5, %v8335_v14 }
 0xa23   :  { %7216 = vst.msk [vmem:[%s11825_s14 + $0x170] sm:$0xff] %vm7169_vm8, %v7166_v4  ;;  %v7167_v18 = vadd.f32 0.5, %v7118_v53 }
 0xa25   :  { %7217 = vst.msk [vmem:[%s11825_s14 + $0x178] sm:$0xff] %vm7169_vm8, %v7167_v18 }
 0xa26   :  { %v8337_v19 = vpop.eup %8336 }
 0xa27   :  { %v7119_v41 = vmul.f32 0.5, %v8337_v19 }
 0xa29   :  { %v7168_v6 = vadd.f32 0.5, %v7119_v41 }
 0xa2b   :  { %7218 = vst.msk [vmem:[%s11825_s14 + $0x180] sm:$0xff] %vm7169_vm8, %v7168_v6 }

</bundles_post_ra>
